<compile_context>
chip_gen: v7x
topology: tpu7x:2x2x1
jax: 0.10.0
libtpu: 0.0.40
codegen_flags: <defaults>
</compile_context>

<pallas_src>
import numpy as np

import jax
import jax.numpy as jnp
from jax.experimental import pallas as pl
from jax.experimental.pallas import tpu as pltpu


# ---------------------------------------------------------------------------
# Kernel
# ---------------------------------------------------------------------------
_PARAM_KEYS = (
    'bn_g_s', 'bn_g_b', 'bn_x_s', 'bn_x_b', 'bn_gc_s', 'bn_gc_b', 'gc_bias',
    'bn_r1g_s', 'bn_r1g_b', 'bn_r1d_s', 'bn_r1d_b', 'bn_r2_s', 'bn_r2_b',
    'z_bias',
    'w_g_eo', 'w_x', 'w_gc', 'w_r1d', 'w_r1g', 'w_r1b', 'w_c2d', 'w_c2g',
    't_dn_h', 't_up_h', 't_dn_hh', 't_up_hh', 'sel_e', 'sel_o', 'r_dup',
    'u_wdup', 'gm_pool', 'dm_tile', 'se_w1', 'se_w2',
)


def _decoder_block_kernel(
        gs_ref, xs_ref,
        bn_g_s, bn_g_b, bn_x_s, bn_x_b, bn_gc_s, bn_gc_b, gc_bias,
        bn_r1g_s, bn_r1g_b, bn_r1d_s, bn_r1d_b, bn_r2_s, bn_r2_b,
        z_bias,
        w_g_eo, w_x, w_gc, w_r1d, w_r1g, w_r1b, w_c2d, w_c2g,
        t_dn_h, t_up_h, t_dn_hh, t_up_hh, sel_e, sel_o, r_dup,
        u_wdup, gm_pool, dm_tile, se_w1, se_w2,
        o_ref):
    f32 = jnp.float32
    bf16 = jnp.bfloat16

    def mm(a, b):
        return jnp.dot(a, b, preferred_element_type=f32)

    def conv3x3(a, t_dn, t_up, w_ref):
        # a: (rows, W*Cin) f32 slab.  The W direction + channel mixing are in
        # the banded weight; the H direction becomes a stacked-K im2col built
        # from two 0/1 row-shift matmuls.  One bf16 MXU matmul per conv.
        a_dn = mm(t_dn[...], a)            # row h -> a[h-1]  (zero row at top)
        a_up = mm(t_up[...], a)            # row h -> a[h+1]  (zero row at bottom)
        im2col = jnp.concatenate([a_dn, a, a_up], axis=1).astype(bf16)
        return mm(im2col, w_ref[...])

    gs = gs_ref[0]                         # (H,  W  * c_g) raw g, lane = w*c_g + c
    xs = xs_ref[0]                         # (Hh, Wh * c_x) raw x, lane = w*c_x + c

    # ---------------- Attention_Block ----------------
    # g branch: BN+ReLU -> conv3x3 (even/odd output columns) -> fused 2x2 maxpool
    ag = jnp.maximum(gs * bn_g_s[...] + bn_g_b[...], 0.0)
    yg = conv3x3(ag, t_dn_h, t_up_h, w_g_eo)           # (H, 2*Wh*c_x): [even | odd]
    half = yg.shape[1] // 2
    m_w = jnp.maximum(yg[:, :half], yg[:, half:])      # max over W pairs
    g_pool = jnp.maximum(mm(sel_e[...], m_w), mm(sel_o[...], m_w))  # max over H pairs

    # x branch: BN+ReLU -> conv3x3
    ax = jnp.maximum(xs * bn_x_s[...] + bn_x_b[...], 0.0)
    x_conv = conv3x3(ax, t_dn_hh, t_up_hh, w_x)

    # gc branch (g/x conv biases are folded into bn_gc_b)
    gc_in = g_pool + x_conv
    agc = jnp.maximum(gc_in * bn_gc_s[...] + bn_gc_b[...], 0.0)
    gc_conv = conv3x3(agc, t_dn_hh, t_up_hh, w_gc) + gc_bias[...]
    att = gc_conv * xs                                  # (Hh, Wh*c_x)

    # ------- nearest 2x upsample, lane-flat, via 0/1 matmuls (no reshapes) -------
    d_raw = mm(r_dup[...], mm(att, u_wdup[...]))        # (H, W*c_x)

    # ---------------- ResNet_Block ----------------
    # c1: the channel concat with g is folded into the split weights w_r1d/w_r1g.
    a1d = jnp.maximum(d_raw * bn_r1d_s[...] + bn_r1d_b[...], 0.0)
    a1g = jnp.maximum(gs * bn_r1g_s[...] + bn_r1g_b[...], 0.0)
    c1a = (conv3x3(a1d, t_dn_h, t_up_h, w_r1d)
           + conv3x3(a1g, t_dn_h, t_up_h, w_r1g))
    a2 = jnp.maximum(c1a * bn_r2_s[...] + bn_r2_b[...], 0.0)   # r1a bias folded in
    c1b = conv3x3(a2, t_dn_h, t_up_h, w_r1b)

    # c2 shortcut: 1x1 conv with its BatchNorm folded into weights / z_bias.
    s = mm(d_raw.astype(bf16), w_c2d[...]) + mm(gs.astype(bf16), w_c2g[...])

    z = c1b + s + z_bias[...]                            # (H, W*out_c)

    # ---------------- Squeeze_Excitation ----------------
    ones_h = jnp.ones((1, z.shape[0]), f32)
    pooled = mm(mm(ones_h, z), gm_pool[...])             # (1, out_c), global mean
    hid = jnp.maximum(mm(pooled, se_w1[...]), 0.0)
    logit = mm(hid, se_w2[...])
    gate = 1.0 / (1.0 + jnp.exp(-logit))                 # sigmoid
    o_ref[0] = (z * mm(gate, dm_tile[...])).astype(o_ref.dtype)


def decoder_block_forward(kparams, g_nchw, x_nchw):
    """NCHW in / NCHW out, matching the PyTorch module."""
    kp = kparams
    B, c_g, H, W = g_nchw.shape
    _, c_x, Hh, Wh = x_nchw.shape
    out_c = kp['dm_tile'].shape[0]
    wo = kp['dm_tile'].shape[1]                          # W * out_c

    gs = jnp.transpose(g_nchw, (0, 2, 3, 1)).reshape(B, H, W * c_g).astype(jnp.float32)
    xs = jnp.transpose(x_nchw, (0, 2, 3, 1)).reshape(B, Hh, Wh * c_x).astype(jnp.float32)

    in_specs = [
        pl.BlockSpec((1, H, W * c_g), lambda b: (b, 0, 0)),
        pl.BlockSpec((1, Hh, Wh * c_x), lambda b: (b, 0, 0)),
    ]
    args = [gs, xs]
    for k in _PARAM_KEYS:
        a = kp[k]
        in_specs.append(pl.BlockSpec(a.shape, lambda b, n=a.ndim: (0,) * n))
        args.append(a)

    out = pl.pallas_call(
        _decoder_block_kernel,
        out_shape=jax.ShapeDtypeStruct((B, H, wo), jnp.float32),
        grid=(B,),
        in_specs=in_specs,
        out_specs=pl.BlockSpec((1, H, wo), lambda b: (b, 0, 0)),
        compiler_params=pltpu.CompilerParams(dimension_semantics=("parallel",)),
    )(*args)

    out_nhwc = out.reshape(B, H, W, out_c)
    return jnp.transpose(out_nhwc, (0, 3, 1, 2))


# ---------------------------------------------------------------------------
# Host-side parameter preparation (pure numpy, done once outside jit)
# ---------------------------------------------------------------------------
def prepare_kernel_params(params, H, W):
    p = {k: np.asarray(v, np.float32) for k, v in params.items()}
    c_g, c_x = p['g_w'].shape[2], p['g_w'].shape[3]
    out_c = p['r1a_w'].shape[3]
    Hh, Wh = H // 2, W // 2

    def tile_row(vec, reps):
        return np.tile(np.asarray(vec, np.float32).reshape(-1), reps)[None, :]

    def banded_stack(w4, wd):
        # w4: (3,3,Cin,Cout) HWIO -> (3*wd*Cin, wd*Cout); the 3 kh blocks are
        # stacked along K to match [A[h-1] | A[h] | A[h+1]] in the kernel.
        _, _, cin, cout = w4.shape
        blocks = []
        for kh in range(3):
            b = np.zeros((wd * cin, wd * cout), np.float32)
            for w in range(wd):
                for kw in range(3):
                    wp = w + kw - 1
                    if 0 <= wp < wd:
                        b[wp * cin:(wp + 1) * cin, w * cout:(w + 1) * cout] = w4[kh, kw]
            blocks.append(b)
        return np.concatenate(blocks, axis=0)

    def block_diag(w2, wd):
        cin, cout = w2.shape
        b = np.zeros((wd * cin, wd * cout), np.float32)
        for w in range(wd):
            b[w * cin:(w + 1) * cin, w * cout:(w + 1) * cout] = w2
        return b

    kp = {}
    # folded BatchNorm / bias vectors, tiled to lane-flat width
    kp['bn_g_s'] = tile_row(p['g_bn_s'], W)
    kp['bn_g_b'] = tile_row(p['g_bn_b'], W)
    kp['bn_x_s'] = tile_row(p['x_bn_s'], Wh)
    kp['bn_x_b'] = tile_row(p['x_bn_b'], Wh)
    gc_b_eff = (p['gc_bn_b'].reshape(-1)
                + p['gc_bn_s'].reshape(-1) * (p['g_b'].reshape(-1) + p['x_b'].reshape(-1)))
    kp['bn_gc_s'] = tile_row(p['gc_bn_s'], Wh)
    kp['bn_gc_b'] = tile_row(gc_b_eff, Wh)
    kp['gc_bias'] = tile_row(p['gc_b'], Wh)
    r1a_s, r1a_b = p['r1a_bn_s'].reshape(-1), p['r1a_bn_b'].reshape(-1)
    kp['bn_r1d_s'] = tile_row(r1a_s[:c_x], W)
    kp['bn_r1d_b'] = tile_row(r1a_b[:c_x], W)
    kp['bn_r1g_s'] = tile_row(r1a_s[c_x:], W)
    kp['bn_r1g_b'] = tile_row(r1a_b[c_x:], W)
    r2_b_eff = p['r1b_bn_b'].reshape(-1) + p['r1b_bn_s'].reshape(-1) * p['r1a_b'].reshape(-1)
    kp['bn_r2_s'] = tile_row(p['r1b_bn_s'], W)
    kp['bn_r2_b'] = tile_row(r2_b_eff, W)
    c2_s, c2_bb = p['c2_bn_s'].reshape(-1), p['c2_bn_b'].reshape(-1)
    kp['z_bias'] = tile_row(p['r1b_b'].reshape(-1) + p['c2_b'].reshape(-1) * c2_s + c2_bb, W)

    # banded conv weights (bf16 MXU operands)
    bg_full = banded_stack(p['g_w'], W)                           # (3*W*c_g, W*c_x)
    bg3 = bg_full.reshape(bg_full.shape[0], W, c_x)
    kp['w_g_eo'] = np.concatenate(
        [bg3[:, 0::2, :].reshape(bg_full.shape[0], Wh * c_x),
         bg3[:, 1::2, :].reshape(bg_full.shape[0], Wh * c_x)], axis=1)
    kp['w_x'] = banded_stack(p['x_w'], Wh)
    kp['w_gc'] = banded_stack(p['gc_w'], Wh)
    kp['w_r1d'] = banded_stack(p['r1a_w'][:, :, :c_x, :], W)
    kp['w_r1g'] = banded_stack(p['r1a_w'][:, :, c_x:, :], W)
    kp['w_r1b'] = banded_stack(p['r1b_w'], W)
    c2_scaled = p['c2_w'] * c2_s[None, :]                          # fold c2 BatchNorm
    kp['w_c2d'] = block_diag(c2_scaled[:c_x, :], W)
    kp['w_c2g'] = block_diag(c2_scaled[c_x:, :], W)

    # structural 0/1 matrices (row shift, pool selection, upsample, SE pool/tile)
    kp['t_dn_h'] = np.eye(H, k=-1, dtype=np.float32)
    kp['t_up_h'] = np.eye(H, k=1, dtype=np.float32)
    kp['t_dn_hh'] = np.eye(Hh, k=-1, dtype=np.float32)
    kp['t_up_hh'] = np.eye(Hh, k=1, dtype=np.float32)
    sel_e = np.zeros((Hh, H), np.float32); sel_e[np.arange(Hh), 2 * np.arange(Hh)] = 1.0
    sel_o = np.zeros((Hh, H), np.float32); sel_o[np.arange(Hh), 2 * np.arange(Hh) + 1] = 1.0
    kp['sel_e'], kp['sel_o'] = sel_e, sel_o
    r_dup = np.zeros((H, Hh), np.float32); r_dup[np.arange(H), np.arange(H) // 2] = 1.0
    kp['r_dup'] = r_dup
    u_w = np.zeros((Wh * c_x, W * c_x), np.float32)
    for w in range(W):
        for c in range(c_x):
            u_w[(w // 2) * c_x + c, w * c_x + c] = 1.0
    kp['u_wdup'] = u_w
    gm = np.zeros((W * out_c, out_c), np.float32)
    dm = np.zeros((out_c, W * out_c), np.float32)
    for w in range(W):
        for c in range(out_c):
            gm[w * out_c + c, c] = 1.0 / float(H * W)
            dm[c, w * out_c + c] = 1.0
    kp['gm_pool'], kp['dm_tile'] = gm, dm
    kp['se_w1'] = p['se_w1']
    kp['se_w2'] = p['se_w2']

    bf16_keys = {'w_g_eo', 'w_x', 'w_gc', 'w_r1d', 'w_r1g', 'w_r1b', 'w_c2d', 'w_c2g'}
    return {k: jnp.asarray(v, jnp.bfloat16 if k in bf16_keys else jnp.float32)
            for k, v in kp.items()}


# ---------------------------------------------------------------------------
# Deterministic parameter initialization (synthetic, no checkpoint)
# ---------------------------------------------------------------------------
def init_params(key, c_g, c_x, out_c, r=8):
    keys = iter(jax.random.split(key, 40))

    def nrm(shape, s):
        return (s * jax.random.normal(next(keys), shape)).astype(jnp.float32)

    def bn(c):  # eval-mode BN folded into per-channel scale / bias
        gamma = 1.0 + 0.1 * jax.random.normal(next(keys), (c,))
        beta = 0.1 * jax.random.normal(next(keys), (c,))
        mean = 0.1 * jax.random.normal(next(keys), (c,))
        var = jax.random.uniform(next(keys), (c,), minval=0.5, maxval=1.5)
        s = gamma / jnp.sqrt(var + 1e-5)
        b = beta - mean * s
        return (s.reshape(1, -1).astype(jnp.float32),
                b.reshape(1, -1).astype(jnp.float32))

    cin_r = c_g + c_x
    p = {}
    p['g_bn_s'], p['g_bn_b'] = bn(c_g)
    p['g_w'], p['g_b'] = nrm((3, 3, c_g, c_x), 0.2), nrm((1, c_x), 0.1)
    p['x_bn_s'], p['x_bn_b'] = bn(c_x)
    p['x_w'], p['x_b'] = nrm((3, 3, c_x, c_x), 0.2), nrm((1, c_x), 0.1)
    p['gc_bn_s'], p['gc_bn_b'] = bn(c_x)
    p['gc_w'], p['gc_b'] = nrm((3, 3, c_x, c_x), 0.2), nrm((1, c_x), 0.1)
    p['r1a_bn_s'], p['r1a_bn_b'] = bn(cin_r)
    p['r1a_w'], p['r1a_b'] = nrm((3, 3, cin_r, out_c), 0.15), nrm((1, out_c), 0.1)
    p['r1b_bn_s'], p['r1b_bn_b'] = bn(out_c)
    p['r1b_w'], p['r1b_b'] = nrm((3, 3, out_c, out_c), 0.15), nrm((1, out_c), 0.1)
    p['c2_w'], p['c2_b'] = nrm((cin_r, out_c), 0.2), nrm((1, out_c), 0.1)
    p['c2_bn_s'], p['c2_bn_b'] = bn(out_c)
    p['se_w1'] = nrm((out_c, out_c // r), 0.3)
    p['se_w2'] = nrm((out_c // r, out_c), 0.3)
    return p


# ---------------------------------------------------------------------------
# Pure-JAX reference (for correctness check)
# ---------------------------------------------------------------------------
def reference_forward(params, g_nchw, x_nchw):
    p = params
    g = jnp.transpose(g_nchw, (0, 2, 3, 1))
    x = jnp.transpose(x_nchw, (0, 2, 3, 1))

    def bn_relu(t, s, b):
        return jnp.maximum(t * s.reshape(1, 1, 1, -1) + b.reshape(1, 1, 1, -1), 0.0)

    def conv3(t, w, b):
        y = jax.lax.conv_general_dilated(t, w, (1, 1), 'SAME',
                                         dimension_numbers=('NHWC', 'HWIO', 'NHWC'))
        return y + b.reshape(1, 1, 1, -1)

    g_c = conv3(bn_relu(g, p['g_bn_s'], p['g_bn_b']), p['g_w'], p['g_b'])
    B, H, W, C = g_c.shape
    g_pool = g_c.reshape(B, H // 2, 2, W // 2, 2, C).max(axis=(2, 4))
    x_c = conv3(bn_relu(x, p['x_bn_s'], p['x_bn_b']), p['x_w'], p['x_b'])
    gc = conv3(bn_relu(g_pool + x_c, p['gc_bn_s'], p['gc_bn_b']), p['gc_w'], p['gc_b'])
    att = gc * x
    d_up = jnp.repeat(jnp.repeat(att, 2, axis=1), 2, axis=2)
    d_cat = jnp.concatenate([d_up, g], axis=-1)
    c1 = conv3(bn_relu(d_cat, p['r1a_bn_s'], p['r1a_bn_b']), p['r1a_w'], p['r1a_b'])
    c1 = conv3(bn_relu(c1, p['r1b_bn_s'], p['r1b_bn_b']), p['r1b_w'], p['r1b_b'])
    s = jnp.einsum('bhwc,cd->bhwd', d_cat, p['c2_w']) + p['c2_b'].reshape(1, 1, 1, -1)
    s = s * p['c2_bn_s'].reshape(1, 1, 1, -1) + p['c2_bn_b'].reshape(1, 1, 1, -1)
    z = c1 + s
    pooled = z.mean(axis=(1, 2))
    h = jnp.maximum(pooled @ p['se_w1'], 0.0)
    a = jax.nn.sigmoid(h @ p['se_w2'])
    out = z * a[:, None, None, :]
    return jnp.transpose(out, (0, 3, 1, 2))


# ---------------------------------------------------------------------------
if __name__ == "__main__":
    key = jax.random.PRNGKey(0)
    c_g, c_x, out_c = 8, 16, 16        # in_c = [8, 16], out_c = 16
    B, Hg, Wg = 2, 16, 16              # g: 16x16, x: 8x8 (half resolution)

    kp_key, kg, kx = jax.random.split(key, 3)
    params = init_params(kp_key, c_g, c_x, out_c)
    g = jax.random.normal(kg, (B, c_g, Hg, Wg), dtype=jnp.float32)       # NCHW
    x = jax.random.normal(kx, (B, c_x, Hg // 2, Wg // 2), dtype=jnp.float32)

    kparams = prepare_kernel_params(params, Hg, Wg)

    out = jax.jit(decoder_block_forward)(kparams, g, x)
    out = jax.block_until_ready(out)
    assert out.shape == (B, out_c, Hg, Wg), out.shape

    ref = reference_forward(params, g, x)
    # bf16 MXU operands through ~6 chained layers: check max-norm relative error.
    err = float(jnp.max(jnp.abs(out - ref)))
    scale = float(jnp.max(jnp.abs(ref)))
    assert err <= 0.06 * max(scale, 1.0) + 1e-3, (
        f"mismatch: max abs err {err} vs ref max {scale}")
    print("KERNEL_OK")
</pallas_src>

<mosaic_0001>
module attributes {stable_mosaic.version = 11 : i64} {
  func.func @_decoder_block_kernel(%arg0: i32, %arg1: memref<1x16x128xf32, #tpu.memory_space<vmem>>, %arg2: memref<1x8x128xf32, #tpu.memory_space<vmem>>, %arg3: memref<1x128xf32, #tpu.memory_space<vmem>>, %arg4: memref<1x128xf32, #tpu.memory_space<vmem>>, %arg5: memref<1x128xf32, #tpu.memory_space<vmem>>, %arg6: memref<1x128xf32, #tpu.memory_space<vmem>>, %arg7: memref<1x128xf32, #tpu.memory_space<vmem>>, %arg8: memref<1x128xf32, #tpu.memory_space<vmem>>, %arg9: memref<1x128xf32, #tpu.memory_space<vmem>>, %arg10: memref<1x128xf32, #tpu.memory_space<vmem>>, %arg11: memref<1x128xf32, #tpu.memory_space<vmem>>, %arg12: memref<1x256xf32, #tpu.memory_space<vmem>>, %arg13: memref<1x256xf32, #tpu.memory_space<vmem>>, %arg14: memref<1x256xf32, #tpu.memory_space<vmem>>, %arg15: memref<1x256xf32, #tpu.memory_space<vmem>>, %arg16: memref<1x256xf32, #tpu.memory_space<vmem>>, %arg17: memref<384x256xbf16, #tpu.memory_space<vmem>>, %arg18: memref<384x128xbf16, #tpu.memory_space<vmem>>, %arg19: memref<384x128xbf16, #tpu.memory_space<vmem>>, %arg20: memref<768x256xbf16, #tpu.memory_space<vmem>>, %arg21: memref<384x256xbf16, #tpu.memory_space<vmem>>, %arg22: memref<768x256xbf16, #tpu.memory_space<vmem>>, %arg23: memref<256x256xbf16, #tpu.memory_space<vmem>>, %arg24: memref<128x256xbf16, #tpu.memory_space<vmem>>, %arg25: memref<16x16xf32, #tpu.memory_space<vmem>>, %arg26: memref<16x16xf32, #tpu.memory_space<vmem>>, %arg27: memref<8x8xf32, #tpu.memory_space<vmem>>, %arg28: memref<8x8xf32, #tpu.memory_space<vmem>>, %arg29: memref<8x16xf32, #tpu.memory_space<vmem>>, %arg30: memref<8x16xf32, #tpu.memory_space<vmem>>, %arg31: memref<16x8xf32, #tpu.memory_space<vmem>>, %arg32: memref<128x256xf32, #tpu.memory_space<vmem>>, %arg33: memref<256x16xf32, #tpu.memory_space<vmem>>, %arg34: memref<16x256xf32, #tpu.memory_space<vmem>>, %arg35: memref<16x2xf32, #tpu.memory_space<vmem>>, %arg36: memref<2x16xf32, #tpu.memory_space<vmem>>, %arg37: memref<1x16x256xf32, #tpu.memory_space<vmem>>) attributes {dimension_semantics = [#tpu.dimension_semantics<parallel>], iteration_bounds = array<i64: 2>, scalar_prefetch = 0 : i64, scratch_operands = 0 : i64, tpu.core_type = #tpu.core_type<tc>, window_params = [{transform_indices = @transform_0, window_bounds = array<i64: 1, 16, 128>}, {transform_indices = @transform_1, window_bounds = array<i64: 1, 8, 128>}, {pipeline_mode = #tpu.pipeline_mode<synchronous>, transform_indices = @transform_2, window_bounds = array<i64: 1, 128>}, {pipeline_mode = #tpu.pipeline_mode<synchronous>, transform_indices = @transform_3, window_bounds = array<i64: 1, 128>}, {pipeline_mode = #tpu.pipeline_mode<synchronous>, transform_indices = @transform_4, window_bounds = array<i64: 1, 128>}, {pipeline_mode = #tpu.pipeline_mode<synchronous>, transform_indices = @transform_5, window_bounds = array<i64: 1, 128>}, {pipeline_mode = #tpu.pipeline_mode<synchronous>, transform_indices = @transform_6, window_bounds = array<i64: 1, 128>}, {pipeline_mode = #tpu.pipeline_mode<synchronous>, transform_indices = @transform_7, window_bounds = array<i64: 1, 128>}, {pipeline_mode = #tpu.pipeline_mode<synchronous>, transform_indices = @transform_8, window_bounds = array<i64: 1, 128>}, {pipeline_mode = #tpu.pipeline_mode<synchronous>, transform_indices = @transform_9, window_bounds = array<i64: 1, 128>}, {pipeline_mode = #tpu.pipeline_mode<synchronous>, transform_indices = @transform_10, window_bounds = array<i64: 1, 128>}, {pipeline_mode = #tpu.pipeline_mode<synchronous>, transform_indices = @transform_11, window_bounds = array<i64: 1, 256>}, {pipeline_mode = #tpu.pipeline_mode<synchronous>, transform_indices = @transform_12, window_bounds = array<i64: 1, 256>}, {pipeline_mode = #tpu.pipeline_mode<synchronous>, transform_indices = @transform_13, window_bounds = array<i64: 1, 256>}, {pipeline_mode = #tpu.pipeline_mode<synchronous>, transform_indices = @transform_14, window_bounds = array<i64: 1, 256>}, {pipeline_mode = #tpu.pipeline_mode<synchronous>, transform_indices = @transform_15, window_bounds = array<i64: 1, 256>}, {pipeline_mode = #tpu.pipeline_mode<synchronous>, transform_indices = @transform_16, window_bounds = array<i64: 384, 256>}, {pipeline_mode = #tpu.pipeline_mode<synchronous>, transform_indices = @transform_17, window_bounds = array<i64: 384, 128>}, {pipeline_mode = #tpu.pipeline_mode<synchronous>, transform_indices = @transform_18, window_bounds = array<i64: 384, 128>}, {pipeline_mode = #tpu.pipeline_mode<synchronous>, transform_indices = @transform_19, window_bounds = array<i64: 768, 256>}, {pipeline_mode = #tpu.pipeline_mode<synchronous>, transform_indices = @transform_20, window_bounds = array<i64: 384, 256>}, {pipeline_mode = #tpu.pipeline_mode<synchronous>, transform_indices = @transform_21, window_bounds = array<i64: 768, 256>}, {pipeline_mode = #tpu.pipeline_mode<synchronous>, transform_indices = @transform_22, window_bounds = array<i64: 256, 256>}, {pipeline_mode = #tpu.pipeline_mode<synchronous>, transform_indices = @transform_23, window_bounds = array<i64: 128, 256>}, {pipeline_mode = #tpu.pipeline_mode<synchronous>, transform_indices = @transform_24, window_bounds = array<i64: 16, 16>}, {pipeline_mode = #tpu.pipeline_mode<synchronous>, transform_indices = @transform_25, window_bounds = array<i64: 16, 16>}, {pipeline_mode = #tpu.pipeline_mode<synchronous>, transform_indices = @transform_26, window_bounds = array<i64: 8, 8>}, {pipeline_mode = #tpu.pipeline_mode<synchronous>, transform_indices = @transform_27, window_bounds = array<i64: 8, 8>}, {pipeline_mode = #tpu.pipeline_mode<synchronous>, transform_indices = @transform_28, window_bounds = array<i64: 8, 16>}, {pipeline_mode = #tpu.pipeline_mode<synchronous>, transform_indices = @transform_29, window_bounds = array<i64: 8, 16>}, {pipeline_mode = #tpu.pipeline_mode<synchronous>, transform_indices = @transform_30, window_bounds = array<i64: 16, 8>}, {pipeline_mode = #tpu.pipeline_mode<synchronous>, transform_indices = @transform_31, window_bounds = array<i64: 128, 256>}, {pipeline_mode = #tpu.pipeline_mode<synchronous>, transform_indices = @transform_32, window_bounds = array<i64: 256, 16>}, {pipeline_mode = #tpu.pipeline_mode<synchronous>, transform_indices = @transform_33, window_bounds = array<i64: 16, 256>}, {pipeline_mode = #tpu.pipeline_mode<synchronous>, transform_indices = @transform_34, window_bounds = array<i64: 16, 2>}, {pipeline_mode = #tpu.pipeline_mode<synchronous>, transform_indices = @transform_35, window_bounds = array<i64: 2, 16>}, {transform_indices = @transform_36, window_bounds = array<i64: 1, 16, 256>}]} {
    %c0 = arith.constant 0 : index
    %c0_0 = arith.constant 0 : index
    %c0_1 = arith.constant 0 : index
    %0 = vector.load %arg1[%c0, %c0_0, %c0_1] : memref<1x16x128xf32, #tpu.memory_space<vmem>>, vector<1x16x128xf32>
    %1 = vector.shape_cast %0 : vector<1x16x128xf32> to vector<16x128xf32>
    %c0_2 = arith.constant 0 : index
    %c0_3 = arith.constant 0 : index
    %c0_4 = arith.constant 0 : index
    %2 = vector.load %arg2[%c0_2, %c0_3, %c0_4] : memref<1x8x128xf32, #tpu.memory_space<vmem>>, vector<1x8x128xf32>
    %3 = vector.shape_cast %2 : vector<1x8x128xf32> to vector<8x128xf32>
    %c0_5 = arith.constant 0 : index
    %c0_6 = arith.constant 0 : index
    %4 = vector.load %arg3[%c0_5, %c0_6] : memref<1x128xf32, #tpu.memory_space<vmem>>, vector<1x128xf32>
    %5 = vector.broadcast %4 : vector<1x128xf32> to vector<16x128xf32>
    %6 = arith.mulf %1, %5 : vector<16x128xf32>
    %c0_7 = arith.constant 0 : index
    %c0_8 = arith.constant 0 : index
    %7 = vector.load %arg4[%c0_7, %c0_8] : memref<1x128xf32, #tpu.memory_space<vmem>>, vector<1x128xf32>
    %8 = vector.broadcast %7 : vector<1x128xf32> to vector<16x128xf32>
    %9 = arith.addf %6, %8 : vector<16x128xf32>
    %cst = arith.constant 0.000000e+00 : f32
    %10 = vector.broadcast %cst : f32 to vector<16x128xf32>
    %11 = arith.maximumf %9, %10 : vector<16x128xf32>
    %c0_9 = arith.constant 0 : index
    %c0_10 = arith.constant 0 : index
    %12 = vector.load %arg25[%c0_9, %c0_10] : memref<16x16xf32, #tpu.memory_space<vmem>>, vector<16x16xf32>
    %cst_11 = arith.constant dense<0.000000e+00> : vector<16x128xf32>
    %13 = tpu.matmul %12, %11, %cst_11 {dimension_numbers = #tpu.dot_dimension_numbers<[1], [0], [0], [1], [0, 0, 1, 1], [], []>} : vector<16x16xf32>, vector<16x128xf32>, vector<16x128xf32> -> vector<16x128xf32>
    %c0_12 = arith.constant 0 : index
    %c0_13 = arith.constant 0 : index
    %14 = vector.load %arg26[%c0_12, %c0_13] : memref<16x16xf32, #tpu.memory_space<vmem>>, vector<16x16xf32>
    %cst_14 = arith.constant dense<0.000000e+00> : vector<16x128xf32>
    %15 = tpu.matmul %14, %11, %cst_14 {dimension_numbers = #tpu.dot_dimension_numbers<[1], [0], [0], [1], [0, 0, 1, 1], [], []>} : vector<16x16xf32>, vector<16x128xf32>, vector<16x128xf32> -> vector<16x128xf32>
    %16 = tpu.concatenate %13, %11, %15 in 1 : vector<16x128xf32>, vector<16x128xf32>, vector<16x128xf32> -> vector<16x384xf32>
    %17 = arith.truncf %16 : vector<16x384xf32> to vector<16x384xbf16>
    %c0_15 = arith.constant 0 : index
    %c0_16 = arith.constant 0 : index
    %18 = vector.load %arg17[%c0_15, %c0_16] : memref<384x256xbf16, #tpu.memory_space<vmem>>, vector<384x256xbf16>
    %cst_17 = arith.constant dense<0.000000e+00> : vector<16x256xf32>
    %19 = tpu.matmul %17, %18, %cst_17 {dimension_numbers = #tpu.dot_dimension_numbers<[1], [0], [0], [1], [0, 0, 1, 1], [], []>} : vector<16x384xbf16>, vector<384x256xbf16>, vector<16x256xf32> -> vector<16x256xf32>
    %20 = vector.extract_strided_slice %19 {offsets = [0, 0], sizes = [16, 128], strides = [1, 1]} : vector<16x256xf32> to vector<16x128xf32>
    %21 = vector.extract_strided_slice %19 {offsets = [0, 128], sizes = [16, 128], strides = [1, 1]} : vector<16x256xf32> to vector<16x128xf32>
    %22 = arith.maximumf %20, %21 : vector<16x128xf32>
    %c0_18 = arith.constant 0 : index
    %c0_19 = arith.constant 0 : index
    %23 = vector.load %arg29[%c0_18, %c0_19] : memref<8x16xf32, #tpu.memory_space<vmem>>, vector<8x16xf32>
    %cst_20 = arith.constant dense<0.000000e+00> : vector<8x128xf32>
    %24 = tpu.matmul %23, %22, %cst_20 {dimension_numbers = #tpu.dot_dimension_numbers<[1], [0], [0], [1], [0, 0, 1, 1], [], []>} : vector<8x16xf32>, vector<16x128xf32>, vector<8x128xf32> -> vector<8x128xf32>
    %c0_21 = arith.constant 0 : index
    %c0_22 = arith.constant 0 : index
    %25 = vector.load %arg30[%c0_21, %c0_22] : memref<8x16xf32, #tpu.memory_space<vmem>>, vector<8x16xf32>
    %cst_23 = arith.constant dense<0.000000e+00> : vector<8x128xf32>
    %26 = tpu.matmul %25, %22, %cst_23 {dimension_numbers = #tpu.dot_dimension_numbers<[1], [0], [0], [1], [0, 0, 1, 1], [], []>} : vector<8x16xf32>, vector<16x128xf32>, vector<8x128xf32> -> vector<8x128xf32>
    %27 = arith.maximumf %24, %26 : vector<8x128xf32>
    %c0_24 = arith.constant 0 : index
    %c0_25 = arith.constant 0 : index
    %28 = vector.load %arg5[%c0_24, %c0_25] : memref<1x128xf32, #tpu.memory_space<vmem>>, vector<1x128xf32>
    %29 = vector.broadcast %28 : vector<1x128xf32> to vector<8x128xf32>
    %30 = arith.mulf %3, %29 : vector<8x128xf32>
    %c0_26 = arith.constant 0 : index
    %c0_27 = arith.constant 0 : index
    %31 = vector.load %arg6[%c0_26, %c0_27] : memref<1x128xf32, #tpu.memory_space<vmem>>, vector<1x128xf32>
    %32 = vector.broadcast %31 : vector<1x128xf32> to vector<8x128xf32>
    %33 = arith.addf %30, %32 : vector<8x128xf32>
    %cst_28 = arith.constant 0.000000e+00 : f32
    %34 = vector.broadcast %cst_28 : f32 to vector<8x128xf32>
    %35 = arith.maximumf %33, %34 : vector<8x128xf32>
    %c0_29 = arith.constant 0 : index
    %c0_30 = arith.constant 0 : index
    %36 = vector.load %arg27[%c0_29, %c0_30] : memref<8x8xf32, #tpu.memory_space<vmem>>, vector<8x8xf32>
    %cst_31 = arith.constant dense<0.000000e+00> : vector<8x128xf32>
    %37 = tpu.matmul %36, %35, %cst_31 {dimension_numbers = #tpu.dot_dimension_numbers<[1], [0], [0], [1], [0, 0, 1, 1], [], []>} : vector<8x8xf32>, vector<8x128xf32>, vector<8x128xf32> -> vector<8x128xf32>
    %c0_32 = arith.constant 0 : index
    %c0_33 = arith.constant 0 : index
    %38 = vector.load %arg28[%c0_32, %c0_33] : memref<8x8xf32, #tpu.memory_space<vmem>>, vector<8x8xf32>
    %cst_34 = arith.constant dense<0.000000e+00> : vector<8x128xf32>
    %39 = tpu.matmul %38, %35, %cst_34 {dimension_numbers = #tpu.dot_dimension_numbers<[1], [0], [0], [1], [0, 0, 1, 1], [], []>} : vector<8x8xf32>, vector<8x128xf32>, vector<8x128xf32> -> vector<8x128xf32>
    %40 = tpu.concatenate %37, %35, %39 in 1 : vector<8x128xf32>, vector<8x128xf32>, vector<8x128xf32> -> vector<8x384xf32>
    %41 = arith.truncf %40 : vector<8x384xf32> to vector<8x384xbf16>
    %c0_35 = arith.constant 0 : index
    %c0_36 = arith.constant 0 : index
    %42 = vector.load %arg18[%c0_35, %c0_36] : memref<384x128xbf16, #tpu.memory_space<vmem>>, vector<384x128xbf16>
    %cst_37 = arith.constant dense<0.000000e+00> : vector<8x128xf32>
    %43 = tpu.matmul %41, %42, %cst_37 {dimension_numbers = #tpu.dot_dimension_numbers<[1], [0], [0], [1], [0, 0, 1, 1], [], []>} : vector<8x384xbf16>, vector<384x128xbf16>, vector<8x128xf32> -> vector<8x128xf32>
    %44 = arith.addf %27, %43 : vector<8x128xf32>
    %c0_38 = arith.constant 0 : index
    %c0_39 = arith.constant 0 : index
    %45 = vector.load %arg7[%c0_38, %c0_39] : memref<1x128xf32, #tpu.memory_space<vmem>>, vector<1x128xf32>
    %46 = vector.broadcast %45 : vector<1x128xf32> to vector<8x128xf32>
    %47 = arith.mulf %44, %46 : vector<8x128xf32>
    %c0_40 = arith.constant 0 : index
    %c0_41 = arith.constant 0 : index
    %48 = vector.load %arg8[%c0_40, %c0_41] : memref<1x128xf32, #tpu.memory_space<vmem>>, vector<1x128xf32>
    %49 = vector.broadcast %48 : vector<1x128xf32> to vector<8x128xf32>
    %50 = arith.addf %47, %49 : vector<8x128xf32>
    %cst_42 = arith.constant 0.000000e+00 : f32
    %51 = vector.broadcast %cst_42 : f32 to vector<8x128xf32>
    %52 = arith.maximumf %50, %51 : vector<8x128xf32>
    %c0_43 = arith.constant 0 : index
    %c0_44 = arith.constant 0 : index
    %53 = vector.load %arg27[%c0_43, %c0_44] : memref<8x8xf32, #tpu.memory_space<vmem>>, vector<8x8xf32>
    %cst_45 = arith.constant dense<0.000000e+00> : vector<8x128xf32>
    %54 = tpu.matmul %53, %52, %cst_45 {dimension_numbers = #tpu.dot_dimension_numbers<[1], [0], [0], [1], [0, 0, 1, 1], [], []>} : vector<8x8xf32>, vector<8x128xf32>, vector<8x128xf32> -> vector<8x128xf32>
    %c0_46 = arith.constant 0 : index
    %c0_47 = arith.constant 0 : index
    %55 = vector.load %arg28[%c0_46, %c0_47] : memref<8x8xf32, #tpu.memory_space<vmem>>, vector<8x8xf32>
    %cst_48 = arith.constant dense<0.000000e+00> : vector<8x128xf32>
    %56 = tpu.matmul %55, %52, %cst_48 {dimension_numbers = #tpu.dot_dimension_numbers<[1], [0], [0], [1], [0, 0, 1, 1], [], []>} : vector<8x8xf32>, vector<8x128xf32>, vector<8x128xf32> -> vector<8x128xf32>
    %57 = tpu.concatenate %54, %52, %56 in 1 : vector<8x128xf32>, vector<8x128xf32>, vector<8x128xf32> -> vector<8x384xf32>
    %58 = arith.truncf %57 : vector<8x384xf32> to vector<8x384xbf16>
    %c0_49 = arith.constant 0 : index
    %c0_50 = arith.constant 0 : index
    %59 = vector.load %arg19[%c0_49, %c0_50] : memref<384x128xbf16, #tpu.memory_space<vmem>>, vector<384x128xbf16>
    %cst_51 = arith.constant dense<0.000000e+00> : vector<8x128xf32>
    %60 = tpu.matmul %58, %59, %cst_51 {dimension_numbers = #tpu.dot_dimension_numbers<[1], [0], [0], [1], [0, 0, 1, 1], [], []>} : vector<8x384xbf16>, vector<384x128xbf16>, vector<8x128xf32> -> vector<8x128xf32>
    %c0_52 = arith.constant 0 : index
    %c0_53 = arith.constant 0 : index
    %61 = vector.load %arg9[%c0_52, %c0_53] : memref<1x128xf32, #tpu.memory_space<vmem>>, vector<1x128xf32>
    %62 = vector.broadcast %61 : vector<1x128xf32> to vector<8x128xf32>
    %63 = arith.addf %60, %62 : vector<8x128xf32>
    %64 = arith.mulf %63, %3 : vector<8x128xf32>
    %c0_54 = arith.constant 0 : index
    %c0_55 = arith.constant 0 : index
    %65 = vector.load %arg31[%c0_54, %c0_55] : memref<16x8xf32, #tpu.memory_space<vmem>>, vector<16x8xf32>
    %c0_56 = arith.constant 0 : index
    %c0_57 = arith.constant 0 : index
    %66 = vector.load %arg32[%c0_56, %c0_57] : memref<128x256xf32, #tpu.memory_space<vmem>>, vector<128x256xf32>
    %cst_58 = arith.constant dense<0.000000e+00> : vector<8x256xf32>
    %67 = tpu.matmul %64, %66, %cst_58 {dimension_numbers = #tpu.dot_dimension_numbers<[1], [0], [0], [1], [0, 0, 1, 1], [], []>} : vector<8x128xf32>, vector<128x256xf32>, vector<8x256xf32> -> vector<8x256xf32>
    %cst_59 = arith.constant dense<0.000000e+00> : vector<16x256xf32>
    %68 = tpu.matmul %65, %67, %cst_59 {dimension_numbers = #tpu.dot_dimension_numbers<[1], [0], [0], [1], [0, 0, 1, 1], [], []>} : vector<16x8xf32>, vector<8x256xf32>, vector<16x256xf32> -> vector<16x256xf32>
    %c0_60 = arith.constant 0 : index
    %c0_61 = arith.constant 0 : index
    %69 = vector.load %arg12[%c0_60, %c0_61] : memref<1x256xf32, #tpu.memory_space<vmem>>, vector<1x256xf32>
    %70 = vector.broadcast %69 : vector<1x256xf32> to vector<16x256xf32>
    %71 = arith.mulf %68, %70 : vector<16x256xf32>
    %c0_62 = arith.constant 0 : index
    %c0_63 = arith.constant 0 : index
    %72 = vector.load %arg13[%c0_62, %c0_63] : memref<1x256xf32, #tpu.memory_space<vmem>>, vector<1x256xf32>
    %73 = vector.broadcast %72 : vector<1x256xf32> to vector<16x256xf32>
    %74 = arith.addf %71, %73 : vector<16x256xf32>
    %cst_64 = arith.constant 0.000000e+00 : f32
    %75 = vector.broadcast %cst_64 : f32 to vector<16x256xf32>
    %76 = arith.maximumf %74, %75 : vector<16x256xf32>
    %c0_65 = arith.constant 0 : index
    %c0_66 = arith.constant 0 : index
    %77 = vector.load %arg10[%c0_65, %c0_66] : memref<1x128xf32, #tpu.memory_space<vmem>>, vector<1x128xf32>
    %78 = vector.broadcast %77 : vector<1x128xf32> to vector<16x128xf32>
    %79 = arith.mulf %1, %78 : vector<16x128xf32>
    %c0_67 = arith.constant 0 : index
    %c0_68 = arith.constant 0 : index
    %80 = vector.load %arg11[%c0_67, %c0_68] : memref<1x128xf32, #tpu.memory_space<vmem>>, vector<1x128xf32>
    %81 = vector.broadcast %80 : vector<1x128xf32> to vector<16x128xf32>
    %82 = arith.addf %79, %81 : vector<16x128xf32>
    %cst_69 = arith.constant 0.000000e+00 : f32
    %83 = vector.broadcast %cst_69 : f32 to vector<16x128xf32>
    %84 = arith.maximumf %82, %83 : vector<16x128xf32>
    %c0_70 = arith.constant 0 : index
    %c0_71 = arith.constant 0 : index
    %85 = vector.load %arg25[%c0_70, %c0_71] : memref<16x16xf32, #tpu.memory_space<vmem>>, vector<16x16xf32>
    %cst_72 = arith.constant dense<0.000000e+00> : vector<16x256xf32>
    %86 = tpu.matmul %85, %76, %cst_72 {dimension_numbers = #tpu.dot_dimension_numbers<[1], [0], [0], [1], [0, 0, 1, 1], [], []>} : vector<16x16xf32>, vector<16x256xf32>, vector<16x256xf32> -> vector<16x256xf32>
    %c0_73 = arith.constant 0 : index
    %c0_74 = arith.constant 0 : index
    %87 = vector.load %arg26[%c0_73, %c0_74] : memref<16x16xf32, #tpu.memory_space<vmem>>, vector<16x16xf32>
    %cst_75 = arith.constant dense<0.000000e+00> : vector<16x256xf32>
    %88 = tpu.matmul %87, %76, %cst_75 {dimension_numbers = #tpu.dot_dimension_numbers<[1], [0], [0], [1], [0, 0, 1, 1], [], []>} : vector<16x16xf32>, vector<16x256xf32>, vector<16x256xf32> -> vector<16x256xf32>
    %89 = tpu.concatenate %86, %76, %88 in 1 : vector<16x256xf32>, vector<16x256xf32>, vector<16x256xf32> -> vector<16x768xf32>
    %90 = arith.truncf %89 : vector<16x768xf32> to vector<16x768xbf16>
    %c0_76 = arith.constant 0 : index
    %c0_77 = arith.constant 0 : index
    %91 = vector.load %arg20[%c0_76, %c0_77] : memref<768x256xbf16, #tpu.memory_space<vmem>>, vector<768x256xbf16>
    %cst_78 = arith.constant dense<0.000000e+00> : vector<16x256xf32>
    %92 = tpu.matmul %90, %91, %cst_78 {dimension_numbers = #tpu.dot_dimension_numbers<[1], [0], [0], [1], [0, 0, 1, 1], [], []>} : vector<16x768xbf16>, vector<768x256xbf16>, vector<16x256xf32> -> vector<16x256xf32>
    %c0_79 = arith.constant 0 : index
    %c0_80 = arith.constant 0 : index
    %93 = vector.load %arg25[%c0_79, %c0_80] : memref<16x16xf32, #tpu.memory_space<vmem>>, vector<16x16xf32>
    %cst_81 = arith.constant dense<0.000000e+00> : vector<16x128xf32>
    %94 = tpu.matmul %93, %84, %cst_81 {dimension_numbers = #tpu.dot_dimension_numbers<[1], [0], [0], [1], [0, 0, 1, 1], [], []>} : vector<16x16xf32>, vector<16x128xf32>, vector<16x128xf32> -> vector<16x128xf32>
    %c0_82 = arith.constant 0 : index
    %c0_83 = arith.constant 0 : index
    %95 = vector.load %arg26[%c0_82, %c0_83] : memref<16x16xf32, #tpu.memory_space<vmem>>, vector<16x16xf32>
    %cst_84 = arith.constant dense<0.000000e+00> : vector<16x128xf32>
    %96 = tpu.matmul %95, %84, %cst_84 {dimension_numbers = #tpu.dot_dimension_numbers<[1], [0], [0], [1], [0, 0, 1, 1], [], []>} : vector<16x16xf32>, vector<16x128xf32>, vector<16x128xf32> -> vector<16x128xf32>
    %97 = tpu.concatenate %94, %84, %96 in 1 : vector<16x128xf32>, vector<16x128xf32>, vector<16x128xf32> -> vector<16x384xf32>
    %98 = arith.truncf %97 : vector<16x384xf32> to vector<16x384xbf16>
    %c0_85 = arith.constant 0 : index
    %c0_86 = arith.constant 0 : index
    %99 = vector.load %arg21[%c0_85, %c0_86] : memref<384x256xbf16, #tpu.memory_space<vmem>>, vector<384x256xbf16>
    %cst_87 = arith.constant dense<0.000000e+00> : vector<16x256xf32>
    %100 = tpu.matmul %98, %99, %cst_87 {dimension_numbers = #tpu.dot_dimension_numbers<[1], [0], [0], [1], [0, 0, 1, 1], [], []>} : vector<16x384xbf16>, vector<384x256xbf16>, vector<16x256xf32> -> vector<16x256xf32>
    %101 = arith.addf %92, %100 : vector<16x256xf32>
    %c0_88 = arith.constant 0 : index
    %c0_89 = arith.constant 0 : index
    %102 = vector.load %arg14[%c0_88, %c0_89] : memref<1x256xf32, #tpu.memory_space<vmem>>, vector<1x256xf32>
    %103 = vector.broadcast %102 : vector<1x256xf32> to vector<16x256xf32>
    %104 = arith.mulf %101, %103 : vector<16x256xf32>
    %c0_90 = arith.constant 0 : index
    %c0_91 = arith.constant 0 : index
    %105 = vector.load %arg15[%c0_90, %c0_91] : memref<1x256xf32, #tpu.memory_space<vmem>>, vector<1x256xf32>
    %106 = vector.broadcast %105 : vector<1x256xf32> to vector<16x256xf32>
    %107 = arith.addf %104, %106 : vector<16x256xf32>
    %cst_92 = arith.constant 0.000000e+00 : f32
    %108 = vector.broadcast %cst_92 : f32 to vector<16x256xf32>
    %109 = arith.maximumf %107, %108 : vector<16x256xf32>
    %c0_93 = arith.constant 0 : index
    %c0_94 = arith.constant 0 : index
    %110 = vector.load %arg25[%c0_93, %c0_94] : memref<16x16xf32, #tpu.memory_space<vmem>>, vector<16x16xf32>
    %cst_95 = arith.constant dense<0.000000e+00> : vector<16x256xf32>
    %111 = tpu.matmul %110, %109, %cst_95 {dimension_numbers = #tpu.dot_dimension_numbers<[1], [0], [0], [1], [0, 0, 1, 1], [], []>} : vector<16x16xf32>, vector<16x256xf32>, vector<16x256xf32> -> vector<16x256xf32>
    %c0_96 = arith.constant 0 : index
    %c0_97 = arith.constant 0 : index
    %112 = vector.load %arg26[%c0_96, %c0_97] : memref<16x16xf32, #tpu.memory_space<vmem>>, vector<16x16xf32>
    %cst_98 = arith.constant dense<0.000000e+00> : vector<16x256xf32>
    %113 = tpu.matmul %112, %109, %cst_98 {dimension_numbers = #tpu.dot_dimension_numbers<[1], [0], [0], [1], [0, 0, 1, 1], [], []>} : vector<16x16xf32>, vector<16x256xf32>, vector<16x256xf32> -> vector<16x256xf32>
    %114 = tpu.concatenate %111, %109, %113 in 1 : vector<16x256xf32>, vector<16x256xf32>, vector<16x256xf32> -> vector<16x768xf32>
    %115 = arith.truncf %114 : vector<16x768xf32> to vector<16x768xbf16>
    %c0_99 = arith.constant 0 : index
    %c0_100 = arith.constant 0 : index
    %116 = vector.load %arg22[%c0_99, %c0_100] : memref<768x256xbf16, #tpu.memory_space<vmem>>, vector<768x256xbf16>
    %cst_101 = arith.constant dense<0.000000e+00> : vector<16x256xf32>
    %117 = tpu.matmul %115, %116, %cst_101 {dimension_numbers = #tpu.dot_dimension_numbers<[1], [0], [0], [1], [0, 0, 1, 1], [], []>} : vector<16x768xbf16>, vector<768x256xbf16>, vector<16x256xf32> -> vector<16x256xf32>
    %118 = arith.truncf %68 : vector<16x256xf32> to vector<16x256xbf16>
    %c0_102 = arith.constant 0 : index
    %c0_103 = arith.constant 0 : index
    %119 = vector.load %arg23[%c0_102, %c0_103] : memref<256x256xbf16, #tpu.memory_space<vmem>>, vector<256x256xbf16>
    %cst_104 = arith.constant dense<0.000000e+00> : vector<16x256xf32>
    %120 = tpu.matmul %118, %119, %cst_104 {dimension_numbers = #tpu.dot_dimension_numbers<[1], [0], [0], [1], [0, 0, 1, 1], [], []>} : vector<16x256xbf16>, vector<256x256xbf16>, vector<16x256xf32> -> vector<16x256xf32>
    %121 = arith.truncf %1 : vector<16x128xf32> to vector<16x128xbf16>
    %c0_105 = arith.constant 0 : index
    %c0_106 = arith.constant 0 : index
    %122 = vector.load %arg24[%c0_105, %c0_106] : memref<128x256xbf16, #tpu.memory_space<vmem>>, vector<128x256xbf16>
    %cst_107 = arith.constant dense<0.000000e+00> : vector<16x256xf32>
    %123 = tpu.matmul %121, %122, %cst_107 {dimension_numbers = #tpu.dot_dimension_numbers<[1], [0], [0], [1], [0, 0, 1, 1], [], []>} : vector<16x128xbf16>, vector<128x256xbf16>, vector<16x256xf32> -> vector<16x256xf32>
    %124 = arith.addf %120, %123 : vector<16x256xf32>
    %125 = arith.addf %117, %124 : vector<16x256xf32>
    %c0_108 = arith.constant 0 : index
    %c0_109 = arith.constant 0 : index
    %126 = vector.load %arg16[%c0_108, %c0_109] : memref<1x256xf32, #tpu.memory_space<vmem>>, vector<1x256xf32>
    %127 = vector.broadcast %126 : vector<1x256xf32> to vector<16x256xf32>
    %128 = arith.addf %125, %127 : vector<16x256xf32>
    %cst_110 = arith.constant 1.000000e+00 : f32
    %129 = vector.broadcast %cst_110 : f32 to vector<1x16xf32>
    %cst_111 = arith.constant dense<0.000000e+00> : vector<1x256xf32>
    %130 = tpu.matmul %129, %128, %cst_111 {dimension_numbers = #tpu.dot_dimension_numbers<[1], [0], [0], [1], [0, 0, 1, 1], [], []>} : vector<1x16xf32>, vector<16x256xf32>, vector<1x256xf32> -> vector<1x256xf32>
    %c0_112 = arith.constant 0 : index
    %c0_113 = arith.constant 0 : index
    %131 = vector.load %arg33[%c0_112, %c0_113] : memref<256x16xf32, #tpu.memory_space<vmem>>, vector<256x16xf32>
    %cst_114 = arith.constant dense<0.000000e+00> : vector<1x16xf32>
    %132 = tpu.matmul %130, %131, %cst_114 {dimension_numbers = #tpu.dot_dimension_numbers<[1], [0], [0], [1], [0, 0, 1, 1], [], []>} : vector<1x256xf32>, vector<256x16xf32>, vector<1x16xf32> -> vector<1x16xf32>
    %c0_115 = arith.constant 0 : index
    %c0_116 = arith.constant 0 : index
    %133 = vector.load %arg35[%c0_115, %c0_116] : memref<16x2xf32, #tpu.memory_space<vmem>>, vector<16x2xf32>
    %cst_117 = arith.constant dense<0.000000e+00> : vector<1x2xf32>
    %134 = tpu.matmul %132, %133, %cst_117 {dimension_numbers = #tpu.dot_dimension_numbers<[1], [0], [0], [1], [0, 0, 1, 1], [], []>} : vector<1x16xf32>, vector<16x2xf32>, vector<1x2xf32> -> vector<1x2xf32>
    %cst_118 = arith.constant 0.000000e+00 : f32
    %135 = vector.broadcast %cst_118 : f32 to vector<1x2xf32>
    %136 = arith.maximumf %134, %135 : vector<1x2xf32>
    %c0_119 = arith.constant 0 : index
    %c0_120 = arith.constant 0 : index
    %137 = vector.load %arg36[%c0_119, %c0_120] : memref<2x16xf32, #tpu.memory_space<vmem>>, vector<2x16xf32>
    %cst_121 = arith.constant dense<0.000000e+00> : vector<1x16xf32>
    %138 = tpu.matmul %136, %137, %cst_121 {dimension_numbers = #tpu.dot_dimension_numbers<[1], [0], [0], [1], [0, 0, 1, 1], [], []>} : vector<1x2xf32>, vector<2x16xf32>, vector<1x16xf32> -> vector<1x16xf32>
    %cst_122 = arith.constant 0.000000e+00 : f32
    %139 = vector.broadcast %cst_122 : f32 to vector<1x16xf32>
    %140 = arith.subf %139, %138 : vector<1x16xf32>
    %141 = math.exp %140 : vector<1x16xf32>
    %cst_123 = arith.constant 1.000000e+00 : f32
    %142 = vector.broadcast %cst_123 : f32 to vector<1x16xf32>
    %143 = arith.addf %142, %141 : vector<1x16xf32>
    %cst_124 = arith.constant 1.000000e+00 : f32
    %144 = vector.broadcast %cst_124 : f32 to vector<1x16xf32>
    %145 = arith.divf %144, %143 : vector<1x16xf32>
    %c0_125 = arith.constant 0 : index
    %c0_126 = arith.constant 0 : index
    %146 = vector.load %arg34[%c0_125, %c0_126] : memref<16x256xf32, #tpu.memory_space<vmem>>, vector<16x256xf32>
    %cst_127 = arith.constant dense<0.000000e+00> : vector<1x256xf32>
    %147 = tpu.matmul %145, %146, %cst_127 {dimension_numbers = #tpu.dot_dimension_numbers<[1], [0], [0], [1], [0, 0, 1, 1], [], []>} : vector<1x16xf32>, vector<16x256xf32>, vector<1x256xf32> -> vector<1x256xf32>
    %148 = vector.broadcast %147 : vector<1x256xf32> to vector<16x256xf32>
    %149 = arith.mulf %128, %148 : vector<16x256xf32>
    %c0_128 = arith.constant 0 : index
    %c0_129 = arith.constant 0 : index
    %c0_130 = arith.constant 0 : index
    %150 = vector.load %arg37[%c0_128, %c0_129, %c0_130] : memref<1x16x256xf32, #tpu.memory_space<vmem>>, vector<1x16x256xf32>
    %151 = vector.shape_cast %150 : vector<1x16x256xf32> to vector<16x256xf32>
    %152 = vector.shape_cast %149 : vector<16x256xf32> to vector<1x16x256xf32>
    tpu.vector_store %arg37[%c0_128, %c0_129, %c0_130], %152 {strides = array<i32>} : memref<1x16x256xf32, #tpu.memory_space<vmem>>, vector<1x16x256xf32>,
    return
  }
  func.func @transform_0(%arg0: i32) -> (i32, i32, i32) {
    %c0_i32 = arith.constant 0 : i32
    %c0_i32_0 = arith.constant 0 : i32
    %c0_i32_1 = arith.constant 0 : i32
    return %arg0, %c0_i32, %c0_i32_0 : i32, i32, i32
  }
  func.func @transform_1(%arg0: i32) -> (i32, i32, i32) {
    %c0_i32 = arith.constant 0 : i32
    %c0_i32_0 = arith.constant 0 : i32
    %c0_i32_1 = arith.constant 0 : i32
    return %arg0, %c0_i32, %c0_i32_0 : i32, i32, i32
  }
  func.func @transform_2(%arg0: i32) -> (i32, i32) {
    %c0_i32 = arith.constant 0 : i32
    %c0_i32_0 = arith.constant 0 : i32
    %c0_i32_1 = arith.constant 0 : i32
    return %c0_i32, %c0_i32_0 : i32, i32
  }
  func.func @transform_3(%arg0: i32) -> (i32, i32) {
    %c0_i32 = arith.constant 0 : i32
    %c0_i32_0 = arith.constant 0 : i32
    %c0_i32_1 = arith.constant 0 : i32
    return %c0_i32, %c0_i32_0 : i32, i32
  }
  func.func @transform_4(%arg0: i32) -> (i32, i32) {
    %c0_i32 = arith.constant 0 : i32
    %c0_i32_0 = arith.constant 0 : i32
    %c0_i32_1 = arith.constant 0 : i32
    return %c0_i32, %c0_i32_0 : i32, i32
  }
  func.func @transform_5(%arg0: i32) -> (i32, i32) {
    %c0_i32 = arith.constant 0 : i32
    %c0_i32_0 = arith.constant 0 : i32
    %c0_i32_1 = arith.constant 0 : i32
    return %c0_i32, %c0_i32_0 : i32, i32
  }
  func.func @transform_6(%arg0: i32) -> (i32, i32) {
    %c0_i32 = arith.constant 0 : i32
    %c0_i32_0 = arith.constant 0 : i32
    %c0_i32_1 = arith.constant 0 : i32
    return %c0_i32, %c0_i32_0 : i32, i32
  }
  func.func @transform_7(%arg0: i32) -> (i32, i32) {
    %c0_i32 = arith.constant 0 : i32
    %c0_i32_0 = arith.constant 0 : i32
    %c0_i32_1 = arith.constant 0 : i32
    return %c0_i32, %c0_i32_0 : i32, i32
  }
  func.func @transform_8(%arg0: i32) -> (i32, i32) {
    %c0_i32 = arith.constant 0 : i32
    %c0_i32_0 = arith.constant 0 : i32
    %c0_i32_1 = arith.constant 0 : i32
    return %c0_i32, %c0_i32_0 : i32, i32
  }
  func.func @transform_9(%arg0: i32) -> (i32, i32) {
    %c0_i32 = arith.constant 0 : i32
    %c0_i32_0 = arith.constant 0 : i32
    %c0_i32_1 = arith.constant 0 : i32
    return %c0_i32, %c0_i32_0 : i32, i32
  }
  func.func @transform_10(%arg0: i32) -> (i32, i32) {
    %c0_i32 = arith.constant 0 : i32
    %c0_i32_0 = arith.constant 0 : i32
    %c0_i32_1 = arith.constant 0 : i32
    return %c0_i32, %c0_i32_0 : i32, i32
  }
  func.func @transform_11(%arg0: i32) -> (i32, i32) {
    %c0_i32 = arith.constant 0 : i32
    %c0_i32_0 = arith.constant 0 : i32
    %c0_i32_1 = arith.constant 0 : i32
    return %c0_i32, %c0_i32_0 : i32, i32
  }
  func.func @transform_12(%arg0: i32) -> (i32, i32) {
    %c0_i32 = arith.constant 0 : i32
    %c0_i32_0 = arith.constant 0 : i32
    %c0_i32_1 = arith.constant 0 : i32
    return %c0_i32, %c0_i32_0 : i32, i32
  }
  func.func @transform_13(%arg0: i32) -> (i32, i32) {
    %c0_i32 = arith.constant 0 : i32
    %c0_i32_0 = arith.constant 0 : i32
    %c0_i32_1 = arith.constant 0 : i32
    return %c0_i32, %c0_i32_0 : i32, i32
  }
  func.func @transform_14(%arg0: i32) -> (i32, i32) {
    %c0_i32 = arith.constant 0 : i32
    %c0_i32_0 = arith.constant 0 : i32
    %c0_i32_1 = arith.constant 0 : i32
    return %c0_i32, %c0_i32_0 : i32, i32
  }
  func.func @transform_15(%arg0: i32) -> (i32, i32) {
    %c0_i32 = arith.constant 0 : i32
    %c0_i32_0 = arith.constant 0 : i32
    %c0_i32_1 = arith.constant 0 : i32
    return %c0_i32, %c0_i32_0 : i32, i32
  }
  func.func @transform_16(%arg0: i32) -> (i32, i32) {
    %c0_i32 = arith.constant 0 : i32
    %c0_i32_0 = arith.constant 0 : i32
    %c0_i32_1 = arith.constant 0 : i32
    return %c0_i32, %c0_i32_0 : i32, i32
  }
  func.func @transform_17(%arg0: i32) -> (i32, i32) {
    %c0_i32 = arith.constant 0 : i32
    %c0_i32_0 = arith.constant 0 : i32
    %c0_i32_1 = arith.constant 0 : i32
    return %c0_i32, %c0_i32_0 : i32, i32
  }
  func.func @transform_18(%arg0: i32) -> (i32, i32) {
    %c0_i32 = arith.constant 0 : i32
    %c0_i32_0 = arith.constant 0 : i32
    %c0_i32_1 = arith.constant 0 : i32
    return %c0_i32, %c0_i32_0 : i32, i32
  }
  func.func @transform_19(%arg0: i32) -> (i32, i32) {
    %c0_i32 = arith.constant 0 : i32
    %c0_i32_0 = arith.constant 0 : i32
    %c0_i32_1 = arith.constant 0 : i32
    return %c0_i32, %c0_i32_0 : i32, i32
  }
  func.func @transform_20(%arg0: i32) -> (i32, i32) {
    %c0_i32 = arith.constant 0 : i32
    %c0_i32_0 = arith.constant 0 : i32
    %c0_i32_1 = arith.constant 0 : i32
    return %c0_i32, %c0_i32_0 : i32, i32
  }
  func.func @transform_21(%arg0: i32) -> (i32, i32) {
    %c0_i32 = arith.constant 0 : i32
    %c0_i32_0 = arith.constant 0 : i32
    %c0_i32_1 = arith.constant 0 : i32
    return %c0_i32, %c0_i32_0 : i32, i32
  }
  func.func @transform_22(%arg0: i32) -> (i32, i32) {
    %c0_i32 = arith.constant 0 : i32
    %c0_i32_0 = arith.constant 0 : i32
    %c0_i32_1 = arith.constant 0 : i32
    return %c0_i32, %c0_i32_0 : i32, i32
  }
  func.func @transform_23(%arg0: i32) -> (i32, i32) {
    %c0_i32 = arith.constant 0 : i32
    %c0_i32_0 = arith.constant 0 : i32
    %c0_i32_1 = arith.constant 0 : i32
    return %c0_i32, %c0_i32_0 : i32, i32
  }
  func.func @transform_24(%arg0: i32) -> (i32, i32) {
    %c0_i32 = arith.constant 0 : i32
    %c0_i32_0 = arith.constant 0 : i32
    %c0_i32_1 = arith.constant 0 : i32
    return %c0_i32, %c0_i32_0 : i32, i32
  }
  func.func @transform_25(%arg0: i32) -> (i32, i32) {
    %c0_i32 = arith.constant 0 : i32
    %c0_i32_0 = arith.constant 0 : i32
    %c0_i32_1 = arith.constant 0 : i32
    return %c0_i32, %c0_i32_0 : i32, i32
  }
  func.func @transform_26(%arg0: i32) -> (i32, i32) {
    %c0_i32 = arith.constant 0 : i32
    %c0_i32_0 = arith.constant 0 : i32
    %c0_i32_1 = arith.constant 0 : i32
    return %c0_i32, %c0_i32_0 : i32, i32
  }
  func.func @transform_27(%arg0: i32) -> (i32, i32) {
    %c0_i32 = arith.constant 0 : i32
    %c0_i32_0 = arith.constant 0 : i32
    %c0_i32_1 = arith.constant 0 : i32
    return %c0_i32, %c0_i32_0 : i32, i32
  }
  func.func @transform_28(%arg0: i32) -> (i32, i32) {
    %c0_i32 = arith.constant 0 : i32
    %c0_i32_0 = arith.constant 0 : i32
    %c0_i32_1 = arith.constant 0 : i32
    return %c0_i32, %c0_i32_0 : i32, i32
  }
  func.func @transform_29(%arg0: i32) -> (i32, i32) {
    %c0_i32 = arith.constant 0 : i32
    %c0_i32_0 = arith.constant 0 : i32
    %c0_i32_1 = arith.constant 0 : i32
    return %c0_i32, %c0_i32_0 : i32, i32
  }
  func.func @transform_30(%arg0: i32) -> (i32, i32) {
    %c0_i32 = arith.constant 0 : i32
    %c0_i32_0 = arith.constant 0 : i32
    %c0_i32_1 = arith.constant 0 : i32
    return %c0_i32, %c0_i32_0 : i32, i32
  }
  func.func @transform_31(%arg0: i32) -> (i32, i32) {
    %c0_i32 = arith.constant 0 : i32
    %c0_i32_0 = arith.constant 0 : i32
    %c0_i32_1 = arith.constant 0 : i32
    return %c0_i32, %c0_i32_0 : i32, i32
  }
  func.func @transform_32(%arg0: i32) -> (i32, i32) {
    %c0_i32 = arith.constant 0 : i32
    %c0_i32_0 = arith.constant 0 : i32
    %c0_i32_1 = arith.constant 0 : i32
    return %c0_i32, %c0_i32_0 : i32, i32
  }
  func.func @transform_33(%arg0: i32) -> (i32, i32) {
    %c0_i32 = arith.constant 0 : i32
    %c0_i32_0 = arith.constant 0 : i32
    %c0_i32_1 = arith.constant 0 : i32
    return %c0_i32, %c0_i32_0 : i32, i32
  }
  func.func @transform_34(%arg0: i32) -> (i32, i32) {
    %c0_i32 = arith.constant 0 : i32
    %c0_i32_0 = arith.constant 0 : i32
    %c0_i32_1 = arith.constant 0 : i32
    return %c0_i32, %c0_i32_0 : i32, i32
  }
  func.func @transform_35(%arg0: i32) -> (i32, i32) {
    %c0_i32 = arith.constant 0 : i32
    %c0_i32_0 = arith.constant 0 : i32
    %c0_i32_1 = arith.constant 0 : i32
    return %c0_i32, %c0_i32_0 : i32, i32
  }
  func.func @transform_36(%arg0: i32) -> (i32, i32, i32) {
    %c0_i32 = arith.constant 0 : i32
    %c0_i32_0 = arith.constant 0 : i32
    %c0_i32_1 = arith.constant 0 : i32
    return %arg0, %c0_i32, %c0_i32_0 : i32, i32, i32
  }
}

</mosaic_0001>

<bundles_post_ra>
// kernel: decoder_block_forward.1
= control target key start
LH: loop header
LB: loop body
LE: loop exit
PB: predicated region body
PF: predicated region fallthrough
CT: control target
= control target key end

     0   :  { %s9458_s6 = smov 1   ;;  %s9459_s10 = smov 2   ;;  %s10672_s0 = inlined_call_operand.smem [shape: u32[37], index: -1, kind: input, shape index: {}] }
   0x1   :  { %s9541_s5 = sld [smem:[%s10672_s0]]   ;;  %s9460_s14 = smov 3  }
   0x2   :  { %s9546_s9 = sld [smem:[%s10672_s0 + %s9458_s6]]   ;;  %s9461_s18 = smov 4  }
   0x3   :  { %s9551_s13 = sld [smem:[%s10672_s0 + %s9459_s10]]   ;;  %s9462_s22 = smov 5  }
   0x4   :  { %s9556_s17 = sld [smem:[%s10672_s0 + %s9460_s14]]   ;;  %s9463_s26 = smov 6  }
   0x5   :  { %s9561_s21 = sld [smem:[%s10672_s0 + %s9461_s18]]   ;;  %s9464_s30 = smov 7  }
   0x6   :  { %s9566_s25 = sld [smem:[%s10672_s0 + %s9462_s22]]   ;;  %s9465_s4 = smov 8  }
   0x7   :  { %10710 = sst [smem:[#allocation60_spill]] %s9541_s5  ;;  %s9466_s10 = smov 9  }
   0x8   :  { %10711 = sst [smem:[#allocation61_spill]] %s9546_s9  ;;  %s9467_s15 = smov 10  }
   0x9   :  { %10712 = sst [smem:[#allocation62_spill]] %s9551_s13  ;;  %s9468_s20 = smov 11  }
   0xa   :  { %s9571_s29 = sld [smem:[%s10672_s0 + %s9463_s26]]   ;;  %s9469_s26 = smov 12  }
   0xb   :  { %10713 = sst [smem:[#allocation63_spill]] %s9561_s21  ;;  %s9470_s1 = smov 13  }
   0xc   :  { %s9576_s3 = sld [smem:[%s10672_s0 + %s9464_s30]]   ;;  %s9471_s7 = smov 14  }
   0xd   :  { %s9581_s8 = sld [smem:[%s10672_s0 + %s9465_s4]]   ;;  %s9473_s22 = smov 16  }
   0xe   :  { %s9586_s14 = sld [smem:[%s10672_s0 + %s9466_s10]]   ;;  %s9474_s28 = smov 17  }
   0xf   :  { %s9591_s19 = sld [smem:[%s10672_s0 + %s9467_s15]]   ;;  %s9472_s15 = smov 15  }
  0x10   :  { %10714 = sst [smem:[#allocation64_spill]] %s9571_s29 }
  0x11   :  { %s9596_s24 = sld [smem:[%s10672_s0 + %s9468_s20]]  }
  0x12   :  { %10715 = sst [smem:[#allocation65_spill]] %s9576_s3 }
  0x13   :  { %10716 = sst [smem:[#allocation66_spill]] %s9581_s8 }
  0x14   :  { %s9601_s30 = sld [smem:[%s10672_s0 + %s9469_s26]]  }
  0x15   :  { %10717 = sst [smem:[#allocation67_spill]] %s9591_s19 }
  0x16   :  { %s9606_s6 = sld [smem:[%s10672_s0 + %s9470_s1]]  }
  0x17   :  { %10718 = sst [smem:[#allocation68_spill]] %s9596_s24 }
  0x18   :  { %s9611_s12 = sld [smem:[%s10672_s0 + %s9471_s7]]   ;;  %s9475_s7 = smov 18  }
  0x19   :  { %s9616_s20 = sld [smem:[%s10672_s0 + %s9472_s15]]   ;;  %s9476_s15 = smov 19  }
  0x1a   :  { %s9621_s27 = sld [smem:[%s10672_s0 + %s9473_s22]]   ;;  %s9477_s22 = smov 20  }
  0x1b   :  { %s9626_s4 = sld [smem:[%s10672_s0 + %s9474_s28]]   ;;  %s9478_s28 = smov 21  }
  0x1c   :  { %10719 = sst [smem:[#allocation69_spill]] %s9606_s6 }
  0x1d   :  { %s9631_s24 = sld [smem:[%s10672_s0 + %s9475_s7]]   ;;  %s9479_s7 = smov 22  }
  0x1e   :  { %10720 = sst [smem:[#allocation70_spill]] %s9611_s12 }
  0x1f   :  { %10721 = sst [smem:[#allocation71_spill]] %s9616_s20 }
  0x20   :  { %10722 = sst [smem:[#allocation72_spill]] %s9621_s27 }
  0x21   :  { %10723 = sst [smem:[#allocation73_spill]] %s9626_s4 }
  0x22   :  { %s9636_s9 = sld [smem:[%s10672_s0 + %s9476_s15]]   ;;  %s9480_s15 = smov 23  }
  0x23   :  { %10724 = sst [smem:[#allocation74_spill]] %s9631_s24 }
  0x24   :  { %s9641_s27 = sld [smem:[%s10672_s0 + %s9477_s22]]   ;;  %s9481_s22 = smov 24  }
  0x25   :  { %s9646_s5 = sld [smem:[%s10672_s0 + %s9478_s28]]   ;;  %s9482_s28 = smov 25  }
  0x26   :  { %s9651_s24 = sld [smem:[%s10672_s0 + %s9479_s7]]   ;;  %s9483_s7 = smov 26  }
  0x27   :  { %s9661_s20 = sld [smem:[%s10672_s0 + %s9481_s22]]   ;;  %s9485_s22 = smov 28  }
  0x28   :  { %10725 = sst [smem:[#allocation75_spill]] %s9636_s9 }
  0x29   :  { %s9656_s9 = sld [smem:[%s10672_s0 + %s9480_s15]]   ;;  %s9484_s15 = smov 27  }
  0x2a   :  { %s9671_s6 = sld [smem:[%s10672_s0 + %s9483_s7]]   ;;  %s9487_s7 = smov 30  }
  0x2b   :  { %10726 = sst [smem:[#allocation76_spill]] %s9646_s5 }
  0x2c   :  { %s9666_s5 = sld [smem:[%s10672_s0 + %s9482_s28]]   ;;  %s9486_s28 = smov 29  }
  0x2d   :  { %s9681_s19 = sld [smem:[%s10672_s0 + %s9485_s22]]   ;;  %s9489_s22 = smov 32  }
  0x2e   :  { %s9691_s8 = sld [smem:[%s10672_s0 + %s9487_s7]]   ;;  %s9491_s7 = smov 34  }
  0x2f   :  { %10727 = sst [smem:[#allocation77_spill]] %s9656_s9 }
  0x30   :  { %10729 = sst [smem:[#allocation79_spill]] %s9671_s6 }
  0x31   :  { %s9676_s9 = sld [smem:[%s10672_s0 + %s9484_s15]]   ;;  %s9488_s15 = smov 31  }
  0x32   :  { %10728 = sst [smem:[#allocation78_spill]] %s9666_s5 }
  0x33   :  { %s9686_s5 = sld [smem:[%s10672_s0 + %s9486_s28]]   ;;  %s9490_s28 = smov 33  }
  0x34   :  { %10732 = sst [smem:[#allocation82_spill]] %s9691_s8 }
  0x35   :  { %s9701_s29 = sld [smem:[%s10672_s0 + %s9489_s22]]   ;;  %s9493_s22 = smov 36  }
  0x36   :  { %s9711_s8 = sld [smem:[%s10672_s0 + %s9491_s7]]  }
  0x37   :  { %10730 = sst [smem:[#allocation80_spill]] %s9676_s9 }
  0x38   :  { %s9696_s9 = sld [smem:[%s10672_s0 + %s9488_s15]]   ;;  %s9492_s15 = smov 35  }
  0x39   :  { %10731 = sst [smem:[#allocation81_spill]] %s9686_s5 }
  0x3a   :  { %s9706_s5 = sld [smem:[%s10672_s0 + %s9490_s28]]  }
  0x3b   :  { %10734 = sst [smem:[#allocation84_spill]] %s9701_s29 }
  0x3c   :  { %s9716_s21 = sld [smem:[%s10672_s0 + %s9492_s15]]  }
  0x3d   :  { %s9721_s29 = sld [smem:[%s10672_s0 + %s9493_s22]]  }
  0x3e   :  { %10733 = sst [smem:[#allocation83_spill]] %s9696_s9 }
  0x3f   :  { %78 = vsyncpa [#allocation3], 0 }
  0x40   :  { %79 = vsyncpa [#allocation5], 0 }
  0x41   :  { %80 = vsyncpa [#allocation8], 0 }
  0x42   :  { %81 = vsyncpa [#allocation11], 0 }
  0x43   :  { %82 = vsyncpa [#allocation14], 0 }
  0x44   :  { %83 = vsyncpa [#allocation17], 0 }
  0x45   :  { %84 = vsyncpa [#allocation20], 0 }
  0x46   :  { %85 = vsyncpa [#allocation23], 0 }
  0x47   :  { %86 = vsyncpa [#allocation26], 0 }
  0x48   :  { %87 = vsyncpa [#allocation29], 0 }
  0x49   :  { %88 = vsyncpa [#allocation32], 0 }
  0x4a   :  { %89 = vsyncpa [#allocation35], 0 }
  0x4b   :  { %90 = vsyncpa [#allocation38], 0 }
  0x4c   :  { %91 = vsyncpa [#allocation41], 0 }
  0x4d   :  { %92 = vsyncpa [#allocation44], 0  ;;  %s9723_s28 = smov 0  }
  0x4e LB: > { %s10735_s13 = sld [smem:[#allocation62_spill]]  ;;  %s10737_s9 = sld [smem:[#allocation83_spill]]  ;;  %s9456_s28 = sphi %s9723_s28, %s98_s28  }
  0x4f   : > { %s10736_s12 = sld [smem:[#allocation70_spill]]  ;;  %s10738_s6 = sld [smem:[#allocation79_spill]] }
  0x50   : > { %s10739_s4 = sld [smem:[#allocation73_spill]]  ;;  %s9494_s0 = smov [#allocation4]  }
  0x51   : > { %s10740_s3 = sld [smem:[#allocation65_spill]]  ;;  %s919_s1 = sshll.u32 %s9494_s0, 4  ;;  %s9734_s1 = int_to_ptr.vmem [resolvable:$true] %s919_s1 }
  0x52   : > { %s9729_s2 = sadd.s32 4294967295, %s9456_s28   ;;  %p6823_p0 = scmp.ge.s32.totalorder %s9456_s28, 1 }
  0x53   : > { %p895_p1 = scmp.lt.s32.totalorder %s9456_s28, 3  ;;  %p10689_p2 = scmp.eq.s32.totalorder %s9729_s2, 0 }
  0x54   : > { %s9495_s10 = smov [#allocation7]   ;;  %s9496_s15 = smov [#allocation10]  }
  0x55   : > { %p9736_p3 = pnand %p6823_p0, %p895_p1  ;;  %s941_s11 = sshll.u32 %s9495_s10, 4  ;;  %s9742_s11 = int_to_ptr.vmem [resolvable:$true] %s941_s11 }
  0x56   : > { %s963_s16 = sshll.u32 %s9496_s15, 4  ;;  %s9497_s22 = smov [#allocation13]   ;;  %s9750_s16 = int_to_ptr.vmem [resolvable:$true] %s963_s16 }
  0x57   : > { %s10741_s7 = scalar_select %p9736_p3, 1, 0 }
  0x58   : > { %p7820_p4 = pneg %p9736_p3  ;;  %s985_s23 = sshll.u32 %s9497_s22, 4  ;;  %s9752_s23 = int_to_ptr.vmem [resolvable:$true] %s985_s23 }
  0x59   : > { %s8606_s26 = scalar_lea.hbm %s9556_s17, 16 }
  0x5a   : > { %p9746_p5 = pnand %p10689_p2, %p7820_p4  ;;  %p8607_p6 = scmp.ne.s32.totalorder %s9556_s17, %s8606_s26 }
  0x5b   : > { %p8613_p10 = scmp.lt.u32.totalorder %s8606_s26, %s9556_s17 }
  0x5c   : > { %p9758_p7 = pneg %p9746_p5 }
  0x5e   : > { %p8609_p8 = pnand %p9758_p7, %p8607_p6 }
  0x60   : > { %p8610_p9 = pneg %p8609_p8 }
  0x62   : > { %p8615_p11 = pnand %p8613_p10, %p8610_p9 }
  0x64   : > { %8618 = shalt.err (!%p8615_p11)
}
  0x65   : > { %s8619_s10 = scalar_lea.vmem %s9734_s1, 16  ;;  %s8626_s15 = scalar_lea.vmem %s9734_s1, 32 }
  0x66   : > { %p8620_p12 = scmp.ne.s32.totalorder %s9734_s1, %s8619_s10  ;;  %p8627_p1 = scmp.lt.s32.totalorder %s9734_s1, %s9734_s1 }
  0x67   : > { %p8628_p4 = scmp.lt.s32.totalorder %s8626_s15, %s8619_s10 }
  0x68   : > { %p8622_p13 = pnand %p8620_p12, %p9758_p7 }
  0x69   : > { %p8629_p2 = por %p8628_p4, %p8627_p1 }
  0x6a   : > { %p8623_p0 = pneg %p8622_p13 }
  0x6c   : > { %p8630_p6 = pnand %p8629_p2, %p8623_p0 }
  0x6e   : > { %8633 = shalt.err (!%p8630_p6)
}
  0x6f   : > { %7826 = dma.hbm_to_vmem [thread:$0]  (!%p9746_p5), %s9556_s17, 16, %s9734_s1, [#allocation5]  }
  0x70   : > { %s8634_s22 = scalar_lea.hbm %s9566_s25, 16 }
  0x71   : > { %p8635_p8 = scmp.ne.s32.totalorder %s9566_s25, %s8634_s22  ;;  %p8641_p11 = scmp.lt.u32.totalorder %s8634_s22, %s9566_s25 }
  0x73   : > { %p8637_p9 = pnand %p8635_p8, %p9758_p7 }
  0x75   : > { %p8638_p10 = pneg %p8637_p9 }
  0x77   : > { %p8643_p12 = pnand %p8641_p11, %p8638_p10 }
  0x79   : > { %8646 = shalt.err (!%p8643_p12)
}
  0x7a   : > { %s8647_s26 = scalar_lea.vmem %s9742_s11, 16  ;;  %s8654_s10 = scalar_lea.vmem %s9742_s11, 32 }
  0x7b   : > { %p8648_p2 = scmp.ne.s32.totalorder %s9742_s11, %s8647_s26  ;;  %p8655_p1 = scmp.lt.s32.totalorder %s9742_s11, %s9742_s11 }
  0x7c   : > { %p8656_p4 = scmp.lt.s32.totalorder %s8654_s10, %s8647_s26 }
  0x7d   : > { %p8650_p13 = pnand %p8648_p2, %p9758_p7 }
  0x7e   : > { %p8657_p6 = por %p8656_p4, %p8655_p1 }
  0x7f   : > { %p8651_p0 = pneg %p8650_p13 }
  0x81   : > { %p8658_p8 = pnand %p8657_p6, %p8651_p0 }
  0x83   : > { %8661 = shalt.err (!%p8658_p8)
}
  0x84   : > { %7832 = dma.hbm_to_vmem [thread:$0]  (!%p9746_p5), %s9566_s25, 16, %s9742_s11, [#allocation8]  }
  0x85   : > { %s8662_s1 = scalar_lea.hbm %s10740_s3, 16 }
  0x86   : > { %p8663_p9 = scmp.ne.s32.totalorder %s10740_s3, %s8662_s1  ;;  %p8669_p12 = scmp.lt.u32.totalorder %s8662_s1, %s10740_s3 }
  0x88   : > { %p8665_p10 = pnand %p8663_p9, %p9758_p7 }
  0x8a   : > { %p8666_p11 = pneg %p8665_p10 }
  0x8c   : > { %p8671_p2 = pnand %p8669_p12, %p8666_p11 }
  0x8e   : > { %8674 = shalt.err (!%p8671_p2)
}
  0x8f   : > { %s8675_s15 = scalar_lea.vmem %s9750_s16, 16  ;;  %s8682_s22 = scalar_lea.vmem %s9750_s16, 32 }
  0x90   : > { %p8676_p13 = scmp.ne.s32.totalorder %s9750_s16, %s8675_s15  ;;  %p8683_p4 = scmp.lt.s32.totalorder %s9750_s16, %s9750_s16 }
  0x91   : > { %p8684_p6 = scmp.lt.s32.totalorder %s8682_s22, %s8675_s15 }
  0x92   : > { %p8678_p0 = pnand %p8676_p13, %p9758_p7 }
  0x93   : > { %p8685_p8 = por %p8684_p6, %p8683_p4 }
  0x94   : > { %p8679_p1 = pneg %p8678_p0 }
  0x96   : > { %p8686_p9 = pnand %p8685_p8, %p8679_p1 }
  0x98   : > { %8689 = shalt.err (!%p8686_p9)
}
  0x99   : > { %7838 = dma.hbm_to_vmem [thread:$0]  (!%p9746_p5), %s10740_s3, 16, %s9750_s16, [#allocation11]  }
  0x9a   : > { %s8690_s11 = scalar_lea.hbm %s9586_s14, 16 }
  0x9b   : > { %p8691_p10 = scmp.ne.s32.totalorder %s9586_s14, %s8690_s11  ;;  %p8697_p2 = scmp.lt.u32.totalorder %s8690_s11, %s9586_s14 }
  0x9d   : > { %p8693_p11 = pnand %p8691_p10, %p9758_p7 }
  0x9f   : > { %p8694_p12 = pneg %p8693_p11 }
  0xa1   : > { %p8699_p13 = pnand %p8697_p2, %p8694_p12 }
  0xa3   : > { %8702 = shalt.err (!%p8699_p13)
}
  0xa4   : > { %s8703_s26 = scalar_lea.vmem %s9752_s23, 16  ;;  %s8710_s10 = scalar_lea.vmem %s9752_s23, 32 }
  0xa5   : > { %p8704_p0 = scmp.ne.s32.totalorder %s9752_s23, %s8703_s26  ;;  %p8711_p6 = scmp.lt.s32.totalorder %s9752_s23, %s9752_s23 }
  0xa6   : > { %p8712_p8 = scmp.lt.s32.totalorder %s8710_s10, %s8703_s26 }
  0xa7   : > { %p8706_p1 = pnand %p8704_p0, %p9758_p7 }
  0xa8   : > { %p8713_p9 = por %p8712_p8, %p8711_p6 }
  0xa9   : > { %p8707_p4 = pneg %p8706_p1 }
  0xab   : > { %p8714_p10 = pnand %p8713_p9, %p8707_p4 }
  0xad   : > { %8717 = shalt.err (!%p8714_p10)
}
  0xae   : > { %7844 = dma.hbm_to_vmem [thread:$0]  (!%p9746_p5), %s9586_s14, 16, %s9752_s23, [#allocation14]  }
  0xaf   : > { %s9498_s16 = smov [#allocation16]   ;;  %s9499_s15 = smov [#allocation19]  }
  0xb0   : > { %s1010_s1 = sshll.u32 %s9498_s16, 4  ;;  %s1032_s22 = sshll.u32 %s9499_s15, 4  ;;  %s1011_s1 = int_to_ptr.vmem [resolvable:$true] %s1010_s1  ;;  %s1033_s22 = int_to_ptr.vmem [resolvable:$true] %s1032_s22 }
  0xb1   : > { %s8718_s11 = scalar_lea.hbm %s9601_s30, 32 }
  0xb2   : > { %p8719_p11 = scmp.ne.s32.totalorder %s9601_s30, %s8718_s11  ;;  %p8725_p13 = scmp.lt.u32.totalorder %s8718_s11, %s9601_s30 }
  0xb4   : > { %p8721_p12 = pnand %p8719_p11, %p9758_p7 }
  0xb6   : > { %p8722_p2 = pneg %p8721_p12 }
  0xb8   : > { %p8727_p0 = pnand %p8725_p13, %p8722_p2 }
  0xba   : > { %8730 = shalt.err (!%p8727_p0)
}
  0xbb   : > { %s8731_s26 = scalar_lea.vmem %s1011_s1, 32  ;;  %p8739_p8 = scmp.lt.s32.totalorder %s1011_s1, %s1011_s1 }
  0xbc   : > { %p8732_p1 = scmp.ne.s32.totalorder %s1011_s1, %s8731_s26  ;;  %p8740_p9 = scmp.lt.s32.totalorder %s8731_s26, %s8731_s26 }
  0xbe   : > { %p8734_p4 = pnand %p8732_p1, %p9758_p7  ;;  %p8741_p10 = por %p8740_p9, %p8739_p8 }
  0xc0   : > { %p8735_p6 = pneg %p8734_p4 }
  0xc2   : > { %p8742_p3 = pnand %p8741_p10, %p8735_p6 }
  0xc4   : > { %8745 = shalt.err (!%p8742_p3)
}
  0xc5   : > { %7850 = dma.hbm_to_vmem [thread:$0]  (!%p9746_p5), %s9601_s30, 32, %s1011_s1, [#allocation17]  }
  0xc6   : > { %s8746_s23 = scalar_lea.hbm %s10736_s12, 32 }
  0xc7   : > { %p8747_p11 = scmp.ne.s32.totalorder %s10736_s12, %s8746_s23  ;;  %p8753_p13 = scmp.lt.u32.totalorder %s8746_s23, %s10736_s12 }
  0xc9   : > { %p8749_p12 = pnand %p8747_p11, %p9758_p7 }
  0xcb   : > { %p8750_p2 = pneg %p8749_p12 }
  0xcd   : > { %p8755_p0 = pnand %p8753_p13, %p8750_p2 }
  0xcf   : > { %8758 = shalt.err (!%p8755_p0)
}
  0xd0   : > { %s8759_s10 = scalar_lea.vmem %s1033_s22, 32  ;;  %p8767_p6 = scmp.lt.s32.totalorder %s1033_s22, %s1033_s22 }
  0xd1   : > { %p8760_p3 = scmp.ne.s32.totalorder %s1033_s22, %s8759_s10  ;;  %p8768_p8 = scmp.lt.s32.totalorder %s8759_s10, %s8759_s10 }
  0xd3   : > { %p8762_p1 = pnand %p8760_p3, %p9758_p7  ;;  %p8769_p9 = por %p8768_p8, %p8767_p6 }
  0xd5   : > { %p8763_p4 = pneg %p8762_p1 }
  0xd7   : > { %p8770_p10 = pnand %p8769_p9, %p8763_p4 }
  0xd9   : > { %8773 = shalt.err (!%p8770_p10)
}
  0xda   : > { %7856 = dma.hbm_to_vmem [thread:$0]  (!%p9746_p5), %s10736_s12, 32, %s1033_s22, [#allocation20]  }
  0xdb   : > { %s9500_s16 = smov [#allocation22]   ;;  %s8774_s15 = scalar_lea.hbm %s10739_s4, 3072 }
  0xdc   : > { %s1056_s1 = sshll.u32 %s9500_s16, 4  ;;  %p8775_p11 = scmp.ne.s32.totalorder %s10739_s4, %s8774_s15  ;;  %s1057_s1 = int_to_ptr.vmem [resolvable:$true] %s1056_s1 }
  0xdd   : > { %p8781_p13 = scmp.lt.u32.totalorder %s8774_s15, %s10739_s4 }
  0xde   : > { %p8777_p12 = pnand %p8775_p11, %p9758_p7 }
  0xe0   : > { %p8778_p2 = pneg %p8777_p12 }
  0xe2   : > { %p8783_p0 = pnand %p8781_p13, %p8778_p2 }
  0xe4   : > { %8786 = shalt.err (!%p8783_p0)
}
  0xe5   : > { %s8787_s11 = scalar_lea.vmem %s1057_s1, 3072  ;;  %p8795_p6 = scmp.lt.s32.totalorder %s1057_s1, %s1057_s1 }
  0xe6   : > { %p8788_p3 = scmp.ne.s32.totalorder %s1057_s1, %s8787_s11  ;;  %p8796_p8 = scmp.lt.s32.totalorder %s8787_s11, %s8787_s11 }
  0xe8   : > { %p8790_p1 = pnand %p8788_p3, %p9758_p7  ;;  %p8797_p9 = por %p8796_p8, %p8795_p6 }
  0xea   : > { %p8791_p4 = pneg %p8790_p1 }
  0xec   : > { %p8798_p10 = pnand %p8797_p9, %p8791_p4 }
  0xee   : > { %8801 = shalt.err (!%p8798_p10)
}
  0xef   : > { %s10691_s22 = smov 64   ;;  %s10692_s26 = smov 4  }
  0xf0   : > { %7862 = dma.hbm_to_vmem [thread:$0]  (!%p9746_p5), %s10739_s4, 3072, %s1057_s1, [#allocation23], %s10691_s22, %s10691_s22, %s10692_s26  }
  0xf1   : > { %s9503_s23 = smov [#allocation25]   ;;  %s8802_s16 = scalar_lea.hbm %s9641_s27, 6144 }
  0xf2   : > { %s1085_s10 = sshll.u32 %s9503_s23, 4  ;;  %p8803_p11 = scmp.ne.s32.totalorder %s9641_s27, %s8802_s16  ;;  %s1086_s10 = int_to_ptr.vmem [resolvable:$true] %s1085_s10 }
  0xf3   : > { %p8809_p13 = scmp.lt.u32.totalorder %s8802_s16, %s9641_s27 }
  0xf4   : > { %p8805_p12 = pnand %p8803_p11, %p9758_p7 }
  0xf6   : > { %p8806_p2 = pneg %p8805_p12 }
  0xf8   : > { %p8811_p0 = pnand %p8809_p13, %p8806_p2 }
  0xfa   : > { %8814 = shalt.err (!%p8811_p0)
}
  0xfb   : > { %s8815_s15 = scalar_lea.vmem %s1086_s10, 6144  ;;  %p8823_p6 = scmp.lt.s32.totalorder %s1086_s10, %s1086_s10 }
  0xfc   : > { %p8816_p3 = scmp.ne.s32.totalorder %s1086_s10, %s8815_s15  ;;  %p8824_p8 = scmp.lt.s32.totalorder %s8815_s15, %s8815_s15 }
  0xfe   : > { %p8818_p1 = pnand %p8816_p3, %p9758_p7  ;;  %p8825_p9 = por %p8824_p8, %p8823_p6 }
 0x100   : > { %p8819_p4 = pneg %p8818_p1 }
 0x102   : > { %p8826_p10 = pnand %p8825_p9, %p8819_p4 }
 0x104   : > { %8829 = shalt.err (!%p8826_p10)
}
 0x105   : > { %s10694_s1 = smov 128   ;;  %s10696_s11 = smov 8  }
 0x106   : > { %7868 = dma.hbm_to_vmem [thread:$0]  (!%p9746_p5), %s9641_s27, 6144, %s1086_s10, [#allocation26], %s10694_s1, %s10694_s1, %s10696_s11  }
 0x107   : > { %s9506_s23 = smov [#allocation28]   ;;  %s9507_s15 = smov [#allocation31]  }
 0x108   : > { %s1111_s16 = sshll.u32 %s9506_s23, 4  ;;  %s1137_s22 = sshll.u32 %s9507_s15, 4  ;;  %s1112_s16 = int_to_ptr.vmem [resolvable:$true] %s1111_s16  ;;  %s1138_s22 = int_to_ptr.vmem [resolvable:$true] %s1137_s22 }
 0x109   : > { %s8830_s26 = scalar_lea.hbm %s9651_s24, 4096 }
 0x10a   : > { %p8831_p11 = scmp.ne.s32.totalorder %s9651_s24, %s8830_s26  ;;  %p8837_p13 = scmp.lt.u32.totalorder %s8830_s26, %s9651_s24 }
 0x10c   : > { %p8833_p12 = pnand %p8831_p11, %p9758_p7 }
 0x10e   : > { %p8834_p2 = pneg %p8833_p12 }
 0x110   : > { %p8839_p0 = pnand %p8837_p13, %p8834_p2 }
 0x112   : > { %8842 = shalt.err (!%p8839_p0)
}
 0x113   : > { %s8843_s3 = scalar_lea.vmem %s1112_s16, 4096  ;;  %p8851_p6 = scmp.lt.s32.totalorder %s1112_s16, %s1112_s16 }
 0x114   : > { %p8844_p3 = scmp.ne.s32.totalorder %s1112_s16, %s8843_s3  ;;  %p8852_p8 = scmp.lt.s32.totalorder %s8843_s3, %s8843_s3 }
 0x116   : > { %p8846_p1 = pnand %p8844_p3, %p9758_p7  ;;  %p8853_p9 = por %p8852_p8, %p8851_p6 }
 0x118   : > { %p8847_p4 = pneg %p8846_p1 }
 0x11a   : > { %p8854_p10 = pnand %p8853_p9, %p8847_p4 }
 0x11c   : > { %8857 = shalt.err (!%p8854_p10)
}
 0x11d   : > { %7874 = dma.hbm_to_vmem [thread:$0]  (!%p9746_p5), %s9651_s24, 4096, %s1112_s16, [#allocation29], %s10694_s1, %s10694_s1, %s10696_s11  }
 0x11e   : > { %s8858_s26 = scalar_lea.hbm %s9661_s20, 256 }
 0x11f   : > { %p8859_p11 = scmp.ne.s32.totalorder %s9661_s20, %s8858_s26  ;;  %p8865_p13 = scmp.lt.u32.totalorder %s8858_s26, %s9661_s20 }
 0x121   : > { %p8861_p12 = pnand %p8859_p11, %p9758_p7 }
 0x123   : > { %p8862_p2 = pneg %p8861_p12 }
 0x125   : > { %p8867_p0 = pnand %p8865_p13, %p8862_p2 }
 0x127   : > { %8870 = shalt.err (!%p8867_p0)
}
 0x128   : > { %s8871_s3 = scalar_lea.vmem %s1138_s22, 256  ;;  %p8879_p6 = scmp.lt.s32.totalorder %s1138_s22, %s1138_s22 }
 0x129   : > { %p8872_p3 = scmp.ne.s32.totalorder %s1138_s22, %s8871_s3  ;;  %p8880_p8 = scmp.lt.s32.totalorder %s8871_s3, %s8871_s3 }
 0x12b   : > { %p8874_p1 = pnand %p8872_p3, %p9758_p7  ;;  %p8881_p9 = por %p8880_p8, %p8879_p6 }
 0x12d   : > { %p8875_p4 = pneg %p8874_p1 }
 0x12f   : > { %p8882_p10 = pnand %p8881_p9, %p8875_p4 }
 0x131   : > { %8885 = shalt.err (!%p8882_p10)
}
 0x132   : > { %7880 = dma.hbm_to_vmem [thread:$0]  (!%p9746_p5), %s9661_s20, 256, %s1138_s22, [#allocation32], %s10694_s1, %s10694_s1, %s10696_s11  }
 0x133   : > { %s9508_s10 = smov [#allocation34]   ;;  %s9509_s16 = smov [#allocation37]  }
 0x134   : > { %s1164_s23 = sshll.u32 %s9508_s10, 4  ;;  %s1186_s15 = sshll.u32 %s9509_s16, 4  ;;  %s1165_s23 = int_to_ptr.vmem [resolvable:$true] %s1164_s23  ;;  %s1187_s15 = int_to_ptr.vmem [resolvable:$true] %s1186_s15 }
 0x135   : > { %s8886_s26 = scalar_lea.hbm %s10738_s6, 128 }
 0x136   : > { %p8887_p11 = scmp.ne.s32.totalorder %s10738_s6, %s8886_s26  ;;  %p8893_p13 = scmp.lt.u32.totalorder %s8886_s26, %s10738_s6 }
 0x138   : > { %p8889_p12 = pnand %p8887_p11, %p9758_p7 }
 0x13a   : > { %p8890_p2 = pneg %p8889_p12 }
 0x13c   : > { %p8895_p0 = pnand %p8893_p13, %p8890_p2 }
 0x13e   : > { %8898 = shalt.err (!%p8895_p0)
}
 0x13f   : > { %s8899_s3 = scalar_lea.vmem %s1165_s23, 128  ;;  %p8907_p6 = scmp.lt.s32.totalorder %s1165_s23, %s1165_s23 }
 0x140   : > { %p8900_p3 = scmp.ne.s32.totalorder %s1165_s23, %s8899_s3  ;;  %p8908_p8 = scmp.lt.s32.totalorder %s8899_s3, %s8899_s3 }
 0x142   : > { %p8902_p1 = pnand %p8900_p3, %p9758_p7  ;;  %p8909_p9 = por %p8908_p8, %p8907_p6 }
 0x144   : > { %p8903_p4 = pneg %p8902_p1 }
 0x146   : > { %p8910_p10 = pnand %p8909_p9, %p8903_p4 }
 0x148   : > { %8913 = shalt.err (!%p8910_p10)
}
 0x149   : > { %7886 = dma.hbm_to_vmem [thread:$0]  (!%p9746_p5), %s10738_s6, 128, %s1165_s23, [#allocation35]  }
 0x14a   : > { %s8914_s22 = scalar_lea.hbm %s9681_s19, 128 }
 0x14b   : > { %p8915_p11 = scmp.ne.s32.totalorder %s9681_s19, %s8914_s22  ;;  %p8921_p13 = scmp.lt.u32.totalorder %s8914_s22, %s9681_s19 }
 0x14d   : > { %p8917_p12 = pnand %p8915_p11, %p9758_p7 }
 0x14f   : > { %p8918_p2 = pneg %p8917_p12 }
 0x151   : > { %p8923_p0 = pnand %p8921_p13, %p8918_p2 }
 0x153   : > { %8926 = shalt.err (!%p8923_p0)
}
 0x154   : > { %s8927_s10 = scalar_lea.vmem %s1187_s15, 128  ;;  %p8935_p6 = scmp.lt.s32.totalorder %s1187_s15, %s1187_s15 }
 0x155   : > { %p8928_p3 = scmp.ne.s32.totalorder %s1187_s15, %s8927_s10  ;;  %p8936_p8 = scmp.lt.s32.totalorder %s8927_s10, %s8927_s10 }
 0x157   : > { %p8930_p1 = pnand %p8928_p3, %p9758_p7  ;;  %p8937_p9 = por %p8936_p8, %p8935_p6 }
 0x159   : > { %p8931_p4 = pneg %p8930_p1 }
 0x15b   : > { %p8938_p10 = pnand %p8937_p9, %p8931_p4 }
 0x15d   : > { %8941 = shalt.err (!%p8938_p10)
}
 0x15e   : > { %7892 = dma.hbm_to_vmem [thread:$0]  (!%p9746_p5), %s9681_s19, 128, %s1187_s15, [#allocation38]  }
 0x15f   : > { %s9510_s23 = smov [#allocation40]   ;;  %s8942_s26 = scalar_lea.hbm %s10737_s9, 4096 }
 0x160   : > { %s1210_s16 = sshll.u32 %s9510_s23, 4  ;;  %p8943_p11 = scmp.ne.s32.totalorder %s10737_s9, %s8942_s26  ;;  %s1211_s16 = int_to_ptr.vmem [resolvable:$true] %s1210_s16 }
 0x161   : > { %p8949_p13 = scmp.lt.u32.totalorder %s8942_s26, %s10737_s9 }
 0x162   : > { %p8945_p12 = pnand %p8943_p11, %p9758_p7 }
 0x164   : > { %p8946_p2 = pneg %p8945_p12 }
 0x166   : > { %p8951_p0 = pnand %p8949_p13, %p8946_p2 }
 0x168   : > { %8954 = shalt.err (!%p8951_p0)
}
 0x169   : > { %s8955_s3 = scalar_lea.vmem %s1211_s16, 4096  ;;  %p8963_p6 = scmp.lt.s32.totalorder %s1211_s16, %s1211_s16 }
 0x16a   : > { %p8956_p3 = scmp.ne.s32.totalorder %s1211_s16, %s8955_s3  ;;  %p8964_p8 = scmp.lt.s32.totalorder %s8955_s3, %s8955_s3 }
 0x16c   : > { %p8958_p1 = pnand %p8956_p3, %p9758_p7  ;;  %p8965_p9 = por %p8964_p8, %p8963_p6 }
 0x16e   : > { %p8959_p4 = pneg %p8958_p1 }
 0x170   : > { %p8966_p10 = pnand %p8965_p9, %p8959_p4 }
 0x172   : > { %8969 = shalt.err (!%p8966_p10)
}
 0x173   : > { %s10698_s15 = smov 256   ;;  %s10699_s22 = smov 16  }
 0x174   : > { %7898 = dma.hbm_to_vmem [thread:$0]  (!%p9746_p5), %s10737_s9, 4096, %s1211_s16, [#allocation41], %s10698_s15, %s10698_s15, %s10699_s22  }
 0x175   : > { %s9513_s10 = smov [#allocation2]   ;;  %s9514_s26 = smov [#allocation6]  }
 0x176   : > { %s908_s23 = sshll.u32 %s9513_s10, 4  ;;  %s930_s3 = sshll.u32 %s9514_s26, 4  ;;  %s909_s23 = int_to_ptr.vmem [resolvable:$true] %s908_s23  ;;  %s9929_s3 = int_to_ptr.vmem [resolvable:$true] %s930_s3 }
 0x177   : > { %s8970_s1 = scalar_lea.hbm %s10735_s13, 16 }
 0x178   : > { %p8971_p11 = scmp.ne.s32.totalorder %s10735_s13, %s8970_s1  ;;  %p8977_p13 = scmp.lt.u32.totalorder %s8970_s1, %s10735_s13 }
 0x17a   : > { %p8973_p12 = pnand %p8971_p11, %p9758_p7 }
 0x17c   : > { %p8974_p2 = pneg %p8973_p12 }
 0x17e   : > { %p8979_p0 = pnand %p8977_p13, %p8974_p2 }
 0x180   : > { %8982 = shalt.err (!%p8979_p0)
}
 0x181   : > { %s8983_s11 = scalar_lea.vmem %s909_s23, 16  ;;  %s8990_s16 = scalar_lea.vmem %s909_s23, 32 }
 0x182   : > { %p8984_p3 = scmp.ne.s32.totalorder %s909_s23, %s8983_s11  ;;  %p8991_p6 = scmp.lt.s32.totalorder %s909_s23, %s909_s23 }
 0x183   : > { %p8992_p8 = scmp.lt.s32.totalorder %s8990_s16, %s8983_s11 }
 0x184   : > { %p8986_p1 = pnand %p8984_p3, %p9758_p7 }
 0x185   : > { %p8993_p9 = por %p8992_p8, %p8991_p6 }
 0x186   : > { %p8987_p4 = pneg %p8986_p1 }
 0x188   : > { %p8994_p10 = pnand %p8993_p9, %p8987_p4 }
 0x18a   : > { %8997 = shalt.err (!%p8994_p10)
}
 0x18b   : > { %s10744_s10 = sld [smem:[#allocation63_spill]] }
 0x18c   : > { %7823 = dma.hbm_to_vmem [thread:$0]  (!%p9746_p5), %s10735_s13, 16, %s909_s23, [#allocation3]  }
 0x191   : > { %s8998_s1 = scalar_lea.hbm %s10744_s10, 16 }
 0x192   : > { %p8999_p11 = scmp.ne.s32.totalorder %s10744_s10, %s8998_s1  ;;  %p9005_p13 = scmp.lt.u32.totalorder %s8998_s1, %s10744_s10 }
 0x194   : > { %p9001_p12 = pnand %p8999_p11, %p9758_p7 }
 0x196   : > { %p9002_p2 = pneg %p9001_p12 }
 0x198   : > { %p9007_p0 = pnand %p9005_p13, %p9002_p2 }
 0x19a   : > { %9010 = shalt.err (!%p9007_p0)
}
 0x19b   : > { %s9011_s11 = scalar_lea.vmem %s9929_s3, 16  ;;  %s9018_s26 = scalar_lea.vmem %s9929_s3, 32 }
 0x19c   : > { %p9012_p3 = scmp.ne.s32.totalorder %s9929_s3, %s9011_s11  ;;  %p9019_p6 = scmp.lt.s32.totalorder %s9929_s3, %s9929_s3 }
 0x19d   : > { %p9020_p8 = scmp.lt.s32.totalorder %s9018_s26, %s9011_s11 }
 0x19e   : > { %p9014_p1 = pnand %p9012_p3, %p9758_p7 }
 0x19f   : > { %p9021_p9 = por %p9020_p8, %p9019_p6 }
 0x1a0   : > { %p9015_p4 = pneg %p9014_p1 }
 0x1a2   : > { %p9022_p10 = pnand %p9021_p9, %p9015_p4 }
 0x1a4   : > { %9025 = shalt.err (!%p9022_p10)
}
 0x1a5   : > { %s10745_s23 = sld [smem:[#allocation64_spill]]  ;;  %s9515_s16 = smov [#allocation9]  }
 0x1a6   : > { %7829 = dma.hbm_to_vmem [thread:$0]  (!%p9746_p5), %s10744_s10, 16, %s9929_s3, [#allocation5]  }
 0x1a7   : > { %s952_s1 = sshll.u32 %s9515_s16, 4  ;;  %s9516_s15 = smov [#allocation12]   ;;  %s953_s1 = int_to_ptr.vmem [resolvable:$true] %s952_s1 }
 0x1a8   : > { %s974_s22 = sshll.u32 %s9516_s15, 4  ;;  %s9957_s22 = int_to_ptr.vmem [resolvable:$true] %s974_s22 }
 0x1ab   : > { %s9026_s11 = scalar_lea.hbm %s10745_s23, 16 }
 0x1ac   : > { %p9027_p11 = scmp.ne.s32.totalorder %s10745_s23, %s9026_s11  ;;  %p9033_p13 = scmp.lt.u32.totalorder %s9026_s11, %s10745_s23 }
 0x1ae   : > { %p9029_p12 = pnand %p9027_p11, %p9758_p7 }
 0x1b0   : > { %p9030_p2 = pneg %p9029_p12 }
 0x1b2   : > { %p9035_p0 = pnand %p9033_p13, %p9030_p2 }
 0x1b4   : > { %9038 = shalt.err (!%p9035_p0)
}
 0x1b5   : > { %s9039_s26 = scalar_lea.vmem %s953_s1, 16  ;;  %s9046_s3 = scalar_lea.vmem %s953_s1, 32 }
 0x1b6   : > { %p9040_p3 = scmp.ne.s32.totalorder %s953_s1, %s9039_s26  ;;  %p9047_p6 = scmp.lt.s32.totalorder %s953_s1, %s953_s1 }
 0x1b7   : > { %p9048_p8 = scmp.lt.s32.totalorder %s9046_s3, %s9039_s26 }
 0x1b8   : > { %p9042_p1 = pnand %p9040_p3, %p9758_p7 }
 0x1b9   : > { %p9049_p9 = por %p9048_p8, %p9047_p6 }
 0x1ba   : > { %p9043_p4 = pneg %p9042_p1 }
 0x1bc   : > { %p9050_p10 = pnand %p9049_p9, %p9043_p4 }
 0x1be   : > { %9053 = shalt.err (!%p9050_p10)
}
 0x1bf   : > { %s10746_s15 = sld [smem:[#allocation66_spill]] }
 0x1c0   : > { %7835 = dma.hbm_to_vmem [thread:$0]  (!%p9746_p5), %s10745_s23, 16, %s953_s1, [#allocation8]  }
 0x1c5   : > { %s9054_s16 = scalar_lea.hbm %s10746_s15, 16 }
 0x1c6   : > { %p9055_p11 = scmp.ne.s32.totalorder %s10746_s15, %s9054_s16  ;;  %p9061_p13 = scmp.lt.u32.totalorder %s9054_s16, %s10746_s15 }
 0x1c8   : > { %p9057_p12 = pnand %p9055_p11, %p9758_p7 }
 0x1ca   : > { %p9058_p2 = pneg %p9057_p12 }
 0x1cc   : > { %p9063_p0 = pnand %p9061_p13, %p9058_p2 }
 0x1ce   : > { %9066 = shalt.err (!%p9063_p0)
}
 0x1cf   : > { %s9067_s11 = scalar_lea.vmem %s9957_s22, 16  ;;  %s9074_s26 = scalar_lea.vmem %s9957_s22, 32 }
 0x1d0   : > { %p9068_p3 = scmp.ne.s32.totalorder %s9957_s22, %s9067_s11  ;;  %p9075_p6 = scmp.lt.s32.totalorder %s9957_s22, %s9957_s22 }
 0x1d1   : > { %p9076_p8 = scmp.lt.s32.totalorder %s9074_s26, %s9067_s11 }
 0x1d2   : > { %p9070_p1 = pnand %p9068_p3, %p9758_p7 }
 0x1d3   : > { %p9077_p9 = por %p9076_p8, %p9075_p6 }
 0x1d4   : > { %p9071_p4 = pneg %p9070_p1 }
 0x1d6   : > { %p9078_p10 = pnand %p9077_p9, %p9071_p4 }
 0x1d8   : > { %9081 = shalt.err (!%p9078_p10)
}
 0x1d9   : > { %s10747_s1 = sld [smem:[#allocation67_spill]]  ;;  %s9517_s3 = smov [#allocation15]  }
 0x1da   : > { %7841 = dma.hbm_to_vmem [thread:$0]  (!%p9746_p5), %s10746_s15, 16, %s9957_s22, [#allocation11]  }
 0x1db   : > { %s996_s16 = sshll.u32 %s9517_s3, 4  ;;  %s9518_s4 = smov [#allocation18]   ;;  %s997_s16 = int_to_ptr.vmem [resolvable:$true] %s996_s16 }
 0x1dc   : > { %s1021_s6 = sshll.u32 %s9518_s4, 4  ;;  %s9985_s6 = int_to_ptr.vmem [resolvable:$true] %s1021_s6 }
 0x1df   : > { %s9082_s11 = scalar_lea.hbm %s10747_s1, 16 }
 0x1e0   : > { %p9083_p11 = scmp.ne.s32.totalorder %s10747_s1, %s9082_s11  ;;  %p9089_p13 = scmp.lt.u32.totalorder %s9082_s11, %s10747_s1 }
 0x1e2   : > { %p9085_p12 = pnand %p9083_p11, %p9758_p7 }
 0x1e4   : > { %p9086_p2 = pneg %p9085_p12 }
 0x1e6   : > { %p9091_p0 = pnand %p9089_p13, %p9086_p2 }
 0x1e8   : > { %9094 = shalt.err (!%p9091_p0)
}
 0x1e9   : > { %s9095_s26 = scalar_lea.vmem %s997_s16, 16  ;;  %s9102_s22 = scalar_lea.vmem %s997_s16, 32 }
 0x1ea   : > { %p9096_p3 = scmp.ne.s32.totalorder %s997_s16, %s9095_s26  ;;  %p9103_p6 = scmp.lt.s32.totalorder %s997_s16, %s997_s16 }
 0x1eb   : > { %p9104_p8 = scmp.lt.s32.totalorder %s9102_s22, %s9095_s26 }
 0x1ec   : > { %p9098_p1 = pnand %p9096_p3, %p9758_p7 }
 0x1ed   : > { %p9105_p9 = por %p9104_p8, %p9103_p6 }
 0x1ee   : > { %p9099_p4 = pneg %p9098_p1 }
 0x1f0   : > { %p9106_p10 = pnand %p9105_p9, %p9099_p4 }
 0x1f2   : > { %9109 = shalt.err (!%p9106_p10)
}
 0x1f3   : > { %s10748_s4 = sld [smem:[#allocation69_spill]] }
 0x1f4   : > { %7847 = dma.hbm_to_vmem [thread:$0]  (!%p9746_p5), %s10747_s1, 16, %s997_s16, [#allocation14]  }
 0x1f9   : > { %s9110_s3 = scalar_lea.hbm %s10748_s4, 32 }
 0x1fa   : > { %p9111_p11 = scmp.ne.s32.totalorder %s10748_s4, %s9110_s3  ;;  %p9117_p13 = scmp.lt.u32.totalorder %s9110_s3, %s10748_s4 }
 0x1fc   : > { %p9113_p12 = pnand %p9111_p11, %p9758_p7 }
 0x1fe   : > { %p9114_p2 = pneg %p9113_p12 }
 0x200   : > { %p9119_p0 = pnand %p9117_p13, %p9114_p2 }
 0x202   : > { %9122 = shalt.err (!%p9119_p0)
}
 0x203   : > { %s9123_s11 = scalar_lea.vmem %s9985_s6, 32  ;;  %p9131_p6 = scmp.lt.s32.totalorder %s9985_s6, %s9985_s6 }
 0x204   : > { %p9124_p3 = scmp.ne.s32.totalorder %s9985_s6, %s9123_s11  ;;  %p9132_p8 = scmp.lt.s32.totalorder %s9123_s11, %s9123_s11 }
 0x206   : > { %p9126_p1 = pnand %p9124_p3, %p9758_p7  ;;  %p9133_p9 = por %p9132_p8, %p9131_p6 }
 0x208   : > { %p9127_p4 = pneg %p9126_p1 }
 0x20a   : > { %p9134_p10 = pnand %p9133_p9, %p9127_p4 }
 0x20c   : > { %9137 = shalt.err (!%p9134_p10)
}
 0x20d   : > { %s10749_s16 = sld [smem:[#allocation71_spill]]  ;;  %s9519_s26 = smov [#allocation21]  }
 0x20e   : > { %7853 = dma.hbm_to_vmem [thread:$0]  (!%p9746_p5), %s10748_s4, 32, %s9985_s6, [#allocation17]  }
 0x20f   : > { %s1043_s22 = sshll.u32 %s9519_s26, 4  ;;  %s9520_s3 = smov [#allocation24]   ;;  %s1044_s22 = int_to_ptr.vmem [resolvable:$true] %s1043_s22 }
 0x210   : > { %s1069_s1 = sshll.u32 %s9520_s3, 4  ;;  %s10012_s1 = int_to_ptr.vmem [resolvable:$true] %s1069_s1 }
 0x213   : > { %s9138_s11 = scalar_lea.hbm %s10749_s16, 32 }
 0x214   : > { %p9139_p11 = scmp.ne.s32.totalorder %s10749_s16, %s9138_s11  ;;  %p9145_p13 = scmp.lt.u32.totalorder %s9138_s11, %s10749_s16 }
 0x216   : > { %p9141_p12 = pnand %p9139_p11, %p9758_p7 }
 0x218   : > { %p9142_p2 = pneg %p9141_p12 }
 0x21a   : > { %p9147_p0 = pnand %p9145_p13, %p9142_p2 }
 0x21c   : > { %9150 = shalt.err (!%p9147_p0)
}
 0x21d   : > { %s9151_s9 = scalar_lea.vmem %s1044_s22, 32  ;;  %p9159_p6 = scmp.lt.s32.totalorder %s1044_s22, %s1044_s22 }
 0x21e   : > { %p9152_p3 = scmp.ne.s32.totalorder %s1044_s22, %s9151_s9  ;;  %p9160_p8 = scmp.lt.s32.totalorder %s9151_s9, %s9151_s9 }
 0x220   : > { %p9154_p1 = pnand %p9152_p3, %p9758_p7  ;;  %p9161_p9 = por %p9160_p8, %p9159_p6 }
 0x222   : > { %p9155_p4 = pneg %p9154_p1 }
 0x224   : > { %p9162_p10 = pnand %p9161_p9, %p9155_p4 }
 0x226   : > { %9165 = shalt.err (!%p9162_p10)
}
 0x227   : > { %s10750_s6 = sld [smem:[#allocation74_spill]] }
 0x228   : > { %7859 = dma.hbm_to_vmem [thread:$0]  (!%p9746_p5), %s10749_s16, 32, %s1044_s22, [#allocation20]  }
 0x22d   : > { %s9166_s26 = scalar_lea.hbm %s10750_s6, 3072 }
 0x22e   : > { %p9167_p11 = scmp.ne.s32.totalorder %s10750_s6, %s9166_s26  ;;  %p9173_p13 = scmp.lt.u32.totalorder %s9166_s26, %s10750_s6 }
 0x230   : > { %p9169_p12 = pnand %p9167_p11, %p9758_p7 }
 0x232   : > { %p9170_p2 = pneg %p9169_p12 }
 0x234   : > { %p9175_p0 = pnand %p9173_p13, %p9170_p2 }
 0x236   : > { %9178 = shalt.err (!%p9175_p0)
}
 0x237   : > { %s9179_s9 = scalar_lea.vmem %s10012_s1, 3072  ;;  %p9187_p6 = scmp.lt.s32.totalorder %s10012_s1, %s10012_s1 }
 0x238   : > { %p9180_p3 = scmp.ne.s32.totalorder %s10012_s1, %s9179_s9  ;;  %p9188_p8 = scmp.lt.s32.totalorder %s9179_s9, %s9179_s9 }
 0x23a   : > { %p9182_p1 = pnand %p9180_p3, %p9758_p7  ;;  %p9189_p9 = por %p9188_p8, %p9187_p6 }
 0x23c   : > { %p9183_p4 = pneg %p9182_p1 }
 0x23e   : > { %p9190_p10 = pnand %p9189_p9, %p9183_p4 }
 0x240   : > { %9193 = shalt.err (!%p9190_p10)
}
 0x241   : > { %s10751_s22 = smov 4   ;;  %s10752_s3 = smov 64  }
 0x242   : > { %s10753_s11 = sld [smem:[#allocation76_spill]]  ;;  %s9521_s26 = smov [#allocation27]  }
 0x243   : > { %7865 = dma.hbm_to_vmem [thread:$0]  (!%p9746_p5), %s10750_s6, 3072, %s10012_s1, [#allocation23], %s10752_s3, %s10752_s3, %s10751_s22  }
 0x244   : > { %s1098_s4 = sshll.u32 %s9521_s26, 4  ;;  %s9522_s10 = smov [#allocation30]   ;;  %s1099_s4 = int_to_ptr.vmem [resolvable:$true] %s1098_s4 }
 0x245   : > { %s1124_s12 = sshll.u32 %s9522_s10, 4  ;;  %s10042_s12 = int_to_ptr.vmem [resolvable:$true] %s1124_s12 }
 0x248   : > { %s9194_s9 = scalar_lea.hbm %s10753_s11, 12288 }
 0x249   : > { %p9195_p11 = scmp.ne.s32.totalorder %s10753_s11, %s9194_s9  ;;  %p9201_p13 = scmp.lt.u32.totalorder %s9194_s9, %s10753_s11 }
 0x24b   : > { %p9197_p12 = pnand %p9195_p11, %p9758_p7 }
 0x24d   : > { %p9198_p2 = pneg %p9197_p12 }
 0x24f   : > { %p9203_p0 = pnand %p9201_p13, %p9198_p2 }
 0x251   : > { %9206 = shalt.err (!%p9203_p0)
}
 0x252   : > { %s9207_s13 = scalar_lea.vmem %s1099_s4, 12288  ;;  %p9215_p6 = scmp.lt.s32.totalorder %s1099_s4, %s1099_s4 }
 0x253   : > { %p9208_p3 = scmp.ne.s32.totalorder %s1099_s4, %s9207_s13  ;;  %p9216_p8 = scmp.lt.s32.totalorder %s9207_s13, %s9207_s13 }
 0x255   : > { %p9210_p1 = pnand %p9208_p3, %p9758_p7  ;;  %p9217_p9 = por %p9216_p8, %p9215_p6 }
 0x257   : > { %p9211_p4 = pneg %p9210_p1 }
 0x259   : > { %p9218_p10 = pnand %p9217_p9, %p9211_p4 }
 0x25b   : > { %9221 = shalt.err (!%p9218_p10)
}
 0x25c   : > { %s10754_s10 = smov 8   ;;  %s10755_s1 = smov 128  }
 0x25d   : > { %s10756_s22 = sld [smem:[#allocation77_spill]] }
 0x25e   : > { %7871 = dma.hbm_to_vmem [thread:$0]  (!%p9746_p5), %s10753_s11, 12288, %s1099_s4, [#allocation26], %s10755_s1, %s10755_s1, %s10754_s10  }
 0x263   : > { %s9222_s3 = scalar_lea.hbm %s10756_s22, 2048 }
 0x264   : > { %p9223_p11 = scmp.ne.s32.totalorder %s10756_s22, %s9222_s3  ;;  %p9229_p13 = scmp.lt.u32.totalorder %s9222_s3, %s10756_s22 }
 0x266   : > { %p9225_p12 = pnand %p9223_p11, %p9758_p7 }
 0x268   : > { %p9226_p2 = pneg %p9225_p12 }
 0x26a   : > { %p9231_p0 = pnand %p9229_p13, %p9226_p2 }
 0x26c   : > { %9234 = shalt.err (!%p9231_p0)
}
 0x26d   : > { %s9235_s13 = scalar_lea.vmem %s10042_s12, 2048  ;;  %p9243_p6 = scmp.lt.s32.totalorder %s10042_s12, %s10042_s12 }
 0x26e   : > { %p9236_p3 = scmp.ne.s32.totalorder %s10042_s12, %s9235_s13  ;;  %p9244_p8 = scmp.lt.s32.totalorder %s9235_s13, %s9235_s13 }
 0x270   : > { %p9238_p1 = pnand %p9236_p3, %p9758_p7  ;;  %p9245_p9 = por %p9244_p8, %p9243_p6 }
 0x272   : > { %p9239_p4 = pneg %p9238_p1 }
 0x274   : > { %p9246_p10 = pnand %p9245_p9, %p9239_p4 }
 0x276   : > { %9249 = shalt.err (!%p9246_p10)
}
 0x277   : > { %s10757_s4 = sld [smem:[#allocation78_spill]]  ;;  %s9523_s26 = smov [#allocation33]  }
 0x278   : > { %7877 = dma.hbm_to_vmem [thread:$0]  (!%p9746_p5), %s10756_s22, 2048, %s10042_s12, [#allocation29], %s10755_s1, %s10755_s1, %s10754_s10  }
 0x279   : > { %s1150_s9 = sshll.u32 %s9523_s26, 4  ;;  %s9524_s3 = smov [#allocation36]   ;;  %s1151_s9 = int_to_ptr.vmem [resolvable:$true] %s1150_s9 }
 0x27a   : > { %s1175_s6 = sshll.u32 %s9524_s3, 4  ;;  %s10075_s6 = int_to_ptr.vmem [resolvable:$true] %s1175_s6 }
 0x27d   : > { %s9250_s13 = scalar_lea.hbm %s10757_s4, 256 }
 0x27e   : > { %p9251_p11 = scmp.ne.s32.totalorder %s10757_s4, %s9250_s13  ;;  %p9257_p13 = scmp.lt.u32.totalorder %s9250_s13, %s10757_s4 }
 0x280   : > { %p9253_p12 = pnand %p9251_p11, %p9758_p7 }
 0x282   : > { %p9254_p2 = pneg %p9253_p12 }
 0x284   : > { %p9259_p0 = pnand %p9257_p13, %p9254_p2 }
 0x286   : > { %9262 = shalt.err (!%p9259_p0)
}
 0x287   : > { %s9263_s11 = scalar_lea.vmem %s1151_s9, 256  ;;  %p9271_p6 = scmp.lt.s32.totalorder %s1151_s9, %s1151_s9 }
 0x288   : > { %p9264_p3 = scmp.ne.s32.totalorder %s1151_s9, %s9263_s11  ;;  %p9272_p8 = scmp.lt.s32.totalorder %s9263_s11, %s9263_s11 }
 0x28a   : > { %p9266_p1 = pnand %p9264_p3, %p9758_p7  ;;  %p9273_p9 = por %p9272_p8, %p9271_p6 }
 0x28c   : > { %p9267_p4 = pneg %p9266_p1 }
 0x28e   : > { %p9274_p10 = pnand %p9273_p9, %p9267_p4 }
 0x290   : > { %9277 = shalt.err (!%p9274_p10)
}
 0x291   : > { %s10758_s12 = sld [smem:[#allocation80_spill]] }
 0x292   : > { %7883 = dma.hbm_to_vmem [thread:$0]  (!%p9746_p5), %s10757_s4, 256, %s1151_s9, [#allocation32], %s10755_s1, %s10755_s1, %s10754_s10  }
 0x297   : > { %s9278_s26 = scalar_lea.hbm %s10758_s12, 128 }
 0x298   : > { %p9279_p11 = scmp.ne.s32.totalorder %s10758_s12, %s9278_s26  ;;  %p9285_p13 = scmp.lt.u32.totalorder %s9278_s26, %s10758_s12 }
 0x29a   : > { %p9281_p12 = pnand %p9279_p11, %p9758_p7 }
 0x29c   : > { %p9282_p2 = pneg %p9281_p12 }
 0x29e   : > { %p9287_p0 = pnand %p9285_p13, %p9282_p2 }
 0x2a0   : > { %9290 = shalt.err (!%p9287_p0)
}
 0x2a1   : > { %s9291_s11 = scalar_lea.vmem %s10075_s6, 128  ;;  %p9299_p6 = scmp.lt.s32.totalorder %s10075_s6, %s10075_s6 }
 0x2a2   : > { %p9292_p3 = scmp.ne.s32.totalorder %s10075_s6, %s9291_s11  ;;  %p9300_p8 = scmp.lt.s32.totalorder %s9291_s11, %s9291_s11 }
 0x2a4   : > { %p9294_p1 = pnand %p9292_p3, %p9758_p7  ;;  %p9301_p9 = por %p9300_p8, %p9299_p6 }
 0x2a6   : > { %p9295_p4 = pneg %p9294_p1 }
 0x2a8   : > { %p9302_p10 = pnand %p9301_p9, %p9295_p4 }
 0x2aa   : > { %9305 = shalt.err (!%p9302_p10)
}
 0x2ab   : > { %s10759_s10 = sld [smem:[#allocation81_spill]]  ;;  %s9525_s1 = smov [#allocation39]  }
 0x2ac   : > { %7889 = dma.hbm_to_vmem [thread:$0]  (!%p9746_p5), %s10758_s12, 128, %s10075_s6, [#allocation35]  }
 0x2ad   : > { %s1197_s9 = sshll.u32 %s9525_s1, 4  ;;  %s9526_s3 = smov [#allocation42]   ;;  %s1198_s9 = int_to_ptr.vmem [resolvable:$true] %s1197_s9 }
 0x2ae   : > { %s1226_s13 = sshll.u32 %s9526_s3, 4  ;;  %s10105_s13 = int_to_ptr.vmem [resolvable:$true] %s1226_s13 }
 0x2b1   : > { %s9306_s26 = scalar_lea.hbm %s10759_s10, 128 }
 0x2b2   : > { %p9307_p11 = scmp.ne.s32.totalorder %s10759_s10, %s9306_s26  ;;  %p9313_p13 = scmp.lt.u32.totalorder %s9306_s26, %s10759_s10 }
 0x2b4   : > { %p9309_p12 = pnand %p9307_p11, %p9758_p7 }
 0x2b6   : > { %p9310_p2 = pneg %p9309_p12 }
 0x2b8   : > { %p9315_p0 = pnand %p9313_p13, %p9310_p2 }
 0x2ba   : > { %9318 = shalt.err (!%p9315_p0)
}
 0x2bb   : > { %s9319_s11 = scalar_lea.vmem %s1198_s9, 128  ;;  %p9327_p6 = scmp.lt.s32.totalorder %s1198_s9, %s1198_s9 }
 0x2bc   : > { %p9320_p3 = scmp.ne.s32.totalorder %s1198_s9, %s9319_s11  ;;  %p9328_p8 = scmp.lt.s32.totalorder %s9319_s11, %s9319_s11 }
 0x2be   : > { %p9322_p1 = pnand %p9320_p3, %p9758_p7  ;;  %p9329_p9 = por %p9328_p8, %p9327_p6 }
 0x2c0   : > { %p9323_p4 = pneg %p9322_p1 }
 0x2c2   : > { %p9330_p10 = pnand %p9329_p9, %p9323_p4 }
 0x2c4   : > { %9333 = shalt.err (!%p9330_p10)
}
 0x2c5   : > { %7895 = dma.hbm_to_vmem [thread:$0]  (!%p9746_p5), %s10759_s10, 128, %s1198_s9, [#allocation38]  }
 0x2c6   : > { %s9334_s6 = scalar_lea.hbm %s9706_s5, 512 }
 0x2c7   : > { %p9335_p11 = scmp.ne.s32.totalorder %s9706_s5, %s9334_s6  ;;  %p9341_p13 = scmp.lt.u32.totalorder %s9334_s6, %s9706_s5 }
 0x2c9   : > { %p9337_p12 = pnand %p9335_p11, %p9758_p7 }
 0x2cb   : > { %p9338_p2 = pneg %p9337_p12 }
 0x2cd   : > { %p9343_p0 = pnand %p9341_p13, %p9338_p2 }
 0x2cf   : > { %9346 = shalt.err (!%p9343_p0)
}
 0x2d0   : > { %s9347_s1 = scalar_lea.vmem %s10105_s13, 512  ;;  %p9355_p6 = scmp.lt.s32.totalorder %s10105_s13, %s10105_s13 }
 0x2d1   : > { %p9348_p3 = scmp.ne.s32.totalorder %s10105_s13, %s9347_s1  ;;  %p9356_p8 = scmp.lt.s32.totalorder %s9347_s1, %s9347_s1 }
 0x2d3   : > { %p9350_p1 = pnand %p9348_p3, %p9758_p7  ;;  %p9357_p9 = por %p9356_p8, %p9355_p6 }
 0x2d5   : > { %p9351_p4 = pneg %p9350_p1 }
 0x2d7   : > { %p9358_p10 = pnand %p9357_p9, %p9351_p4 }
 0x2d9   : > { %9361 = shalt.err (!%p9358_p10)
}
 0x2da   : > { %s10760_s9 = smov 16   ;;  %s10761_s3 = smov 256  }
 0x2db   : > { %7901 = dma.hbm_to_vmem [thread:$0]  (!%p9746_p5), %s9706_s5, 512, %s10105_s13, [#allocation41], %s10761_s3, %s10761_s3, %s10760_s9  }
 0x2dc   : > { %s9527_s26 = smov [#allocation43]   ;;  %s9362_s6 = scalar_lea.hbm %s9716_s21, 32 }
 0x2dd   : > { %s1243_s11 = sshll.u32 %s9527_s26, 4  ;;  %p9363_p11 = scmp.ne.s32.totalorder %s9716_s21, %s9362_s6  ;;  %s1244_s11 = int_to_ptr.vmem [resolvable:$true] %s1243_s11 }
 0x2de   : > { %p9369_p13 = scmp.lt.u32.totalorder %s9362_s6, %s9716_s21 }
 0x2df   : > { %p9365_p12 = pnand %p9363_p11, %p9758_p7 }
 0x2e1   : > { %p9366_p2 = pneg %p9365_p12 }
 0x2e3   : > { %p9371_p0 = pnand %p9369_p13, %p9366_p2 }
 0x2e5   : > { %9374 = shalt.err (!%p9371_p0)
}
 0x2e6   : > { %s9375_s1 = scalar_lea.vmem %s1244_s11, 32  ;;  %p9383_p6 = scmp.lt.s32.totalorder %s1244_s11, %s1244_s11 }
 0x2e7   : > { %p9376_p3 = scmp.ne.s32.totalorder %s1244_s11, %s9375_s1  ;;  %p9384_p8 = scmp.lt.s32.totalorder %s9375_s1, %s9375_s1 }
 0x2e9   : > { %p9378_p1 = pnand %p9376_p3, %p9758_p7  ;;  %p9385_p9 = por %p9384_p8, %p9383_p6 }
 0x2eb   : > { %p9379_p4 = pneg %p9378_p1 }
 0x2ed   : > { %p9386_p10 = pnand %p9385_p9, %p9379_p4 }
 0x2ef   : > { %9389 = shalt.err (!%p9386_p10)
}
 0x2f0   : > { %7904 = dma.hbm_to_vmem [thread:$0]  (!%p9746_p5), %s9716_s21, 32, %s1244_s11, [#allocation44]  }
 0x2f1   : > { %p10762_p11 = scmp.ne.s32.totalorder %s10741_s7, 0 }
 0x2f2   : > { %p10763_p12 = scmp.eq.s32.totalorder (!%p10762_p11), %s9729_s2, 0 }
 0x2f3   : > { %1271 = sbr.rel (%p10762_p11) target bundleno = 4898 (0x1322), region = 164 }
 0x2fa   : > { %9395 = dma.done.wait (%p10763_p12), [#allocation3], 16   ;;  %p10764_p2 = pmov %p10763_p12 }
 0x2fc   : > { %9397 = vsyncadd (%p10764_p2), [#allocation3], 4294967280  ;;  %p10765_p7 = pmov %p10764_p2 }
 0x2fd   : > { %p10766_p13 = pmov %p10764_p2 }
 0x2fe   : > { %9399 = dma.done.wait (%p10765_p7), [#allocation5], 32  }
 0x2ff   : > { %9401 = vsyncadd (%p10766_p13), [#allocation5], 4294967264  ;;  %p10767_p0 = pmov %p10764_p2 }
 0x301   : > { %9403 = dma.done.wait (%p10767_p0), [#allocation8], 32   ;;  %p10768_p5 = pmov %p10767_p0 }
 0x302   : > { %p10769_p3 = pmov %p10767_p0 }
 0x303   : > { %9405 = vsyncadd (%p10768_p5), [#allocation8], 4294967264 }
 0x304   : > { %9407 = dma.done.wait (%p10769_p3), [#allocation11], 32   ;;  %p10770_p1 = pmov %p10767_p0 }
 0x305   : > { %p10771_p4 = pmov %p10767_p0 }
 0x306   : > { %9409 = vsyncadd (%p10770_p1), [#allocation11], 4294967264 }
 0x307   : > { %9411 = dma.done.wait (%p10771_p4), [#allocation14], 32   ;;  %p10772_p6 = pmov %p10767_p0 }
 0x308   : > { %p10773_p8 = pmov %p10767_p0 }
 0x309   : > { %9413 = vsyncadd (%p10772_p6), [#allocation14], 4294967264 }
 0x30a   : > { %9415 = dma.done.wait (%p10773_p8), [#allocation17], 64   ;;  %p10774_p9 = pmov %p10767_p0 }
 0x30b   : > { %p10775_p10 = pmov %p10767_p0 }
 0x30c   : > { %9417 = vsyncadd (%p10774_p9), [#allocation17], 4294967232 }
 0x30d   : > { %9419 = dma.done.wait (%p10775_p10), [#allocation20], 64   ;;  %p10776_p11 = pmov %p10767_p0 }
 0x30e   : > { %p10777_p12 = pmov %p10767_p0 }
 0x30f   : > { %9421 = vsyncadd (%p10776_p11), [#allocation20], 4294967232 }
 0x310   : > { %9423 = dma.done.wait (%p10777_p12), [#allocation23], 6144   ;;  %p10778_p2 = pmov %p10767_p0 }
 0x311   : > { %p10779_p7 = pmov %p10767_p0 }
 0x312   : > { %9425 = vsyncadd (%p10778_p2), [#allocation23], 4294961152 }
 0x313   : > { %9427 = dma.done.wait (%p10779_p7), [#allocation26], 18432   ;;  %p10780_p13 = pmov %p10767_p0 }
 0x315   : > { %9429 = vsyncadd (%p10780_p13), [#allocation26], 4294948864 }
 0x316   : > { %9431 = dma.done.wait (%p10767_p0), [#allocation29], 6144   ;;  %p10781_p5 = pmov %p10767_p0 }
 0x317   : > { %p10782_p3 = pmov %p10767_p0 }
 0x318   : > { %9433 = vsyncadd (%p10781_p5), [#allocation29], 4294961152 }
 0x319   : > { %9435 = dma.done.wait (%p10782_p3), [#allocation32], 512   ;;  %p10783_p1 = pmov %p10767_p0 }
 0x31a   : > { %p10784_p4 = pmov %p10767_p0 }
 0x31b   : > { %9437 = vsyncadd (%p10783_p1), [#allocation32], 4294966784 }
 0x31c   : > { %9439 = dma.done.wait (%p10784_p4), [#allocation35], 256   ;;  %p10785_p6 = pmov %p10767_p0 }
 0x31d   : > { %p10786_p8 = pmov %p10767_p0 }
 0x31e   : > { %9441 = vsyncadd (%p10785_p6), [#allocation35], 4294967040 }
 0x31f   : > { %9443 = dma.done.wait (%p10786_p8), [#allocation38], 256   ;;  %p10787_p9 = pmov %p10767_p0 }
 0x320   : > { %p10788_p10 = pmov %p10767_p0 }
 0x321   : > { %9445 = vsyncadd (%p10787_p9), [#allocation38], 4294967040 }
 0x322   : > { %9447 = dma.done.wait (%p10788_p10), [#allocation41], 4608   ;;  %p10789_p11 = pmov %p10767_p0 }
 0x323   : > { %p10790_p12 = pmov %p10767_p0 }
 0x324   : > { %9449 = vsyncadd (%p10789_p11), [#allocation41], 4294962688 }
 0x325   : > { %9451 = dma.done.wait (%p10790_p12), [#allocation44], 32   ;;  %p10791_p2 = pmov %p10767_p0 }
 0x326   : > { %s10792_s7 = sld [smem:[#allocation60_spill]]  ;;  %p1473_p7 = scmp.lt.s32.totalorder %s9729_s2, 1  ;;  %vm1513_vm0 = vcmask 130048   ;;  %v6887_v2 = vld [vmem:[#allocation2] ss:$0 sm:$0xff]  ;;  %v1595_v7 = vld [vmem:[#allocation33] sm:$0xff] }
 0x327   : > { %9453 = vsyncadd (%p10791_p2), [#allocation44], 4294967264  ;;  %s10793_s13 = sld [smem:[#allocation72_spill]]  ;;  %v6888_v5 = vld [vmem:[#allocation4] ss:$0 sm:$0xff]  ;;  %v1511_v6 = vld [vmem:[#allocation31] sm:$0xff]  ;;  %7456 = vmatprep.mubr.msk.f32.mxu1 %vm1513_vm0, %v1595_v7 }
 0x328   : > { %s10800_s2 = smov (!%p1473_p7, %s9729_s2), 1  ;;  %7449 = vmatprep.mubr.msk.f32.mxu0 %vm1513_vm0, %v1511_v6  ;;  %v1512_v14 = vld [vmem:[#allocation31 + $0x8] sm:$0xff]  ;;  %v1596_v15 = vld [vmem:[#allocation33 + $0x8] sm:$0xff]  ;;  %v9528_v57 = vmov 0   ;;  %s10794_s9 = sld [smem:[#allocation61_spill]]  ;;  %v9529_v6 = vmov 0.0|0.0  }
 0x329   : > { %s7311_s18 = sshll.u32 %s10800_s2, 4  ;;  %vm9530_vm1 = vmmov 0   ;;  %v9531_v7 = vmov 0.0   ;;  %s6884_s3 = sshll.u32 %s10800_s2, 3  ;;  %vm2224_vm2 = vcmask 64512   ;;  %vm6275_vm3 = vcmask 1041408  }
 0x32a   : > { %s10795_s11 = sld [smem:[#allocation82_spill]]  ;;  %s10796_s6 = sld [smem:[#allocation68_spill]]  ;;  %vm6271_vm4 = vcmask 15360  }
 0x32b   : > { %s10797_s1 = sld [smem:[#allocation75_spill]] }
 0x32c   : > { %s10213_s0 = scalar_lea.vmem %s10792_s7, %s7311_s18  ;;  %s10798_s7 = sld [smem:[#allocation84_spill]] }
 0x32d   : > { %v1488_v0 = vld [vmem:[%s10213_s0] sm:$0xff]  ;;  %v1489_v1 = vld [vmem:[%s10213_s0 + $0x8] sm:$0xff]  ;;  %v8049_v17 = vld [vmem:[%s10793_s13 + $0x14] ss:$8 sps:$4 sm:$0xff]   ;;  %s7312_s18 = sshll.u32 %s10800_s2, 5 }
 0x32e   : > { %v1498_v3 = vmul.f32 %v6887_v2, %v1488_v0  ;;  %v1499_v4 = vmul.f32 %v6887_v2, %v1489_v1  ;;  %v8046_v13 = vld [vmem:[%s10793_s13 + $0x4] ss:$8 sps:$4 sm:$0xff]   ;;  %v8044_v16 = vld [vmem:[%s10793_s13] ss:$8 sps:$4 sm:$0xff]   ;;  %v8047_v18 = vld [vmem:[%s10793_s13 + $0x10] ss:$8 sps:$4 sm:$0xff]   ;;  %s1481_s26 = scalar_lea.vmem %s10794_s9, %s6884_s3 }
 0x32f   : > { %v8052_v19 = vld [vmem:[%s10793_s13 + $0x24] ss:$8 sps:$4 sm:$0xff]   ;;  %v8050_v20 = vld [vmem:[%s10793_s13 + $0x20] ss:$8 sps:$4 sm:$0xff]   ;;  %v8055_v21 = vld [vmem:[%s10793_s13 + $0x34] ss:$8 sps:$4 sm:$0xff]  }
 0x330   : > { %v1507_v8 = vadd.f32 %v6888_v5, %v1498_v3  ;;  %v1508_v9 = vadd.f32 %v6888_v5, %v1499_v4  ;;  %v8053_v22 = vld [vmem:[%s10793_s13 + $0x30] ss:$8 sps:$4 sm:$0xff]   ;;  %v8058_v23 = vld [vmem:[%s10793_s13 + $0x44] ss:$8 sps:$4 sm:$0xff]   ;;  %v8056_v24 = vld [vmem:[%s10793_s13 + $0x40] ss:$8 sps:$4 sm:$0xff]  }
 0x331   : > { %v8061_v25 = vld [vmem:[%s10793_s13 + $0x54] ss:$8 sps:$4 sm:$0xff]   ;;  %v8059_v26 = vld [vmem:[%s10793_s13 + $0x50] ss:$8 sps:$4 sm:$0xff]   ;;  %v8064_v27 = vld [vmem:[%s10793_s13 + $0x64] ss:$8 sps:$4 sm:$0xff]  }
 0x332   : > { %v1509_v10 = vmax.f32 %v1507_v8, 0.0  ;;  %v1510_v11 = vmax.f32 %v1508_v9, 0.0  ;;  %v8062_v28 = vld [vmem:[%s10793_s13 + $0x60] ss:$8 sps:$4 sm:$0xff]   ;;  %v8067_v29 = vld [vmem:[%s10793_s13 + $0x74] ss:$8 sps:$4 sm:$0xff]  }
 0x333   : > { %v8065_v30 = vld [vmem:[%s10793_s13 + $0x70] ss:$8 sps:$4 sm:$0xff]   ;;  %v8070_v31 = vld [vmem:[%s10793_s13 + $0x84] ss:$8 sps:$4 sm:$0xff]   ;;  %v8068_v32 = vld [vmem:[%s10793_s13 + $0x80] ss:$8 sps:$4 sm:$0xff]  }
 0x334   : > { %v7559_v12 = vpack.c.bf16 %v1510_v11, %v1509_v10  ;;  %v8073_v33 = vld [vmem:[%s10793_s13 + $0x94] ss:$8 sps:$4 sm:$0xff]   ;;  %v8071_v34 = vld [vmem:[%s10793_s13 + $0x90] ss:$8 sps:$4 sm:$0xff]   ;;  %v8076_v35 = vld [vmem:[%s10793_s13 + $0xa4] ss:$8 sps:$4 sm:$0xff]  }
 0x335   : > { %v8074_v36 = vld [vmem:[%s10793_s13 + $0xa0] ss:$8 sps:$4 sm:$0xff]   ;;  %v8079_v37 = vld [vmem:[%s10793_s13 + $0xb4] ss:$8 sps:$4 sm:$0xff]   ;;  %v8077_v38 = vld [vmem:[%s10793_s13 + $0xb0] ss:$8 sps:$4 sm:$0xff]  }
 0x336   : > { %7560 = vmatprep.subr.bf16.mxu0 %v7559_v12  ;;  %7564 = vmatprep.subr.bf16.mxu1 %v7559_v12  ;;  %v8082_v39 = vld [vmem:[%s10793_s13 + $0xc4] ss:$8 sps:$4 sm:$0xff]   ;;  %v8080_v40 = vld [vmem:[%s10793_s13 + $0xc0] ss:$8 sps:$4 sm:$0xff]   ;;  %v8085_v41 = vld [vmem:[%s10793_s13 + $0xd4] ss:$8 sps:$4 sm:$0xff]  }
 0x337   : > { %7562 = vmatpush3.bf16.msra.mxu0 %v7559_v12  ;;  %7566 = vmatpush3.bf16.msra.mxu1 %v7559_v12  ;;  %v8083_v42 = vld [vmem:[%s10793_s13 + $0xd0] ss:$8 sps:$4 sm:$0xff]   ;;  %v8088_v43 = vld [vmem:[%s10793_s13 + $0xe4] ss:$8 sps:$4 sm:$0xff]   ;;  %v8086_v44 = vld [vmem:[%s10793_s13 + $0xe0] ss:$8 sps:$4 sm:$0xff]  }
 0x338   : > { %1969 = vmatprep.subr.bf16.mxu0 %v8046_v13  ;;  %v8091_v45 = vld [vmem:[%s10793_s13 + $0xf4] ss:$8 sps:$4 sm:$0xff]   ;;  %v8089_v46 = vld [vmem:[%s10793_s13 + $0xf0] ss:$8 sps:$4 sm:$0xff]   ;;  %v8094_v47 = vld [vmem:[%s10793_s13 + $0x104] ss:$8 sps:$4 sm:$0xff]   ;;  %7567 = vmatprep.subr.bf16.mxu1 %v9529_v6 }
 0x339   : > { %v8092_v51 = vld [vmem:[%s10793_s13 + $0x100] ss:$8 sps:$4 sm:$0xff]   ;;  %v8097_v54 = vld [vmem:[%s10793_s13 + $0x114] ss:$8 sps:$4 sm:$0xff]   ;;  %v8095_v56 = vld [vmem:[%s10793_s13 + $0x110] ss:$8 sps:$4 sm:$0xff]  }
 0x33a   : > { %7450 = vmatmul.mubr.msk.f32.vlgmr.msra.gmra.mrb[0].mxu0 %vm1513_vm0, %v1512_v14  ;;  %7457 = vmatmul.mubr.msk.f32.vlgmr.msra.gmra.mrb[0].mxu1 %vm1513_vm0, %v1596_v15  ;;  %v8100_v58 = vld [vmem:[%s10793_s13 + $0x124] ss:$8 sps:$4 sm:$0xff]   ;;  %v8098_v59 = vld [vmem:[%s10793_s13 + $0x120] ss:$8 sps:$4 sm:$0xff]   ;;  %v8103_v60 = vld [vmem:[%s10793_s13 + $0x134] ss:$8 sps:$4 sm:$0xff]  }
 0x33b   : > { %1970 = vmatpush1.bf16.msra.mxu0 %v8044_v16  ;;  %2001 = vmatprep.mubr.bf16.mxu0 %v7559_v12  ;;  %v8101_v61 = vld [vmem:[%s10793_s13 + $0x130] ss:$8 sps:$4 sm:$0xff]   ;;  %v8106_v62 = vld [vmem:[%s10793_s13 + $0x144] ss:$8 sps:$4 sm:$0xff]   ;;  %v8104_v63 = vld [vmem:[%s10793_s13 + $0x140] ss:$8 sps:$4 sm:$0xff]  }
 0x33c   : > { %1971 = vmatprep.subr.bf16.mxu0 %v8049_v17  ;;  %v8109_v0 = vld [vmem:[%s10793_s13 + $0x154] ss:$8 sps:$4 sm:$0xff]   ;;  %v8107_v1 = vld [vmem:[%s10793_s13 + $0x150] ss:$8 sps:$4 sm:$0xff]   ;;  %v8112_v2 = vld [vmem:[%s10793_s13 + $0x164] ss:$8 sps:$4 sm:$0xff]   ;;  %7463 = vmatprep.mubr.msk.f32.mxu1 %vm9530_vm1, %v9531_v7 }
 0x33d   : > { %v8110_v3 = vld [vmem:[%s10793_s13 + $0x160] ss:$8 sps:$4 sm:$0xff]   ;;  %v8115_v4 = vld [vmem:[%s10793_s13 + $0x174] ss:$8 sps:$4 sm:$0xff]   ;;  %v8113_v5 = vld [vmem:[%s10793_s13 + $0x170] ss:$8 sps:$4 sm:$0xff]  }
 0x33e   : > { %v10278_v10 = vld [vmem:[%s1481_s26] sm:$0xff] }
 0x33f   : > { %1972 = vmatpush1.bf16.msra.mxu0 %v8047_v18  ;;  %v6943_v11 = vld [vmem:[#allocation6] ss:$0 sm:$0xff]  ;;  %v6944_v17 = vld [vmem:[#allocation7] ss:$0 sm:$0xff] }
 0x340   : > { %1973 = vmatprep.subr.bf16.mxu0 %v8052_v19  ;;  %v2213_v16 = vmul.f32 %v6943_v11, %v10278_v10  ;;  %v2057_v19 = vld [vmem:[#allocation37] sm:$0xff] }
 0x343   : > { %1974 = vmatpush1.bf16.msra.mxu0 %v8050_v20  ;;  %v2221_v20 = vadd.f32 %v6944_v17, %v2213_v16 }
 0x344   : > { %1975 = vmatprep.subr.bf16.mxu0 %v8055_v21  ;;  %v2131_v21 = vld [vmem:[#allocation39] sm:$0xff] }
 0x347   : > { %1976 = vmatpush1.bf16.msra.mxu0 %v8053_v22  ;;  %v2222_v22 = vmax.f32 %v2221_v20, 0.0 }
 0x348   : > { %1977 = vmatprep.subr.bf16.mxu0 %v8058_v23  ;;  %v10289_v23 = vld [vmem:[#allocation34] sm:$0xff] }
 0x34b   : > { %1978 = vmatpush1.bf16.msra.mxu0 %v8056_v24  ;;  %v8116_v24 = vld [vmem:[#allocation22 + $0x40] sm:$0xff]  }
 0x34c   : > { %1979 = vmatprep.subr.bf16.mxu0 %v8061_v25  ;;  %v10296_v25 = vld [vmem:[#allocation36] sm:$0xff] }
 0x34f   : > { %1980 = vmatpush1.bf16.msra.mxu0 %v8059_v26  ;;  %v8117_v26 = vld [vmem:[#allocation22] sm:$0xff]  }
 0x350   : > { %1981 = vmatprep.subr.bf16.mxu0 %v8064_v27  ;;  %v8118_v27 = vld [vmem:[#allocation22 + $0x48] sm:$0xff]  }
 0x353   : > { %1982 = vmatpush1.bf16.msra.mxu0 %v8062_v28  ;;  %v8119_v28 = vld [vmem:[#allocation22 + $0x8] sm:$0xff]  }
 0x354   : > { %1983 = vmatprep.subr.bf16.mxu0 %v8067_v29  ;;  %v8120_v29 = vld [vmem:[#allocation22 + $0x50] sm:$0xff]  }
 0x357   : > { %1984 = vmatpush1.bf16.msra.mxu0 %v8065_v30  ;;  %v8121_v30 = vld [vmem:[#allocation22 + $0x10] sm:$0xff]  }
 0x358   : > { %1985 = vmatprep.subr.bf16.mxu0 %v8070_v31  ;;  %v8122_v31 = vld [vmem:[#allocation22 + $0x58] sm:$0xff]  }
 0x35b   : > { %1986 = vmatpush1.bf16.msra.mxu0 %v8068_v32  ;;  %v8123_v32 = vld [vmem:[#allocation22 + $0x18] sm:$0xff]  }
 0x35c   : > { %1987 = vmatprep.subr.bf16.mxu0 %v8073_v33  ;;  %v8124_v33 = vld [vmem:[#allocation22 + $0x60] sm:$0xff]  }
 0x35f   : > { %1988 = vmatpush1.bf16.msra.mxu0 %v8071_v34  ;;  %v8125_v34 = vld [vmem:[#allocation22 + $0x20] sm:$0xff]  }
 0x360   : > { %1989 = vmatprep.subr.bf16.mxu0 %v8076_v35  ;;  %v8126_v35 = vld [vmem:[#allocation22 + $0x68] sm:$0xff]  }
 0x363   : > { %1990 = vmatpush1.bf16.msra.mxu0 %v8074_v36  ;;  %v8127_v36 = vld [vmem:[#allocation22 + $0x28] sm:$0xff]  }
 0x364   : > { %1991 = vmatprep.subr.bf16.mxu0 %v8079_v37  ;;  %v8128_v37 = vld [vmem:[#allocation22 + $0x70] sm:$0xff]  }
 0x367   : > { %1992 = vmatpush1.bf16.msra.mxu0 %v8077_v38  ;;  %v8129_v38 = vld [vmem:[#allocation22 + $0x30] sm:$0xff]  }
 0x368   : > { %1993 = vmatprep.subr.bf16.mxu0 %v8082_v39  ;;  %v8130_v39 = vld [vmem:[#allocation22 + $0x78] sm:$0xff]  }
 0x36b   : > { %1994 = vmatpush1.bf16.msra.mxu0 %v8080_v40  ;;  %v8131_v40 = vld [vmem:[#allocation22 + $0x38] sm:$0xff]  }
 0x36c   : > { %1995 = vmatprep.subr.bf16.mxu0 %v8085_v41  ;;  %v2373_v41 = vpack.c.bf16 %v2222_v22, %v2222_v22 }
 0x36f   : > { %1996 = vmatpush1.bf16.msra.mxu0 %v8083_v42 }
 0x370   : > { %1997 = vmatprep.subr.bf16.mxu0 %v8088_v43 }
 0x373   : > { %1998 = vmatpush1.bf16.msra.mxu0 %v8086_v44 }
 0x374   : > { %1999 = vmatprep.subr.bf16.mxu0 %v8091_v45 }
 0x377   : > { %2000 = vmatpush1.bf16.msra.mxu0 %v8089_v46 }
 0x378   : > { %2012 = vmatprep.subr.bf16.mxu0 %v8094_v47 }
 0x40d   : > { %v7451_v48 = vpop.f32.mrb[0].mxu0  ;;  %v7458_v49 = vpop.f32.mrb[0].mxu1 }
 0x40e   : > { %v1586_v50 = vpop.f32.mrb[1].mxu0  ;;  %v1669_v52 = vpop.f32.mrb[1].mxu1 }
 0x40f   : > { %v1678_v53 = vpack.c.bf16 %v7451_v48, %v1586_v50  ;;  %v1680_v55 = vpack.c.bf16 %v7458_v49, %v1669_v52  ;;  %v8132_v48 = vld [vmem:[#allocation22 + $0x80] sm:$0xff]  }
 0x411   : > { %2002 = vmatmul.mubr.bf16.vlgmr.msra.gmra.mrb[4].mxu0 %v1678_v53 }
 0x412   : > { %2013 = vmatpush1.bf16.msra.mxu0 %v8092_v51  ;;  %2044 = vmatprep.mubr.bf16.mxu0 %v9528_v57  ;;  %v8133_v51 = vld [vmem:[#allocation22 + $0x88] sm:$0xff]  }
 0x413   : > { %2014 = vmatprep.subr.bf16.mxu0 %v8097_v54  ;;  %v8134_v54 = vld [vmem:[#allocation22 + $0x90] sm:$0xff]  }
 0x416   : > { %2015 = vmatpush1.bf16.msra.mxu0 %v8095_v56  ;;  %v8136_v56 = vld [vmem:[#allocation22 + $0xa0] sm:$0xff]  }
 0x417   : > { %2016 = vmatprep.subr.bf16.mxu0 %v8100_v58  ;;  %v8137_v58 = vld [vmem:[#allocation22 + $0xa8] sm:$0xff]  }
 0x41a   : > { %2017 = vmatpush1.bf16.msra.mxu0 %v8098_v59  ;;  %v8138_v59 = vld [vmem:[#allocation22 + $0xb0] sm:$0xff]  }
 0x41b   : > { %2018 = vmatprep.subr.bf16.mxu0 %v8103_v60  ;;  %v8139_v60 = vld [vmem:[#allocation22 + $0xb8] sm:$0xff]  }
 0x41e   : > { %2019 = vmatpush1.bf16.msra.mxu0 %v8101_v61 }
 0x41f   : > { %2020 = vmatprep.subr.bf16.mxu0 %v8106_v62  ;;  %v8144_v62 = vld [vmem:[#allocation24 + $0x80] sm:$0xff]  }
 0x422   : > { %2021 = vmatpush1.bf16.msra.mxu0 %v8104_v63  ;;  %v8147_v63 = vld [vmem:[#allocation24 + $0x88] sm:$0xff]  }
 0x423   : > { %2022 = vmatprep.subr.bf16.mxu0 %v8109_v0  ;;  %v8150_v0 = vld [vmem:[#allocation24 + $0x90] sm:$0xff]  }
 0x426   : > { %2023 = vmatpush1.bf16.msra.mxu0 %v8107_v1  ;;  %v8153_v1 = vld [vmem:[#allocation24 + $0x98] sm:$0xff]  }
 0x427   : > { %2024 = vmatprep.subr.bf16.mxu0 %v8112_v2  ;;  %v8156_v2 = vld [vmem:[#allocation24 + $0xa0] sm:$0xff]  }
 0x42a   : > { %2025 = vmatpush1.bf16.msra.mxu0 %v8110_v3  ;;  %v8159_v3 = vld [vmem:[#allocation24 + $0xa8] sm:$0xff]  }
 0x42b   : > { %2026 = vmatprep.subr.bf16.mxu0 %v8115_v4 }
 0x42e   : > { %2027 = vmatpush1.bf16.msra.mxu0 %v8113_v5 }
 0x42f   : > { %7513 = vmatprep.subr.bf16.mxu0 %v9531_v7 }
 0x431   : > { %2045 = vmatmul.mubr.bf16.vlgmr.msra.gmra.mrb[4].mxu0 %v1680_v55  ;;  %v8135_v55 = vld [vmem:[#allocation22 + $0x98] sm:$0xff]  }
 0x432   : > { %7529 = vmatprep.mubr.msk.bf16.mxu0 %vm9530_vm1, %v9531_v7  ;;  %7514 = vmatpush3.bf16.msra.mxu0 %v8144_v62 }
 0x433   : > { %7515 = vmatprep.subr.bf16.mxu0 %v9531_v7 }
 0x436   : > { %7516 = vmatpush3.bf16.msra.mxu0 %v8147_v63 }
 0x437   : > { %7517 = vmatprep.subr.bf16.mxu0 %v9531_v7 }
 0x43a   : > { %7518 = vmatpush3.bf16.msra.mxu0 %v8150_v0  ;;  %v3098_v0 = vld [vmem:[#allocation40 + $0x40] sm:$0xff] }
 0x43b   : > { %7519 = vmatprep.subr.bf16.mxu0 %v9531_v7 }
 0x43e   : > { %7520 = vmatpush3.bf16.msra.mxu0 %v8153_v1  ;;  %v3100_v1 = vld [vmem:[#allocation40 + $0x50] sm:$0xff] }
 0x43f   : > { %7521 = vmatprep.subr.bf16.mxu0 %v9531_v7 }
 0x442   : > { %7522 = vmatpush3.bf16.msra.mxu0 %v8156_v2  ;;  %v3103_v2 = vld [vmem:[#allocation40 + $0x68] sm:$0xff] }
 0x443   : > { %7523 = vmatprep.subr.bf16.mxu0 %v9531_v7 }
 0x446   : > { %7524 = vmatpush3.bf16.msra.mxu0 %v8159_v3  ;;  %v3105_v3 = vld [vmem:[#allocation40 + $0x78] sm:$0xff] }
 0x447   : > { %7525 = vmatprep.subr.bf16.mxu0 %v9531_v7 }
 0x504   : > { %v2046_v8 = vpop.f32.mrb[4].mxu0 }
 0x505   : > { %v2048_v9 = vpop.f32.mrb[5].mxu0 }
 0x506   : > { %v2055_v12 = vmax.f32 %v2046_v8, %v2048_v9  ;;  %v2050_v13 = vpop.f32.mrb[6].mxu0 }
 0x507   : > { %v2052_v14 = vpop.f32.mrb[7].mxu0 }
 0x508   : > { %v2056_v15 = vmax.f32 %v2050_v13, %v2052_v14 }
 0x50a   : > { %v7568_v18 = vpack.c.bf16 %v2056_v15, %v2055_v12  ;;  %v6971_v15 = vld [vmem:[#allocation9] ss:$0 sm:$0xff] }
 0x50c   : > { %7569 = vmatpush3.bf16.msra.mxu1 %v7568_v18 }
 0x50d   : > { %7570 = vmatprep.subr.bf16.mxu1 %v9529_v6 }
 0x50f   : > { %7464 = vmatmul.mubr.msk.f32.vlgmr.msra.gmra.mrb[2].mxu1 %vm1513_vm0, %v2057_v19  ;;  %v6972_v19 = vld [vmem:[#allocation10] ss:$0 sm:$0xff] }
 0x510   : > { %7572 = vmatpush3.bf16.msra.mxu1 %v7568_v18  ;;  %7470 = vmatprep.mubr.msk.f32.mxu1 %vm9530_vm1, %v9531_v7 }
 0x511   : > { %7473 = vmatprep.subr.mxu1 %v9531_v7 }
 0x513   : > { %7471 = vmatmul.mubr.msk.f32.vlgmr.msra.gmra.mrb[4].mxu1 %vm1513_vm0, %v2131_v21 }
 0x514   : > { %7474 = vmatpush3.msra.mxu1 %v2222_v22  ;;  %7475 = vmatprep.mubr.msk.f32.mxu1 %vm9530_vm1, %v9531_v7 }
 0x515   : > { %7478 = vmatprep.subr.mxu1 %v9531_v7 }
 0x517   : > { %7476 = vmatmul.mubr.msk.f32.vlgmr.msra.gmra.mrb[6].mxu1 %vm2224_vm2, %v10289_v23 }
 0x518   : > { %7479 = vmatpush3.msra.mxu1 %v2222_v22  ;;  %7480 = vmatprep.mubr.msk.f32.mxu1 %vm9530_vm1, %v9531_v7 }
 0x519   : > { %7331 = vmatprep.subr.bf16.mxu1 %v8116_v24  ;;  %v8140_v24 = vld [vmem:[#allocation24 + $0x40] sm:$0xff]  }
 0x51b   : > { %7481 = vmatmul.mubr.msk.f32.vlgmr.msra.gmra.mrb[8].mxu1 %vm2224_vm2, %v10296_v25 }
 0x51c   : > { %7332 = vmatpush3.bf16.msra.mxu1 %v8117_v26  ;;  %2599 = vmatprep.mubr.bf16.mxu1 %v2373_v41  ;;  %v8141_v26 = vld [vmem:[#allocation24] sm:$0xff]   ;;  %v8163_v41 = vld [vmem:[#allocation24 + $0xb8] sm:$0xff]  }
 0x51d   : > { %7333 = vmatprep.subr.bf16.mxu1 %v8118_v27  ;;  %v8142_v27 = vld [vmem:[#allocation24 + $0x48] sm:$0xff]  }
 0x520   : > { %7334 = vmatpush3.bf16.msra.mxu1 %v8119_v28 }
 0x521   : > { %7335 = vmatprep.subr.bf16.mxu1 %v8120_v29  ;;  %v8143_v29 = vld [vmem:[#allocation24 + $0x8] sm:$0xff]  }
 0x524   : > { %7336 = vmatpush3.bf16.msra.mxu1 %v8121_v30  ;;  %v8145_v30 = vld [vmem:[#allocation24 + $0x50] sm:$0xff]  }
 0x525   : > { %7337 = vmatprep.subr.bf16.mxu1 %v8122_v31  ;;  %v8148_v31 = vld [vmem:[#allocation24 + $0x58] sm:$0xff]  }
 0x528   : > { %7338 = vmatpush3.bf16.msra.mxu1 %v8123_v32  ;;  %v8149_v32 = vld [vmem:[#allocation24 + $0x18] sm:$0xff]  }
 0x529   : > { %7339 = vmatprep.subr.bf16.mxu1 %v8124_v33  ;;  %v8151_v33 = vld [vmem:[#allocation24 + $0x60] sm:$0xff]  }
 0x52c   : > { %7340 = vmatpush3.bf16.msra.mxu1 %v8125_v34  ;;  %v8152_v34 = vld [vmem:[#allocation24 + $0x20] sm:$0xff]  }
 0x52d   : > { %7341 = vmatprep.subr.bf16.mxu1 %v8126_v35  ;;  %v8154_v35 = vld [vmem:[#allocation24 + $0x68] sm:$0xff]  }
 0x530   : > { %7342 = vmatpush3.bf16.msra.mxu1 %v8127_v36  ;;  %v8155_v36 = vld [vmem:[#allocation24 + $0x28] sm:$0xff]  }
 0x531   : > { %7343 = vmatprep.subr.bf16.mxu1 %v8128_v37  ;;  %v8158_v37 = vld [vmem:[#allocation24 + $0x30] sm:$0xff]  }
 0x534   : > { %7344 = vmatpush3.bf16.msra.mxu1 %v8129_v38  ;;  %v8160_v38 = vld [vmem:[#allocation24 + $0x78] sm:$0xff]  }
 0x535   : > { %7345 = vmatprep.subr.bf16.mxu1 %v8130_v39  ;;  %v8161_v39 = vld [vmem:[#allocation24 + $0x38] sm:$0xff]  }
 0x538   : > { %7346 = vmatpush3.bf16.msra.mxu1 %v8131_v40  ;;  %v8162_v40 = vld [vmem:[#allocation24 + $0xb0] sm:$0xff]  }
 0x539   : > { %7483 = vmatprep.subr.bf16.mxu1 %v9531_v7  ;;  %7526 = vmatpush3.bf16.msra.mxu0 %v8162_v40 }
 0x53a   : > { %7527 = vmatprep.subr.bf16.mxu0 %v9531_v7 }
 0x53d   : > { %7528 = vmatpush3.bf16.msra.mxu0 %v8163_v41 }
 0x5e2   : > { %v10301_v42 = vpop.f32.mrb[2].mxu1 }
 0x5e3   : > { %v7465_v43 = vpop.f32.mrb[3].mxu1 }
 0x5e4   : > { %v3093_v43 = vld [vmem:[#allocation40 + $0x18] sm:$0xff] }
 0x5e6   : > { %v10303_v44 = vpop.f32.mrb[4].mxu1 }
 0x5e7   : > { %v2205_v45 = vmax.f32 %v10301_v42, %v10303_v44  ;;  %v7472_v46 = vpop.f32.mrb[5].mxu1  ;;  %v3091_v42 = vld [vmem:[#allocation40 + $0x8] sm:$0xff] }
 0x5e8   : > { %v7573_v44 = vpack.c.bf16 %v3093_v43, %v3091_v42  ;;  %v3092_v46 = vld [vmem:[#allocation40 + $0x10] sm:$0xff] }
 0x5ea   : > { %v2294_v47 = vpop.f32.mrb[6].mxu1 }
 0x5eb   : > { %v2372_v49 = vpack.c.bf16 %v2294_v47, %v2294_v47  ;;  %v7477_v50 = vpop.f32.mrb[7].mxu1  ;;  %v3095_v47 = vld [vmem:[#allocation40 + $0x28] sm:$0xff] }
 0x5ed   : > { %2600 = vmatmul.mubr.bf16.vlgmr.msra.gmra.mrb[12].mxu1 %v2372_v49 }
 0x5ee   : > { %7484 = vmatpush3.bf16.msra.mxu1 %v8132_v48  ;;  %v2368_v52 = vpop.f32.mrb[8].mxu1  ;;  %7499 = vmatprep.mubr.msk.bf16.mxu1 %vm9530_vm1, %v9531_v7  ;;  %v3097_v48 = vld [vmem:[#allocation40 + $0x38] sm:$0xff] }
 0x5ef   : > { %7485 = vmatprep.subr.bf16.mxu1 %v9531_v7  ;;  %v7482_v53 = vpop.f32.mrb[9].mxu1  ;;  %v2374_v61 = vpack.c.bf16 %v2368_v52, %v2368_v52 }
 0x5f0   : > { %v7577_v53 = vpack.c.bf16 %v3097_v48, %v3095_v47 }
 0x5f2   : > { %7486 = vmatpush3.bf16.msra.mxu1 %v8133_v51 }
 0x5f3   : > { %7487 = vmatprep.subr.bf16.mxu1 %v9531_v7 }
 0x5f6   : > { %7488 = vmatpush3.bf16.msra.mxu1 %v8134_v54  ;;  %v3094_v54 = vld [vmem:[#allocation40 + $0x20] sm:$0xff] }
 0x5f7   : > { %7489 = vmatprep.subr.bf16.mxu1 %v9531_v7 }
 0x5fa   : > { %7490 = vmatpush3.bf16.msra.mxu1 %v8135_v55  ;;  %v3096_v55 = vld [vmem:[#allocation40 + $0x30] sm:$0xff] }
 0x5fb   : > { %7491 = vmatprep.subr.bf16.mxu1 %v9531_v7 }
 0x5fe   : > { %7492 = vmatpush3.bf16.msra.mxu1 %v8136_v56  ;;  %v3099_v56 = vld [vmem:[#allocation40 + $0x48] sm:$0xff] }
 0x5ff   : > { %7493 = vmatprep.subr.bf16.mxu1 %v9531_v7 }
 0x602   : > { %7494 = vmatpush3.bf16.msra.mxu1 %v8137_v58  ;;  %v3101_v58 = vld [vmem:[#allocation40 + $0x58] sm:$0xff] }
 0x603   : > { %7495 = vmatprep.subr.bf16.mxu1 %v9531_v7  ;;  %v7581_v63 = vpack.c.bf16 %v3101_v58, %v3099_v56 }
 0x606   : > { %7496 = vmatpush3.bf16.msra.mxu1 %v8138_v59 }
 0x607   : > { %7497 = vmatprep.subr.bf16.mxu1 %v9531_v7 }
 0x60a   : > { %7498 = vmatpush3.bf16.msra.mxu1 %v8139_v60  ;;  %v7579_v60 = vpack.c.bf16 %v3096_v55, %v3094_v54  ;;  %v10348_v54 = vld [vmem:[%s10213_s0 + $0x8] sm:$0xff] }
 0x60b   : > { %7503 = vmatprep.subr.mxu1 %v9531_v7 }
 0x60d   : > { %7500 = vmatmul.mubr.bf16.vlgmr.msra.gmra.mrb[16].mxu1 %v2374_v61 }
 0x60e   : > { %7505 = vmatprep.mubr.msk.f32.mxu1 %vm9530_vm1, %v9531_v7 }
 0x6c0   : > { %v7347_v4 = vpop.f32.mrb[12].mxu1 }
 0x6c1   : > { %v7348_v5 = vpop.f32.mrb[13].mxu1 }
 0x6c2   : > { %v7349_v8 = vadd.f32 %v7348_v5, %v7347_v4  ;;  %v7350_v9 = vpop.f32.mrb[14].mxu1  ;;  %v7583_v4 = vpack.c.bf16 %v3100_v1, %v3098_v0  ;;  %v7585_v5 = vpack.c.bf16 %v3105_v3, %v3103_v2  ;;  %v3088_v2 = vld [vmem:[%s10795_s11] sm:$0xff]  ;;  %v3089_v3 = vld [vmem:[%s10795_s11 + $0x8] sm:$0xff] }
 0x6c3   : > { %v7351_v11 = vpop.f32.mrb[15].mxu1  ;;  %v3104_v9 = vld [vmem:[#allocation40 + $0x70] sm:$0xff] }
 0x6c4   : > { %v3107_v11 = vld [vmem:[#allocation40 + $0x88] sm:$0xff] }
 0x6e0   : > { %v2641_v12 = vpop.f32.mrb[16].mxu1 }
 0x6e1   : > { %v2642_v13 = vadd.f32 %v7349_v8, %v2641_v12  ;;  %v7501_v14 = vpop.f32.mrb[17].mxu1  ;;  %v3102_v8 = vld [vmem:[#allocation40 + $0x60] sm:$0xff]  ;;  %v3109_v12 = vld [vmem:[#allocation40 + $0x98] sm:$0xff] }
 0x6e2   : > { %v2644_v16 = vpop.f32.mrb[18].mxu1  ;;  %v7589_v14 = vpack.c.bf16 %v3109_v12, %v3107_v11 }
 0x6e3   : > { %v2647_v17 = vadd.f32 %v2642_v13, %v2205_v45  ;;  %v7502_v18 = vpop.f32.mrb[19].mxu1  ;;  %v3090_v45 = vld [vmem:[#allocation40] sm:$0xff]  ;;  %v7587_v13 = vpack.c.bf16 %v3104_v9, %v3102_v8  ;;  %v3108_v16 = vld [vmem:[#allocation40 + $0x90] sm:$0xff]  ;;  %v3278_v9 = vlaneseq }
 0x6e4   : > { %v7575_v50 = vpack.c.bf16 %v3092_v46, %v3090_v45  ;;  %v3113_v18 = vld [vmem:[#allocation40 + $0xb8] sm:$0xff] }
 0x6e5   : > { %v2655_v20 = vmul.f32 %v6971_v15, %v2647_v17  ;;  %v3106_v15 = vld [vmem:[#allocation40 + $0x80] sm:$0xff]  ;;  %v3111_v17 = vld [vmem:[#allocation40 + $0xa8] sm:$0xff]  ;;  %v3279_v12 = vshrl.u32 %v3278_v9, 7  ;;  %v8191_v9 = vld [vmem:[#allocation25 + $0x90] ss:$8 sps:$4 sm:$0xff]  }
 0x6e7   : > { %v2663_v21 = vadd.f32 %v6972_v19, %v2655_v20  ;;  %v7591_v19 = vpack.c.bf16 %v3108_v16, %v3106_v15  ;;  %v7593_v20 = vpack.c.bf16 %v3113_v18, %v3111_v17  ;;  %v10388_v15 = vsub.s32 0, %v3279_v12  ;;  %v3276_v16 = vld [vmem:[%s10796_s6] sm:$0x3] }
 0x6e8   : > { %v10391_v17 = vsub.s32 1, %v3279_v12  ;;  %v8196_v12 = vld [vmem:[#allocation25 + $0xa4] ss:$8 sps:$4 sm:$0xff]  }
 0x6e9   : > { %v2664_v22 = vmax.f32 %v2663_v21, 0.0  ;;  %v3110_v21 = vld [vmem:[#allocation40 + $0xa0] sm:$0xff]  ;;  %v3281_v18 = vrot.slane %v3276_v16, %v10388_v15 }
 0x6eb   : > { %7504 = vmatpush3.msra.mxu1 %v2664_v22  ;;  %v2806_v28 = vpack.c.bf16 %v2664_v22, %v2664_v22 }
 0x6ec   : > { %7506 = vmatmul.mubr.msk.f32.vlgmr.msra.gmra.mrb[10].mxu1 %vm2224_vm2, %v10289_v23  ;;  %7508 = vmatprep.subr.mxu1 %v9531_v7  ;;  %v8146_v23 = vld [vmem:[#allocation24 + $0x10] sm:$0xff]  }
 0x6ed   : > { %7509 = vmatpush3.msra.mxu1 %v2664_v22  ;;  %7510 = vmatprep.mubr.msk.f32.mxu1 %vm9530_vm1, %v9531_v7  ;;  %v3112_v22 = vld [vmem:[#allocation40 + $0xb0] sm:$0xff] }
 0x6ee   : > { %7366 = vmatprep.subr.bf16.mxu1 %v8140_v24  ;;  %v7595_v24 = vpack.c.bf16 %v3112_v22, %v3110_v21 }
 0x6f0   : > { %7511 = vmatmul.mubr.msk.f32.vlgmr.msra.gmra.mrb[20].mxu1 %vm2224_vm2, %v10296_v25  ;;  %v8157_v25 = vld [vmem:[#allocation24 + $0x70] sm:$0xff]  }
 0x6f1   : > { %3039 = vmatprep.mubr.bf16.mxu1 %v2806_v28  ;;  %7367 = vmatpush3.bf16.msra.mxu1 %v8141_v26  ;;  %v3115_v26 = vld [vmem:[#allocation40 + $0xc8] sm:$0xff] }
 0x6f2   : > { %7368 = vmatprep.subr.bf16.mxu1 %v8142_v27  ;;  %v3117_v27 = vld [vmem:[#allocation40 + $0xd8] sm:$0xff] }
 0x6f3   : > { %v7597_v28 = vpack.c.bf16 %v3117_v27, %v3115_v26 }
 0x6f5   : > { %7369 = vmatpush3.bf16.msra.mxu1 %v8143_v29  ;;  %v3114_v29 = vld [vmem:[#allocation40 + $0xc0] sm:$0xff] }
 0x6f6   : > { %7370 = vmatprep.subr.bf16.mxu1 %v8145_v30  ;;  %v3116_v30 = vld [vmem:[#allocation40 + $0xd0] sm:$0xff] }
 0x6f9   : > { %7371 = vmatpush3.bf16.msra.mxu1 %v8146_v23  ;;  %v7599_v23 = vpack.c.bf16 %v3116_v30, %v3114_v29 }
 0x6fa   : > { %7372 = vmatprep.subr.bf16.mxu1 %v8148_v31  ;;  %v3119_v31 = vld [vmem:[#allocation40 + $0xe8] sm:$0xff] }
 0x6fd   : > { %7373 = vmatpush3.bf16.msra.mxu1 %v8149_v32  ;;  %v3121_v32 = vld [vmem:[#allocation40 + $0xf8] sm:$0xff] }
 0x6fe   : > { %7374 = vmatprep.subr.bf16.mxu1 %v8151_v33  ;;  %v7601_v33 = vpack.c.bf16 %v3121_v32, %v3119_v31 }
 0x701   : > { %7375 = vmatpush3.bf16.msra.mxu1 %v8152_v34  ;;  %v3118_v34 = vld [vmem:[#allocation40 + $0xe0] sm:$0xff] }
 0x702   : > { %7376 = vmatprep.subr.bf16.mxu1 %v8154_v35  ;;  %v3120_v35 = vld [vmem:[#allocation40 + $0xf0] sm:$0xff] }
 0x705   : > { %7377 = vmatpush3.bf16.msra.mxu1 %v8155_v36  ;;  %v7603_v36 = vpack.c.bf16 %v3120_v35, %v3118_v34 }
 0x706   : > { %7378 = vmatprep.subr.bf16.mxu1 %v8157_v25 }
 0x709   : > { %7379 = vmatpush3.bf16.msra.mxu1 %v8158_v37 }
 0x70a   : > { %7380 = vmatprep.subr.bf16.mxu1 %v8160_v38  ;;  %v6975_v38 = vld [vmem:[#allocation12] ss:$0 sm:$0xff] }
 0x70d   : > { %7381 = vmatpush3.bf16.msra.mxu1 %v8161_v39 }
 0x70e   : > { %7574 = vmatprep.subr.bf16.mxu1 %v7573_v44 }
 0x7bf   : > { %v2731_v49 = vpop.f32.mrb[10].mxu1 }
 0x7c0   : > { %v2805_v51 = vpack.c.bf16 %v2731_v49, %v2731_v49  ;;  %v7507_v52 = vpop.f32.mrb[11].mxu1  ;;  %v10339_v49 = vld [vmem:[#allocation31] sm:$0xff] }
 0x7c1   : > { %v10344_v52 = vld [vmem:[%s10213_s0] sm:$0xff]  ;;  %s1486_s0 = scalar_lea.vmem %s9721_s29, %s7312_s18 }
 0x7c2   : > { %3040 = vmatmul.mubr.bf16.vlgmr.msra.gmra.mrb[24].mxu1 %v2805_v51  ;;  %v7003_v51 = vld [vmem:[#allocation15] ss:$0 sm:$0xff] }
 0x7c3   : > { %v2801_v59 = vpop.f32.mrb[20].mxu1  ;;  %7576 = vmatpush1.bf16.msra.mxu1 %v7575_v50  ;;  %3186 = vmatprep.mubr.f32.mxu1 %v9531_v7  ;;  %v7002_v50 = vld [vmem:[#allocation13] ss:$0 sm:$0xff] }
 0x7c4   : > { %v2807_v61 = vpack.c.bf16 %v2801_v59, %v2801_v59  ;;  %v7512_v62 = vpop.f32.mrb[21].mxu1  ;;  %7578 = vmatprep.subr.bf16.mxu1 %v7577_v53  ;;  %v3319_v53 = vmul.f32 %v10344_v52, %v7002_v50  ;;  %v3320_v55 = vmul.f32 %v10348_v54, %v7002_v50  ;;  %v8175_v50 = vld [vmem:[#allocation25 + $0x34] ss:$8 sps:$4 sm:$0xff]  }
 0x7c5   : > { %v10361_v62 = vld [vmem:[#allocation33] sm:$0xff] }
 0x7c6   : > { %7530 = vmatmul.mubr.bf16.vlgmr.msra.gmra.mrb[8].mxu0 %v2807_v61  ;;  %v3328_v56 = vadd.f32 %v7003_v51, %v3319_v53  ;;  %v3329_v58 = vadd.f32 %v7003_v51, %v3320_v55  ;;  %v10356_v61 = vld [vmem:[#allocation31 + $0x8] sm:$0xff]  ;;  %v8173_v51 = vld [vmem:[#allocation25 + $0x30] ss:$8 sps:$4 sm:$0xff]  }
 0x7c7   : > { %7580 = vmatpush1.bf16.msra.mxu1 %v7579_v60  ;;  %3263 = vmatprep.mubr.f32.mxu0 %v9531_v7  ;;  %v8178_v53 = vld [vmem:[#allocation25 + $0x44] ss:$8 sps:$4 sm:$0xff]   ;;  %v8176_v55 = vld [vmem:[#allocation25 + $0x40] ss:$8 sps:$4 sm:$0xff]  }
 0x7c8   : > { %7582 = vmatprep.subr.bf16.mxu1 %v7581_v63  ;;  %v3330_v59 = vmax.f32 %v3328_v56, 0.0  ;;  %v10365_v63 = vld [vmem:[#allocation33 + $0x8] sm:$0xff] }
 0x7c9   : > { %v8181_v56 = vld [vmem:[#allocation25 + $0x54] ss:$8 sps:$4 sm:$0xff]  }
 0x7cb   : > { %7584 = vmatpush1.bf16.msra.mxu1 %v7583_v4 }
 0x7cc   : > { %7586 = vmatprep.subr.bf16.mxu1 %v7585_v5 }
 0x7cf   : > { %7588 = vmatpush1.bf16.msra.mxu1 %v7587_v13 }
 0x7d0   : > { %7590 = vmatprep.subr.bf16.mxu1 %v7589_v14 }
 0x7d3   : > { %7592 = vmatpush1.bf16.msra.mxu1 %v7591_v19  ;;  %v3292_v19 = vld [vmem:[#allocation16] sm:$0x3] }
 0x7d4   : > { %7594 = vmatprep.subr.bf16.mxu1 %v7593_v20  ;;  %v3285_v20 = vrot.slane %v3276_v16, %v10391_v17  ;;  %v8194_v16 = vld [vmem:[#allocation25 + $0xa0] ss:$8 sps:$4 sm:$0xff]  }
 0x7d7   : > { %7596 = vmatpush1.bf16.msra.mxu1 %v7595_v24  ;;  %v3297_v24 = vrot.slane %v3292_v19, %v10388_v15 }
 0x7d8   : > { %7598 = vmatprep.subr.bf16.mxu1 %v7597_v28  ;;  %v3301_v28 = vrot.slane %v3292_v19, %v10391_v17  ;;  %v8197_v19 = vld [vmem:[#allocation25 + $0xb0] ss:$8 sps:$4 sm:$0xff]  }
 0x7db   : > { %7600 = vmatpush1.bf16.msra.mxu1 %v7599_v23 }
 0x7dc   : > { %7602 = vmatprep.subr.bf16.mxu1 %v7601_v33 }
 0x7df   : > { %7604 = vmatpush1.bf16.msra.mxu1 %v7603_v36 }
 0x895   : > { %v7382_v25 = vpop.f32.mrb[24].mxu1 }
 0x896   : > { %v7383_v37 = vpop.f32.mrb[25].mxu1 }
 0x897   : > { %v7384_v39 = vadd.f32 %v7383_v37, %v7382_v25  ;;  %v7385_v40 = vpop.f32.mrb[26].mxu1 }
 0x898   : > { %v7386_v41 = vpop.f32.mrb[27].mxu1 }
 0x899   : > { %v3042_v42 = vadd.f32 %v7384_v39, %v6975_v38  ;;  %v3081_v43 = vpop.f32.mrb[8].mxu0 }
 0x89a   : > { %v7531_v44 = vpop.f32.mrb[9].mxu0 }
 0x89b   : > { %v3082_v45 = vadd.f32 %v3081_v43, %v3042_v42  ;;  %v3084_v46 = vpop.f32.mrb[10].mxu0  ;;  %v8166_v43 = vld [vmem:[#allocation25 + $0x4] ss:$8 sps:$4 sm:$0xff]   ;;  %v8164_v44 = vld [vmem:[#allocation25] ss:$8 sps:$4 sm:$0xff]  }
 0x89c   : > { %v7532_v47 = vpop.f32.mrb[11].mxu0  ;;  %v8167_v46 = vld [vmem:[#allocation25 + $0x10] ss:$8 sps:$4 sm:$0xff]  }
 0x89d   : > { %v3087_v48 = vmul.f32 %v3082_v45, %v10278_v10  ;;  %v3331_v10 = vmax.f32 %v3329_v58, 0.0  ;;  %v8169_v45 = vld [vmem:[#allocation25 + $0x14] ss:$8 sps:$4 sm:$0xff]   ;;  %v8172_v47 = vld [vmem:[#allocation25 + $0x24] ss:$8 sps:$4 sm:$0xff]  }
 0x89e   : > { %v8179_v58 = vld [vmem:[#allocation25 + $0x50] ss:$8 sps:$4 sm:$0xff]  }
 0x89f   : > { %3187 = vmatmul.mubr.f32.vlgmr.msra.gmra.mrb[22].mxu1 %v3087_v48  ;;  %v10351_v60 = vpack.c.bf16 %v3331_v10, %v3330_v59  ;;  %v8170_v48 = vld [vmem:[#allocation25 + $0x20] ss:$8 sps:$4 sm:$0xff]   ;;  %v8184_v59 = vld [vmem:[#allocation25 + $0x64] ss:$8 sps:$4 sm:$0xff]  }
 0x8a0   : > { %7537 = vmatprep.mubr.msk.f32.mxu1 %vm1513_vm0, %v10339_v49  ;;  %v8182_v10 = vld [vmem:[#allocation25 + $0x60] ss:$8 sps:$4 sm:$0xff]  }
 0x8a1   : > { %7614 = vmatprep.subr.bf16.mxu1 %v10351_v60 }
 0x8a2   : > { %7616 = vmatpush3.bf16.msra.mxu1 %v10351_v60 }
 0x8a3   : > { %7618 = vmatprep.subr.bf16.mxu1 %v10351_v60 }
 0x8a5   : > { %7538 = vmatmul.mubr.msk.f32.vlgmr.msra.gmra.mrb[28].mxu1 %vm1513_vm0, %v10356_v61 }
 0x8a6   : > { %7620 = vmatpush3.bf16.msra.mxu1 %v10351_v60  ;;  %7544 = vmatprep.mubr.msk.f32.mxu1 %vm1513_vm0, %v10361_v62 }
 0x8a9   : > { %7545 = vmatmul.mubr.msk.f32.vlgmr.msra.gmra.mrb[30].mxu1 %vm1513_vm0, %v10365_v63 }
 0x8aa   : > { %4824 = vmatprep.mubr.f32.mxu1 %v9531_v7 }
 0x972   : > { %v3188_v0 = vpop.f32.mrb[22].mxu1 }
 0x973   : > { %v3190_v1 = vpop.f32.mrb[23].mxu1 }
 0x974   : > { %3199 = vmatprep.subr.mxu0 %v3190_v1  ;;  %v8190_v1 = vld [vmem:[#allocation25 + $0x84] ss:$8 sps:$4 sm:$0xff]  }
 0x975   : > { %3200 = vmatpush1.msra.mxu0 %v3188_v0  ;;  %v8187_v0 = vld [vmem:[#allocation25 + $0x74] ss:$8 sps:$4 sm:$0xff]  }
 0x976   : > { %7000 = vmatmul.mubr.msk.f32.vlgmr.msra.gmra.mrb[2].mxu0 %vm2224_vm2, %v3088_v2  ;;  %v8188_v2 = vld [vmem:[#allocation25 + $0x80] ss:$8 sps:$4 sm:$0xff]  }
 0x977   : > { %3269 = vmatprep.mubr.f32.mxu0 %v9531_v7 }
 0x978   : > { %v10376_v4 = vpop.f32.mrb[28].mxu1 }
 0x979   : > { %v10378_v5 = vpop.f32.mrb[29].mxu1 }
 0x97a   : > { %7001 = vmatmul.mubr.msk.f32.gmra.mrb[12].mxu0 %vm2224_vm2, %v3089_v3  ;;  %v3738_v8 = vpack.c.bf16 %v10376_v4, %v10378_v5  ;;  %v8193_v3 = vld [vmem:[#allocation25 + $0x94] ss:$8 sps:$4 sm:$0xff]   ;;  %v8227_v5 = vld [vmem:[#allocation25 + $0x150] ss:$8 sps:$4 sm:$0xff]  }
 0x97b   : > { %3396 = vmatprep.mubr.f32.mxu0 %v9531_v7  ;;  %v8229_v4 = vld [vmem:[#allocation25 + $0x154] ss:$8 sps:$4 sm:$0xff]  }
 0x97c   : > { %v10382_v11 = vpop.f32.mrb[30].mxu1 }
 0x97d   : > { %v10384_v13 = vpop.f32.mrb[31].mxu1 }
 0x97e   : > { %v3740_v14 = vpack.c.bf16 %v10382_v11, %v10384_v13  ;;  %v8248_v11 = vld [vmem:[%s10797_s1 + $0x40] ss:$8 sps:$4 sm:$0xff]   ;;  %v8253_v13 = vld [vmem:[%s10797_s1 + $0x54] ss:$8 sps:$4 sm:$0xff]  }
 0xa49   : > { %v10395_v21 = vpop.f32.mrb[2].mxu0 }
 0xa4a   : > { %v3288_v22 = vmul.f32 %v3281_v18, %v10395_v21  ;;  %v10399_v26 = vpop.f32.mrb[3].mxu0 }
 0xa4b   : > { %v3289_v27 = vmul.f32 %v3285_v20, %v10399_v26 }
 0xa4c   : > { %v3304_v30 = vadd.f32 %v3297_v24, %v3288_v22  ;;  %v8200_v22 = vld [vmem:[#allocation25 + $0xc0] ss:$8 sps:$4 sm:$0xff]  }
 0xa4d   : > { %v10403_v29 = vpop.f32.mrb[12].mxu0  ;;  %v3305_v33 = vadd.f32 %v3301_v28, %v3289_v27  ;;  %v8203_v27 = vld [vmem:[#allocation25 + $0xd0] ss:$8 sps:$4 sm:$0xff]  }
 0xa4e   : > { %v3290_v23 = vmul.f32 %v3281_v18, %v10403_v29  ;;  %v5016_v31 = vpack.c.bf16 %v10403_v29, %v10395_v21  ;;  %v10408_v32 = vpop.f32.mrb[13].mxu0  ;;  %v3308_v37 = vmax.f32 %v3304_v30, 0.0  ;;  %v8199_v18 = vld [vmem:[#allocation25 + $0xb4] ss:$8 sps:$4 sm:$0xff]   ;;  %v8206_v30 = vld [vmem:[#allocation25 + $0xe0] ss:$8 sps:$4 sm:$0xff]  }
 0xa4f   : > { %v3291_v34 = vmul.f32 %v3285_v20, %v10408_v32  ;;  %v5017_v35 = vpack.c.bf16 %v10408_v32, %v10399_v26  ;;  %v3309_v39 = vmax.f32 %v3305_v33, 0.0  ;;  %v8202_v20 = vld [vmem:[#allocation25 + $0xc4] ss:$8 sps:$4 sm:$0xff]   ;;  %v8209_v33 = vld [vmem:[#allocation25 + $0xf0] ss:$8 sps:$4 sm:$0xff]  }
 0xa50   : > { %v3306_v36 = vadd.f32 %v3297_v24, %v3290_v23  ;;  %v8205_v24 = vld [vmem:[#allocation25 + $0xd4] ss:$8 sps:$4 sm:$0xff]   ;;  %v8424_v26 = vld [vmem:[#allocation28 + $0x64] ss:$8 sps:$4 sm:$0xff]   ;;  %v8422_v32 = vld [vmem:[#allocation28 + $0x60] ss:$8 sps:$4 sm:$0xff]  }
 0xa51   : > { %v3307_v25 = vadd.f32 %v3301_v28, %v3291_v34  ;;  %v8208_v28 = vld [vmem:[#allocation25 + $0xe4] ss:$8 sps:$4 sm:$0xff]   ;;  %v8211_v23 = vld [vmem:[#allocation25 + $0xf4] ss:$8 sps:$4 sm:$0xff]   ;;  %v8470_v29 = vld [vmem:[#allocation27 + $0x60] ss:$8 sps:$4 sm:$0xff]  }
 0xa52   : > { %v3310_v38 = vmax.f32 %v3306_v36, 0.0  ;;  %v8214_v34 = vld [vmem:[#allocation25 + $0x104] ss:$8 sps:$4 sm:$0xff]   ;;  %v8212_v36 = vld [vmem:[#allocation25 + $0x100] ss:$8 sps:$4 sm:$0xff]  }
 0xa53   : > { %v3311_v40 = vmax.f32 %v3307_v25, 0.0  ;;  %v8217_v25 = vld [vmem:[#allocation25 + $0x114] ss:$8 sps:$4 sm:$0xff]   ;;  %v8472_v21 = vld [vmem:[#allocation27 + $0x64] ss:$8 sps:$4 sm:$0xff]  }
 0xa54   : > { %v10413_v41 = vpack.c.bf16 %v3310_v38, %v3308_v37  ;;  %v8215_v37 = vld [vmem:[#allocation25 + $0x110] ss:$8 sps:$4 sm:$0xff]   ;;  %v8220_v38 = vld [vmem:[#allocation25 + $0x124] ss:$8 sps:$4 sm:$0xff]  }
 0xa55   : > { %v10415_v42 = vpack.c.bf16 %v3311_v40, %v3309_v39  ;;  %v8218_v39 = vld [vmem:[#allocation25 + $0x120] ss:$8 sps:$4 sm:$0xff]   ;;  %v8223_v40 = vld [vmem:[#allocation25 + $0x134] ss:$8 sps:$4 sm:$0xff]  }
 0xa57   : > { %7606 = vmatprep.subr.bf16.mxu0 %v10415_v42 }
 0xa58   : > { %7608 = vmatpush1.bf16.msra.mxu0 %v10413_v41 }
 0xa59   : > { %7610 = vmatprep.subr.bf16.mxu0 %v10415_v42 }
 0xa5b   : > { %7004 = vmatmul.mubr.msk.f32.vlgmr.msra.gmra.mrb[14].mxu0 %vm1513_vm0, %v10339_v49 }
 0xa5c   : > { %7612 = vmatpush1.bf16.msra.mxu0 %v10413_v41  ;;  %3402 = vmatprep.mubr.f32.mxu0 %v9531_v7 }
 0xa5d   : > { %4029 = vmatprep.subr.bf16.mxu0 %v8166_v43  ;;  %v8221_v43 = vld [vmem:[#allocation25 + $0x130] ss:$8 sps:$4 sm:$0xff]  }
 0xa5f   : > { %7005 = vmatmul.mubr.msk.f32.gmra.mrb[16].mxu0 %vm1513_vm0, %v10356_v61 }
 0xa60   : > { %3473 = vmatprep.mubr.f32.mxu0 %v9531_v7 }
 0xa63   : > { %7006 = vmatmul.mubr.msk.f32.vlgmr.msra.gmra.mrb[18].mxu0 %vm1513_vm0, %v10361_v62 }
 0xa64   : > { %3479 = vmatprep.mubr.f32.mxu0 %v9531_v7  ;;  %4030 = vmatpush1.bf16.msra.mxu0 %v8164_v44  ;;  %v8226_v44 = vld [vmem:[#allocation25 + $0x144] ss:$8 sps:$4 sm:$0xff]  }
 0xa65   : > { %4031 = vmatprep.subr.bf16.mxu0 %v8169_v45  ;;  %v8224_v45 = vld [vmem:[#allocation25 + $0x140] ss:$8 sps:$4 sm:$0xff]  }
 0xa67   : > { %7007 = vmatmul.mubr.msk.f32.gmra.mrb[20].mxu0 %vm1513_vm0, %v10365_v63 }
 0xa68   : > { %4032 = vmatpush1.bf16.msra.mxu0 %v8167_v46  ;;  %4061 = vmatprep.mubr.bf16.mxu0 %v10351_v60  ;;  %v8185_v60 = vld [vmem:[#allocation25 + $0x70] ss:$8 sps:$4 sm:$0xff]   ;;  %v8230_v46 = vld [vmem:[#allocation25 + $0x160] ss:$8 sps:$4 sm:$0xff]  }
 0xa69   : > { %4033 = vmatprep.subr.bf16.mxu0 %v8172_v47  ;;  %v8235_v47 = vld [vmem:[#allocation25 + $0x174] ss:$8 sps:$4 sm:$0xff]  }
 0xa6c   : > { %4034 = vmatpush1.bf16.msra.mxu0 %v8170_v48  ;;  %v8233_v48 = vld [vmem:[#allocation25 + $0x170] ss:$8 sps:$4 sm:$0xff]  }
 0xa6d   : > { %4035 = vmatprep.subr.bf16.mxu0 %v8175_v50  ;;  %v8238_v50 = vld [vmem:[%s10797_s1 + $0x4] ss:$8 sps:$4 sm:$0xff]  }
 0xa70   : > { %4036 = vmatpush1.bf16.msra.mxu0 %v8173_v51  ;;  %v8236_v51 = vld [vmem:[%s10797_s1] ss:$8 sps:$4 sm:$0xff]  }
 0xa71   : > { %4037 = vmatprep.subr.bf16.mxu0 %v8178_v53  ;;  %v8241_v53 = vld [vmem:[%s10797_s1 + $0x14] ss:$8 sps:$4 sm:$0xff]  }
 0xa74   : > { %4038 = vmatpush1.bf16.msra.mxu0 %v8176_v55  ;;  %v8239_v55 = vld [vmem:[%s10797_s1 + $0x10] ss:$8 sps:$4 sm:$0xff]  }
 0xa75   : > { %4039 = vmatprep.subr.bf16.mxu0 %v8181_v56  ;;  %v8244_v56 = vld [vmem:[%s10797_s1 + $0x24] ss:$8 sps:$4 sm:$0xff]  }
 0xa78   : > { %4040 = vmatpush1.bf16.msra.mxu0 %v8179_v58  ;;  %v8242_v58 = vld [vmem:[%s10797_s1 + $0x20] ss:$8 sps:$4 sm:$0xff]  }
 0xa79   : > { %4041 = vmatprep.subr.bf16.mxu0 %v8184_v59  ;;  %v8247_v59 = vld [vmem:[%s10797_s1 + $0x34] ss:$8 sps:$4 sm:$0xff]  }
 0xa7c   : > { %4042 = vmatpush1.bf16.msra.mxu0 %v8182_v10  ;;  %v8245_v10 = vld [vmem:[%s10797_s1 + $0x30] ss:$8 sps:$4 sm:$0xff]  }
 0xa7d   : > { %4043 = vmatprep.subr.bf16.mxu0 %v8187_v0  ;;  %v8250_v0 = vld [vmem:[%s10797_s1 + $0x44] ss:$8 sps:$4 sm:$0xff]  }
 0xa80   : > { %4044 = vmatpush1.bf16.msra.mxu0 %v8185_v60  ;;  %v8256_v60 = vld [vmem:[%s10797_s1 + $0x64] ss:$8 sps:$4 sm:$0xff]  }
 0xa81   : > { %4045 = vmatprep.subr.bf16.mxu0 %v8190_v1  ;;  %v8254_v1 = vld [vmem:[%s10797_s1 + $0x60] ss:$8 sps:$4 sm:$0xff]  }
 0xa84   : > { %4046 = vmatpush1.bf16.msra.mxu0 %v8188_v2  ;;  %v8259_v2 = vld [vmem:[%s10797_s1 + $0x74] ss:$8 sps:$4 sm:$0xff]  }
 0xa85   : > { %4047 = vmatprep.subr.bf16.mxu0 %v8193_v3  ;;  %v8257_v3 = vld [vmem:[%s10797_s1 + $0x70] ss:$8 sps:$4 sm:$0xff]  }
 0xa88   : > { %4048 = vmatpush1.bf16.msra.mxu0 %v8191_v9  ;;  %v8262_v9 = vld [vmem:[%s10797_s1 + $0x84] ss:$8 sps:$4 sm:$0xff]  }
 0xa89   : > { %4049 = vmatprep.subr.bf16.mxu0 %v8196_v12  ;;  %v8260_v12 = vld [vmem:[%s10797_s1 + $0x80] ss:$8 sps:$4 sm:$0xff]  }
 0xa8c   : > { %4050 = vmatpush1.bf16.msra.mxu0 %v8194_v16  ;;  %v8265_v16 = vld [vmem:[%s10797_s1 + $0x94] ss:$8 sps:$4 sm:$0xff]  }
 0xa8d   : > { %4051 = vmatprep.subr.bf16.mxu0 %v8199_v18  ;;  %v8263_v18 = vld [vmem:[%s10797_s1 + $0x90] ss:$8 sps:$4 sm:$0xff]  }
 0xa90   : > { %4052 = vmatpush1.bf16.msra.mxu0 %v8197_v19  ;;  %v8268_v19 = vld [vmem:[%s10797_s1 + $0xa4] ss:$8 sps:$4 sm:$0xff]  }
 0xa91   : > { %4053 = vmatprep.subr.bf16.mxu0 %v8202_v20  ;;  %v8266_v20 = vld [vmem:[%s10797_s1 + $0xa0] ss:$8 sps:$4 sm:$0xff]  }
 0xa94   : > { %4054 = vmatpush1.bf16.msra.mxu0 %v8200_v22  ;;  %v8271_v22 = vld [vmem:[%s10797_s1 + $0xb4] ss:$8 sps:$4 sm:$0xff]  }
 0xa95   : > { %4055 = vmatprep.subr.bf16.mxu0 %v8205_v24  ;;  %v8269_v24 = vld [vmem:[%s10797_s1 + $0xb0] ss:$8 sps:$4 sm:$0xff]  }
 0xa98   : > { %4056 = vmatpush1.bf16.msra.mxu0 %v8203_v27  ;;  %v8274_v27 = vld [vmem:[%s10797_s1 + $0xc4] ss:$8 sps:$4 sm:$0xff]  }
 0xa99   : > { %4057 = vmatprep.subr.bf16.mxu0 %v8208_v28  ;;  %v8272_v28 = vld [vmem:[%s10797_s1 + $0xc0] ss:$8 sps:$4 sm:$0xff]  }
 0xa9c   : > { %4058 = vmatpush1.bf16.msra.mxu0 %v8206_v30  ;;  %v8277_v30 = vld [vmem:[%s10797_s1 + $0xd4] ss:$8 sps:$4 sm:$0xff]  }
 0xa9d   : > { %4059 = vmatprep.subr.bf16.mxu0 %v8211_v23  ;;  %v8275_v23 = vld [vmem:[%s10797_s1 + $0xd0] ss:$8 sps:$4 sm:$0xff]  }
 0xaa0   : > { %4060 = vmatpush1.bf16.msra.mxu0 %v8209_v33  ;;  %v8280_v33 = vld [vmem:[%s10797_s1 + $0xe4] ss:$8 sps:$4 sm:$0xff]  }
 0xaa1   : > { %4072 = vmatprep.subr.bf16.mxu0 %v8214_v34  ;;  %v8278_v34 = vld [vmem:[%s10797_s1 + $0xe0] ss:$8 sps:$4 sm:$0xff]  }
 0xaa3   : > { %4062 = vmatmul.mubr.bf16.vlgmr.msra.gmra.mrb[24].mxu0 %v3738_v8  ;;  %v8232_v8 = vld [vmem:[#allocation25 + $0x164] ss:$8 sps:$4 sm:$0xff]  }
 0xaa4   : > { %4073 = vmatpush1.bf16.msra.mxu0 %v8212_v36  ;;  %4104 = vmatprep.mubr.bf16.mxu0 %v9528_v57  ;;  %v8283_v36 = vld [vmem:[%s10797_s1 + $0xf4] ss:$8 sps:$4 sm:$0xff]  }
 0xaa5   : > { %4074 = vmatprep.subr.bf16.mxu0 %v8217_v25  ;;  %v8281_v25 = vld [vmem:[%s10797_s1 + $0xf0] ss:$8 sps:$4 sm:$0xff]  }
 0xaa8   : > { %4075 = vmatpush1.bf16.msra.mxu0 %v8215_v37  ;;  %v8286_v37 = vld [vmem:[%s10797_s1 + $0x104] ss:$8 sps:$4 sm:$0xff]  }
 0xaa9   : > { %4076 = vmatprep.subr.bf16.mxu0 %v8220_v38 }
 0xaac   : > { %4077 = vmatpush1.bf16.msra.mxu0 %v8218_v39 }
 0xaad   : > { %4078 = vmatprep.subr.bf16.mxu0 %v8223_v40 }
 0xab0   : > { %4079 = vmatpush1.bf16.msra.mxu0 %v8221_v43 }
 0xab1   : > { %4080 = vmatprep.subr.bf16.mxu0 %v8226_v44 }
 0xab4   : > { %4081 = vmatpush1.bf16.msra.mxu0 %v8224_v45 }
 0xab5   : > { %4082 = vmatprep.subr.bf16.mxu0 %v8229_v4  ;;  %v8284_v4 = vld [vmem:[%s10797_s1 + $0x100] ss:$8 sps:$4 sm:$0xff]  }
 0xab8   : > { %4083 = vmatpush1.bf16.msra.mxu0 %v8227_v5  ;;  %v8289_v5 = vld [vmem:[%s10797_s1 + $0x114] ss:$8 sps:$4 sm:$0xff]  }
 0xab9   : > { %4084 = vmatprep.subr.bf16.mxu0 %v8232_v8 }
 0xabc   : > { %4085 = vmatpush1.bf16.msra.mxu0 %v8230_v46 }
 0xabd   : > { %4086 = vmatprep.subr.bf16.mxu0 %v8235_v47  ;;  %v8287_v47 = vld [vmem:[%s10797_s1 + $0x110] ss:$8 sps:$4 sm:$0xff]  }
 0xac0   : > { %4087 = vmatpush1.bf16.msra.mxu0 %v8233_v48  ;;  %v8292_v48 = vld [vmem:[%s10797_s1 + $0x124] ss:$8 sps:$4 sm:$0xff]  }
 0xac1   : > { %4595 = vmatprep.subr.bf16.mxu0 %v8238_v50 }
 0xac3   : > { %4105 = vmatmul.mubr.bf16.vlgmr.msra.gmra.mrb[24].mxu0 %v3740_v14  ;;  %v8251_v14 = vld [vmem:[%s10797_s1 + $0x50] ss:$8 sps:$4 sm:$0xff]  }
 0xac4   : > { %4596 = vmatpush1.bf16.msra.mxu0 %v8236_v51 }
 0xac5   : > { %4597 = vmatprep.subr.bf16.mxu0 %v8241_v53 }
 0xac8   : > { %4598 = vmatpush1.bf16.msra.mxu0 %v8239_v55  ;;  %v8290_v55 = vld [vmem:[%s10797_s1 + $0x120] ss:$8 sps:$4 sm:$0xff]  }
 0xac9   : > { %4599 = vmatprep.subr.bf16.mxu0 %v8244_v56 }
 0xacc   : > { %4600 = vmatpush1.bf16.msra.mxu0 %v8242_v58  ;;  %v8293_v58 = vld [vmem:[%s10797_s1 + $0x130] ss:$8 sps:$4 sm:$0xff]  }
 0xacd   : > { %4601 = vmatprep.subr.bf16.mxu0 %v8247_v59  ;;  %v8298_v59 = vld [vmem:[%s10797_s1 + $0x144] ss:$8 sps:$4 sm:$0xff]  }
 0xad0   : > { %4602 = vmatpush1.bf16.msra.mxu0 %v8245_v10  ;;  %v8296_v10 = vld [vmem:[%s10797_s1 + $0x140] ss:$8 sps:$4 sm:$0xff]  }
 0xad1   : > { %4603 = vmatprep.subr.bf16.mxu0 %v8250_v0  ;;  %v8301_v0 = vld [vmem:[%s10797_s1 + $0x154] ss:$8 sps:$4 sm:$0xff]  }
 0xad4   : > { %4604 = vmatpush1.bf16.msra.mxu0 %v8248_v11  ;;  %v8299_v11 = vld [vmem:[%s10797_s1 + $0x150] ss:$8 sps:$4 sm:$0xff]  }
 0xad5   : > { %4605 = vmatprep.subr.bf16.mxu0 %v8253_v13  ;;  %v8304_v13 = vld [vmem:[%s10797_s1 + $0x164] ss:$8 sps:$4 sm:$0xff]  }
 0xad8   : > { %4606 = vmatpush1.bf16.msra.mxu0 %v8251_v14  ;;  %v8302_v14 = vld [vmem:[%s10797_s1 + $0x160] ss:$8 sps:$4 sm:$0xff]  }
 0xad9   : > { %4607 = vmatprep.subr.bf16.mxu0 %v8256_v60  ;;  %v8307_v60 = vld [vmem:[%s10797_s1 + $0x174] ss:$8 sps:$4 sm:$0xff]  }
 0xadc   : > { %4608 = vmatpush1.bf16.msra.mxu0 %v8254_v1  ;;  %v8305_v1 = vld [vmem:[%s10797_s1 + $0x170] ss:$8 sps:$4 sm:$0xff]  }
 0xadd   : > { %4609 = vmatprep.subr.bf16.mxu0 %v8259_v2  ;;  %v8310_v2 = vld [vmem:[%s10797_s1 + $0x184] ss:$8 sps:$4 sm:$0xff]  }
 0xae0   : > { %4610 = vmatpush1.bf16.msra.mxu0 %v8257_v3  ;;  %v8308_v3 = vld [vmem:[%s10797_s1 + $0x180] ss:$8 sps:$4 sm:$0xff]  }
 0xae1   : > { %4611 = vmatprep.subr.bf16.mxu0 %v8262_v9  ;;  %v8313_v9 = vld [vmem:[%s10797_s1 + $0x194] ss:$8 sps:$4 sm:$0xff]  }
 0xae4   : > { %4612 = vmatpush1.bf16.msra.mxu0 %v8260_v12  ;;  %v8311_v12 = vld [vmem:[%s10797_s1 + $0x190] ss:$8 sps:$4 sm:$0xff]  }
 0xae5   : > { %4613 = vmatprep.subr.bf16.mxu0 %v8265_v16  ;;  %v8316_v16 = vld [vmem:[%s10797_s1 + $0x1a4] ss:$8 sps:$4 sm:$0xff]  }
 0xae8   : > { %4614 = vmatpush1.bf16.msra.mxu0 %v8263_v18  ;;  %v8314_v18 = vld [vmem:[%s10797_s1 + $0x1a0] ss:$8 sps:$4 sm:$0xff]  }
 0xae9   : > { %4615 = vmatprep.subr.bf16.mxu0 %v8268_v19  ;;  %v8319_v19 = vld [vmem:[%s10797_s1 + $0x1b4] ss:$8 sps:$4 sm:$0xff]  }
 0xaec   : > { %4616 = vmatpush1.bf16.msra.mxu0 %v8266_v20  ;;  %v8317_v20 = vld [vmem:[%s10797_s1 + $0x1b0] ss:$8 sps:$4 sm:$0xff]  }
 0xaed   : > { %4617 = vmatprep.subr.bf16.mxu0 %v8271_v22  ;;  %v8322_v22 = vld [vmem:[%s10797_s1 + $0x1c4] ss:$8 sps:$4 sm:$0xff]  }
 0xaf0   : > { %4618 = vmatpush1.bf16.msra.mxu0 %v8269_v24  ;;  %v8320_v24 = vld [vmem:[%s10797_s1 + $0x1c0] ss:$8 sps:$4 sm:$0xff]  }
 0xaf1   : > { %4619 = vmatprep.subr.bf16.mxu0 %v8274_v27  ;;  %v8325_v27 = vld [vmem:[%s10797_s1 + $0x1d4] ss:$8 sps:$4 sm:$0xff]  }
 0xaf4   : > { %4620 = vmatpush1.bf16.msra.mxu0 %v8272_v28  ;;  %v8323_v28 = vld [vmem:[%s10797_s1 + $0x1d0] ss:$8 sps:$4 sm:$0xff]  }
 0xaf5   : > { %4621 = vmatprep.subr.bf16.mxu0 %v8277_v30  ;;  %v8328_v30 = vld [vmem:[%s10797_s1 + $0x1e4] ss:$8 sps:$4 sm:$0xff]  }
 0xaf8   : > { %4622 = vmatpush1.bf16.msra.mxu0 %v8275_v23  ;;  %v8326_v23 = vld [vmem:[%s10797_s1 + $0x1e0] ss:$8 sps:$4 sm:$0xff]  }
 0xaf9   : > { %4623 = vmatprep.subr.bf16.mxu0 %v8280_v33  ;;  %v8331_v33 = vld [vmem:[%s10797_s1 + $0x1f4] ss:$8 sps:$4 sm:$0xff]  }
 0xafc   : > { %4624 = vmatpush1.bf16.msra.mxu0 %v8278_v34  ;;  %v8329_v34 = vld [vmem:[%s10797_s1 + $0x1f0] ss:$8 sps:$4 sm:$0xff]  }
 0xafd   : > { %4625 = vmatprep.subr.bf16.mxu0 %v8283_v36  ;;  %v8334_v36 = vld [vmem:[%s10797_s1 + $0x204] ss:$8 sps:$4 sm:$0xff]  }
 0xb00   : > { %4626 = vmatpush1.bf16.msra.mxu0 %v8281_v25  ;;  %v8332_v25 = vld [vmem:[%s10797_s1 + $0x200] ss:$8 sps:$4 sm:$0xff]  }
 0xb01   : > { %4638 = vmatprep.subr.bf16.mxu0 %v8286_v37  ;;  %v8337_v37 = vld [vmem:[%s10797_s1 + $0x214] ss:$8 sps:$4 sm:$0xff]  }
 0xb2e   : > { %v3398_v38 = vpop.f32.mrb[14].mxu0 }
 0xb2f   : > { %v3400_v39 = vpop.f32.mrb[15].mxu0 }
 0xb32   : > { %v3404_v40 = vpop.f32.mrb[16].mxu0 }
 0xb33   : > { %v3486_v43 = vpack.c.bf16 %v3404_v40, %v3398_v38  ;;  %v3406_v44 = vpop.f32.mrb[17].mxu0  ;;  %v8335_v38 = vld [vmem:[%s10797_s1 + $0x210] ss:$8 sps:$4 sm:$0xff]   ;;  %v8338_v40 = vld [vmem:[%s10797_s1 + $0x220] ss:$8 sps:$4 sm:$0xff]  }
 0xb34   : > { %v3487_v45 = vpack.c.bf16 %v3406_v44, %v3400_v39  ;;  %v8340_v39 = vld [vmem:[%s10797_s1 + $0x224] ss:$8 sps:$4 sm:$0xff]   ;;  %v8341_v44 = vld [vmem:[%s10797_s1 + $0x230] ss:$8 sps:$4 sm:$0xff]  }
 0xb36   : > { %4627 = vmatprep.mubr.bf16.mxu0 %v3487_v45  ;;  %v10475_v8 = vpop.f32.mrb[18].mxu0  ;;  %v8346_v45 = vld [vmem:[%s10797_s1 + $0x244] ss:$8 sps:$4 sm:$0xff]  }
 0xb37   : > { %4628 = vmatmul.mubr.bf16.vlgmr.msra.gmra.mrb[24].mxu0 %v3486_v43  ;;  %v10477_v46 = vpop.f32.mrb[19].mxu0  ;;  %v8343_v43 = vld [vmem:[%s10797_s1 + $0x234] ss:$8 sps:$4 sm:$0xff]  }
 0xb38   : > { %4639 = vmatpush1.bf16.msra.mxu0 %v8284_v4  ;;  %4670 = vmatprep.mubr.bf16.mxu0 %v10415_v42  ;;  %v8295_v42 = vld [vmem:[%s10797_s1 + $0x134] ss:$8 sps:$4 sm:$0xff]  }
 0xb39   : > { %4640 = vmatprep.subr.bf16.mxu0 %v8289_v5  ;;  %v8349_v4 = vld [vmem:[%s10797_s1 + $0x254] ss:$8 sps:$4 sm:$0xff]   ;;  %v8347_v5 = vld [vmem:[%s10797_s1 + $0x250] ss:$8 sps:$4 sm:$0xff]  }
 0xb3a   : > { %v10482_v50 = vpop.f32.mrb[20].mxu0 }
 0xb3b   : > { %v3490_v51 = vpack.c.bf16 %v10482_v50, %v10475_v8  ;;  %v10486_v53 = vpop.f32.mrb[21].mxu0 }
 0xb3c   : > { %4641 = vmatpush1.bf16.msra.mxu0 %v8287_v47  ;;  %v3491_v56 = vpack.c.bf16 %v10486_v53, %v10477_v46  ;;  %v8352_v46 = vld [vmem:[%s10797_s1 + $0x264] ss:$8 sps:$4 sm:$0xff]   ;;  %v8350_v47 = vld [vmem:[%s10797_s1 + $0x260] ss:$8 sps:$4 sm:$0xff]   ;;  %v8353_v53 = vld [vmem:[%s10797_s1 + $0x270] ss:$8 sps:$4 sm:$0xff]  }
 0xb3d   : > { %4642 = vmatprep.subr.bf16.mxu0 %v8292_v48  ;;  %v8355_v48 = vld [vmem:[%s10797_s1 + $0x274] ss:$8 sps:$4 sm:$0xff]  }
 0xb40   : > { %4643 = vmatpush1.bf16.msra.mxu0 %v8290_v55  ;;  %v8358_v55 = vld [vmem:[%s10797_s1 + $0x284] ss:$8 sps:$4 sm:$0xff]  }
 0xb41   : > { %4644 = vmatprep.subr.bf16.mxu0 %v8295_v42  ;;  %v8361_v42 = vld [vmem:[%s10797_s1 + $0x294] ss:$8 sps:$4 sm:$0xff]  }
 0xb44   : > { %4645 = vmatpush1.bf16.msra.mxu0 %v8293_v58  ;;  %v8359_v58 = vld [vmem:[%s10797_s1 + $0x290] ss:$8 sps:$4 sm:$0xff]  }
 0xb45   : > { %4646 = vmatprep.subr.bf16.mxu0 %v8298_v59  ;;  %v8364_v59 = vld [vmem:[%s10797_s1 + $0x2a4] ss:$8 sps:$4 sm:$0xff]  }
 0xb48   : > { %4647 = vmatpush1.bf16.msra.mxu0 %v8296_v10  ;;  %v8362_v10 = vld [vmem:[%s10797_s1 + $0x2a0] ss:$8 sps:$4 sm:$0xff]  }
 0xb49   : > { %4648 = vmatprep.subr.bf16.mxu0 %v8301_v0  ;;  %v8367_v0 = vld [vmem:[%s10797_s1 + $0x2b4] ss:$8 sps:$4 sm:$0xff]  }
 0xb4c   : > { %4649 = vmatpush1.bf16.msra.mxu0 %v8299_v11  ;;  %v8365_v11 = vld [vmem:[%s10797_s1 + $0x2b0] ss:$8 sps:$4 sm:$0xff]  }
 0xb4d   : > { %4650 = vmatprep.subr.bf16.mxu0 %v8304_v13  ;;  %v8370_v13 = vld [vmem:[%s10797_s1 + $0x2c4] ss:$8 sps:$4 sm:$0xff]  }
 0xb50   : > { %4651 = vmatpush1.bf16.msra.mxu0 %v8302_v14  ;;  %v8368_v14 = vld [vmem:[%s10797_s1 + $0x2c0] ss:$8 sps:$4 sm:$0xff]  }
 0xb51   : > { %4652 = vmatprep.subr.bf16.mxu0 %v8307_v60  ;;  %v8373_v60 = vld [vmem:[%s10797_s1 + $0x2d4] ss:$8 sps:$4 sm:$0xff]  }
 0xb54   : > { %4653 = vmatpush1.bf16.msra.mxu0 %v8305_v1  ;;  %v8371_v1 = vld [vmem:[%s10797_s1 + $0x2d0] ss:$8 sps:$4 sm:$0xff]  }
 0xb55   : > { %4654 = vmatprep.subr.bf16.mxu0 %v8310_v2  ;;  %v8376_v2 = vld [vmem:[%s10797_s1 + $0x2e4] ss:$8 sps:$4 sm:$0xff]  }
 0xb58   : > { %4655 = vmatpush1.bf16.msra.mxu0 %v8308_v3  ;;  %v8374_v3 = vld [vmem:[%s10797_s1 + $0x2e0] ss:$8 sps:$4 sm:$0xff]  }
 0xb59   : > { %4656 = vmatprep.subr.bf16.mxu0 %v8313_v9  ;;  %v8379_v9 = vld [vmem:[%s10797_s1 + $0x2f4] ss:$8 sps:$4 sm:$0xff]  }
 0xb5c   : > { %4657 = vmatpush1.bf16.msra.mxu0 %v8311_v12  ;;  %v8377_v12 = vld [vmem:[%s10797_s1 + $0x2f0] ss:$8 sps:$4 sm:$0xff]  }
 0xb5d   : > { %4658 = vmatprep.subr.bf16.mxu0 %v8316_v16  ;;  %v4724_v16 = vld [vmem:[#allocation18] sm:$0x3] }
 0xb60   : > { %4659 = vmatpush1.bf16.msra.mxu0 %v8314_v18  ;;  %v4740_v18 = vld [vmem:[#allocation19] sm:$0x3] }
 0xb61   : > { %4660 = vmatprep.subr.bf16.mxu0 %v8319_v19  ;;  %v4729_v19 = vrot.slane %v4724_v16, %v10388_v15 }
 0xb64   : > { %4661 = vmatpush1.bf16.msra.mxu0 %v8317_v20  ;;  %v4733_v20 = vrot.slane %v4724_v16, %v10391_v17  ;;  %v8430_v16 = vld [vmem:[#allocation28 + $0x84] ss:$8 sps:$4 sm:$0xff]  }
 0xb65   : > { %4662 = vmatprep.subr.bf16.mxu0 %v8322_v22  ;;  %v4745_v22 = vrot.slane %v4740_v18, %v10388_v15 }
 0xb68   : > { %4663 = vmatpush1.bf16.msra.mxu0 %v8320_v24 }
 0xb69   : > { %4664 = vmatprep.subr.bf16.mxu0 %v8325_v27  ;;  %v4749_v27 = vrot.slane %v4740_v18, %v10391_v17  ;;  %v8428_v18 = vld [vmem:[#allocation28 + $0x80] ss:$8 sps:$4 sm:$0xff]  }
 0xb6c   : > { %4665 = vmatpush1.bf16.msra.mxu0 %v8323_v28 }
 0xb6d   : > { %4666 = vmatprep.subr.bf16.mxu0 %v8328_v30 }
 0xb70   : > { %4667 = vmatpush1.bf16.msra.mxu0 %v8326_v23 }
 0xb71   : > { %4668 = vmatprep.subr.bf16.mxu0 %v8331_v33 }
 0xb74   : > { %4669 = vmatpush1.bf16.msra.mxu0 %v8329_v34 }
 0xb75   : > { %4681 = vmatprep.subr.bf16.mxu0 %v8334_v36 }
 0xb77   : > { %4671 = vmatmul.mubr.bf16.vlgmr.msra.gmra.mrb[24].mxu0 %v10413_v41  ;;  %v8344_v41 = vld [vmem:[%s10797_s1 + $0x240] ss:$8 sps:$4 sm:$0xff]  }
 0xb78   : > { %4682 = vmatpush1.bf16.msra.mxu0 %v8332_v25  ;;  %4713 = vmatprep.mubr.bf16.mxu0 %v3491_v56  ;;  %v8356_v56 = vld [vmem:[%s10797_s1 + $0x280] ss:$8 sps:$4 sm:$0xff]  }
 0xb79   : > { %4683 = vmatprep.subr.bf16.mxu0 %v8337_v37 }
 0xb7c   : > { %4684 = vmatpush1.bf16.msra.mxu0 %v8335_v38 }
 0xb7d   : > { %4685 = vmatprep.subr.bf16.mxu0 %v8340_v39 }
 0xb80   : > { %4686 = vmatpush1.bf16.msra.mxu0 %v8338_v40 }
 0xb81   : > { %4687 = vmatprep.subr.bf16.mxu0 %v8343_v43 }
 0xb84   : > { %4688 = vmatpush1.bf16.msra.mxu0 %v8341_v44 }
 0xb85   : > { %4689 = vmatprep.subr.bf16.mxu0 %v8346_v45 }
 0xb88   : > { %4690 = vmatpush1.bf16.msra.mxu0 %v8344_v41  ;;  %v8382_v41 = vld [vmem:[#allocation30 + $0x4] ss:$8 sps:$4 sm:$0xff]  }
 0xb89   : > { %4691 = vmatprep.subr.bf16.mxu0 %v8349_v4  ;;  %v8380_v4 = vld [vmem:[#allocation30] ss:$8 sps:$4 sm:$0xff]  }
 0xb8c   : > { %4692 = vmatpush1.bf16.msra.mxu0 %v8347_v5  ;;  %v8385_v5 = vld [vmem:[#allocation30 + $0x14] ss:$8 sps:$4 sm:$0xff]  }
 0xb8d   : > { %4693 = vmatprep.subr.bf16.mxu0 %v8352_v46  ;;  %v8383_v46 = vld [vmem:[#allocation30 + $0x10] ss:$8 sps:$4 sm:$0xff]  }
 0xb90   : > { %4694 = vmatpush1.bf16.msra.mxu0 %v8350_v47  ;;  %v8386_v47 = vld [vmem:[#allocation30 + $0x20] ss:$8 sps:$4 sm:$0xff]  }
 0xb91   : > { %4695 = vmatprep.subr.bf16.mxu0 %v8355_v48  ;;  %v8389_v48 = vld [vmem:[#allocation30 + $0x30] ss:$8 sps:$4 sm:$0xff]  }
 0xb94   : > { %4696 = vmatpush1.bf16.msra.mxu0 %v8353_v53  ;;  %v8394_v53 = vld [vmem:[#allocation30 + $0x44] ss:$8 sps:$4 sm:$0xff]  }
 0xb95   : > { %4697 = vmatprep.subr.bf16.mxu0 %v8358_v55  ;;  %v8397_v55 = vld [vmem:[#allocation30 + $0x54] ss:$8 sps:$4 sm:$0xff]  }
 0xb98   : > { %4698 = vmatpush1.bf16.msra.mxu0 %v8356_v56  ;;  %v8395_v56 = vld [vmem:[#allocation30 + $0x50] ss:$8 sps:$4 sm:$0xff]  }
 0xb99   : > { %4699 = vmatprep.subr.bf16.mxu0 %v8361_v42  ;;  %v8400_v42 = vld [vmem:[#allocation30 + $0x64] ss:$8 sps:$4 sm:$0xff]  }
 0xb9c   : > { %4700 = vmatpush1.bf16.msra.mxu0 %v8359_v58  ;;  %v8403_v58 = vld [vmem:[#allocation30 + $0x74] ss:$8 sps:$4 sm:$0xff]  }
 0xb9d   : > { %4701 = vmatprep.subr.bf16.mxu0 %v8364_v59  ;;  %v8406_v59 = vld [vmem:[#allocation28 + $0x4] ss:$8 sps:$4 sm:$0xff]  }
 0xba0   : > { %4702 = vmatpush1.bf16.msra.mxu0 %v8362_v10  ;;  %v5050_v10 = vpack.c.bf16 %v10348_v54, %v10344_v52  ;;  %v8418_v52 = vld [vmem:[#allocation28 + $0x44] ss:$8 sps:$4 sm:$0xff]   ;;  %v8416_v54 = vld [vmem:[#allocation28 + $0x40] ss:$8 sps:$4 sm:$0xff]  }
 0xba1   : > { %4703 = vmatprep.subr.bf16.mxu0 %v8367_v0  ;;  %v8404_v0 = vld [vmem:[#allocation28] ss:$8 sps:$4 sm:$0xff]  }
 0xba4   : > { %4704 = vmatpush1.bf16.msra.mxu0 %v8365_v11  ;;  %v8409_v11 = vld [vmem:[#allocation28 + $0x14] ss:$8 sps:$4 sm:$0xff]  }
 0xba5   : > { %4705 = vmatprep.subr.bf16.mxu0 %v8370_v13  ;;  %v8407_v13 = vld [vmem:[#allocation28 + $0x10] ss:$8 sps:$4 sm:$0xff]  }
 0xba8   : > { %4706 = vmatpush1.bf16.msra.mxu0 %v8368_v14  ;;  %v8412_v14 = vld [vmem:[#allocation28 + $0x24] ss:$8 sps:$4 sm:$0xff]  }
 0xba9   : > { %4707 = vmatprep.subr.bf16.mxu0 %v8373_v60  ;;  %v8410_v60 = vld [vmem:[#allocation28 + $0x20] ss:$8 sps:$4 sm:$0xff]  }
 0xbac   : > { %4708 = vmatpush1.bf16.msra.mxu0 %v8371_v1  ;;  %v8415_v1 = vld [vmem:[#allocation28 + $0x34] ss:$8 sps:$4 sm:$0xff]  }
 0xbad   : > { %4709 = vmatprep.subr.bf16.mxu0 %v8376_v2  ;;  %v8413_v2 = vld [vmem:[#allocation28 + $0x30] ss:$8 sps:$4 sm:$0xff]  }
 0xbb0   : > { %4710 = vmatpush1.bf16.msra.mxu0 %v8374_v3  ;;  %v8421_v3 = vld [vmem:[#allocation28 + $0x54] ss:$8 sps:$4 sm:$0xff]  }
 0xbb1   : > { %4711 = vmatprep.subr.bf16.mxu0 %v8379_v9  ;;  %v8419_v9 = vld [vmem:[#allocation28 + $0x50] ss:$8 sps:$4 sm:$0xff]  }
 0xbb4   : > { %4712 = vmatpush1.bf16.msra.mxu0 %v8377_v12  ;;  %v8425_v12 = vld [vmem:[#allocation28 + $0x70] ss:$8 sps:$4 sm:$0xff]  }
 0xbb7   : > { %4714 = vmatmul.mubr.bf16.vlgmr.msra.gmra.mrb[24].mxu0 %v3490_v51 }
 0xbb8   : > { %6085 = vmatprep.mubr.f32.mxu0 %v9531_v7 }
 0xc8a   : > { %v4715_v24 = vpop.f32.mrb[24].mxu0 }
 0xc8b   : > { %v4736_v28 = vmul.f32 %v4729_v19, %v4715_v24  ;;  %v4717_v30 = vpop.f32.mrb[25].mxu0  ;;  %v8434_v24 = vld [vmem:[#allocation28 + $0xa0] ss:$8 sps:$4 sm:$0xff]  }
 0xc8c   : > { %v4737_v23 = vmul.f32 %v4733_v20, %v4717_v30  ;;  %v4719_v33 = vpop.f32.mrb[26].mxu0  ;;  %v8442_v30 = vld [vmem:[#allocation28 + $0xc4] ss:$8 sps:$4 sm:$0xff]  }
 0xc8d   : > { %v4752_v34 = vadd.f32 %v4745_v22, %v4736_v28  ;;  %v4738_v8 = vmul.f32 %v4729_v19, %v4719_v33  ;;  %v4721_v50 = vpop.f32.mrb[27].mxu0  ;;  %v8433_v19 = vld [vmem:[#allocation28 + $0x94] ss:$8 sps:$4 sm:$0xff]   ;;  %v8437_v28 = vld [vmem:[#allocation28 + $0xb0] ss:$8 sps:$4 sm:$0xff]  }
 0xc8e   : > { %v4753_v51 = vadd.f32 %v4749_v27, %v4737_v23  ;;  %v4739_v36 = vmul.f32 %v4733_v20, %v4721_v50  ;;  %v8431_v20 = vld [vmem:[#allocation28 + $0x90] ss:$8 sps:$4 sm:$0xff]   ;;  %v8440_v23 = vld [vmem:[#allocation28 + $0xc0] ss:$8 sps:$4 sm:$0xff]   ;;  %v8445_v33 = vld [vmem:[#allocation28 + $0xd4] ss:$8 sps:$4 sm:$0xff]  }
 0xc8f   : > { %v4754_v25 = vadd.f32 %v4745_v22, %v4738_v8  ;;  %v4756_v38 = vmax.f32 %v4752_v34, 0.0  ;;  %v8436_v22 = vld [vmem:[#allocation28 + $0xa4] ss:$8 sps:$4 sm:$0xff]   ;;  %v8443_v34 = vld [vmem:[#allocation28 + $0xd0] ss:$8 sps:$4 sm:$0xff]  }
 0xc90   : > { %v4755_v37 = vadd.f32 %v4749_v27, %v4739_v36  ;;  %v4757_v40 = vmax.f32 %v4753_v51, 0.0  ;;  %v8439_v27 = vld [vmem:[#allocation28 + $0xb4] ss:$8 sps:$4 sm:$0xff]   ;;  %v8448_v8 = vld [vmem:[#allocation28 + $0xe4] ss:$8 sps:$4 sm:$0xff]  }
 0xc91   : > { %v4758_v39 = vmax.f32 %v4754_v25, 0.0  ;;  %v8446_v50 = vld [vmem:[#allocation28 + $0xe0] ss:$8 sps:$4 sm:$0xff]   ;;  %v8451_v51 = vld [vmem:[#allocation28 + $0xf4] ss:$8 sps:$4 sm:$0xff]  }
 0xc92   : > { %v4759_v43 = vmax.f32 %v4755_v37, 0.0  ;;  %v8449_v36 = vld [vmem:[#allocation28 + $0xf0] ss:$8 sps:$4 sm:$0xff]   ;;  %v8454_v25 = vld [vmem:[#allocation27 + $0x4] ss:$8 sps:$4 sm:$0xff]  }
 0xc93   : > { %v10558_v44 = vpack.c.bf16 %v4758_v39, %v4756_v38  ;;  %v8452_v37 = vld [vmem:[#allocation27] ss:$8 sps:$4 sm:$0xff]   ;;  %v8457_v38 = vld [vmem:[#allocation27 + $0x14] ss:$8 sps:$4 sm:$0xff]   ;;  %v8455_v39 = vld [vmem:[#allocation27 + $0x10] ss:$8 sps:$4 sm:$0xff]  }
 0xc94   : > { %v10560_v45 = vpack.c.bf16 %v4759_v43, %v4757_v40  ;;  %v8460_v40 = vld [vmem:[#allocation27 + $0x24] ss:$8 sps:$4 sm:$0xff]   ;;  %v8458_v43 = vld [vmem:[#allocation27 + $0x20] ss:$8 sps:$4 sm:$0xff]  }
 0xc96   : > { %7622 = vmatprep.subr.bf16.mxu1 %v10560_v45 }
 0xc97   : > { %7624 = vmatpush1.bf16.msra.mxu1 %v10558_v44 }
 0xc98   : > { %7626 = vmatprep.subr.bf16.mxu1 %v10560_v45 }
 0xc9a   : > { %7156 = vmatmul.mubr.msk.f32.vlgmr.msra.gmra.mrb[32].mxu1 %vm1513_vm0, %v10339_v49  ;;  %v8388_v49 = vld [vmem:[#allocation30 + $0x24] ss:$8 sps:$4 sm:$0xff]  }
 0xc9b   : > { %7628 = vmatpush1.bf16.msra.mxu1 %v10558_v44  ;;  %4830 = vmatprep.mubr.f32.mxu1 %v9531_v7 }
 0xc9c   : > { %5147 = vmatprep.subr.bf16.mxu1 %v8382_v41  ;;  %v8463_v41 = vld [vmem:[#allocation27 + $0x34] ss:$8 sps:$4 sm:$0xff]  }
 0xc9e   : > { %7157 = vmatmul.mubr.msk.f32.gmra.mrb[34].mxu1 %vm1513_vm0, %v10356_v61  ;;  %v8391_v61 = vld [vmem:[#allocation30 + $0x34] ss:$8 sps:$4 sm:$0xff]  }
 0xc9f   : > { %4901 = vmatprep.mubr.f32.mxu1 %v9531_v7 }
 0xca2   : > { %7158 = vmatmul.mubr.msk.f32.vlgmr.msra.gmra.mrb[36].mxu1 %vm1513_vm0, %v10361_v62  ;;  %v8392_v62 = vld [vmem:[#allocation30 + $0x40] ss:$8 sps:$4 sm:$0xff]  }
 0xca3   : > { %5148 = vmatpush1.bf16.msra.mxu1 %v8380_v4  ;;  %4907 = vmatprep.mubr.f32.mxu1 %v9531_v7  ;;  %v8461_v4 = vld [vmem:[#allocation27 + $0x30] ss:$8 sps:$4 sm:$0xff]  }
 0xca4   : > { %5149 = vmatprep.subr.bf16.mxu1 %v8385_v5  ;;  %v8466_v5 = vld [vmem:[#allocation27 + $0x44] ss:$8 sps:$4 sm:$0xff]  }
 0xca6   : > { %7159 = vmatmul.mubr.msk.f32.gmra.mrb[38].mxu1 %vm1513_vm0, %v10365_v63  ;;  %v8398_v63 = vld [vmem:[#allocation30 + $0x60] ss:$8 sps:$4 sm:$0xff]  }
 0xca7   : > { %5150 = vmatpush1.bf16.msra.mxu1 %v8383_v46  ;;  %5179 = vmatprep.mubr.bf16.mxu1 %v9528_v57  ;;  %v8401_v57 = vld [vmem:[#allocation30 + $0x70] ss:$8 sps:$4 sm:$0xff]   ;;  %v8464_v46 = vld [vmem:[#allocation27 + $0x40] ss:$8 sps:$4 sm:$0xff]  }
 0xca8   : > { %5151 = vmatprep.subr.bf16.mxu1 %v8388_v49  ;;  %v8469_v49 = vld [vmem:[#allocation27 + $0x54] ss:$8 sps:$4 sm:$0xff]  }
 0xcab   : > { %5152 = vmatpush1.bf16.msra.mxu1 %v8386_v47  ;;  %v8467_v47 = vld [vmem:[#allocation27 + $0x50] ss:$8 sps:$4 sm:$0xff]  }
 0xcac   : > { %5153 = vmatprep.subr.bf16.mxu1 %v8391_v61  ;;  %v8473_v61 = vld [vmem:[#allocation27 + $0x70] ss:$8 sps:$4 sm:$0xff]  }
 0xcaf   : > { %5154 = vmatpush1.bf16.msra.mxu1 %v8389_v48  ;;  %v8478_v48 = vld [vmem:[#allocation27 + $0x84] ss:$8 sps:$4 sm:$0xff]  }
 0xcb0   : > { %5155 = vmatprep.subr.bf16.mxu1 %v8394_v53  ;;  %v8476_v53 = vld [vmem:[#allocation27 + $0x80] ss:$8 sps:$4 sm:$0xff]  }
 0xcb3   : > { %5156 = vmatpush1.bf16.msra.mxu1 %v8392_v62  ;;  %v8481_v62 = vld [vmem:[#allocation27 + $0x94] ss:$8 sps:$4 sm:$0xff]  }
 0xcb4   : > { %5157 = vmatprep.subr.bf16.mxu1 %v8397_v55  ;;  %v8479_v55 = vld [vmem:[#allocation27 + $0x90] ss:$8 sps:$4 sm:$0xff]  }
 0xcb7   : > { %5158 = vmatpush1.bf16.msra.mxu1 %v8395_v56  ;;  %v8484_v56 = vld [vmem:[#allocation27 + $0xa4] ss:$8 sps:$4 sm:$0xff]  }
 0xcb8   : > { %5159 = vmatprep.subr.bf16.mxu1 %v8400_v42  ;;  %v8482_v42 = vld [vmem:[#allocation27 + $0xa0] ss:$8 sps:$4 sm:$0xff]  }
 0xcbb   : > { %5160 = vmatpush1.bf16.msra.mxu1 %v8398_v63  ;;  %v8487_v63 = vld [vmem:[#allocation27 + $0xb4] ss:$8 sps:$4 sm:$0xff]  }
 0xcbc   : > { %5161 = vmatprep.subr.bf16.mxu1 %v8403_v58  ;;  %v8485_v58 = vld [vmem:[#allocation27 + $0xb0] ss:$8 sps:$4 sm:$0xff]  }
 0xcbf   : > { %5162 = vmatpush1.bf16.msra.mxu1 %v8401_v57  ;;  %v8490_v57 = vld [vmem:[#allocation27 + $0xc4] ss:$8 sps:$4 sm:$0xff]  }
 0xcc0   : > { %5350 = vmatprep.subr.bf16.mxu1 %v8406_v59  ;;  %v8488_v59 = vld [vmem:[#allocation27 + $0xc0] ss:$8 sps:$4 sm:$0xff]  }
 0xcc2   : > { %5180 = vmatmul.mubr.bf16.vlgmr.msra.gmra.mrb[40].mxu1 %v5050_v10  ;;  %v8493_v10 = vld [vmem:[#allocation27 + $0xd4] ss:$8 sps:$4 sm:$0xff]  }
 0xcc3   : > { %5351 = vmatpush1.bf16.msra.mxu1 %v8404_v0  ;;  %5382 = vmatprep.mubr.bf16.mxu1 %v5017_v35  ;;  %v8427_v35 = vld [vmem:[#allocation28 + $0x74] ss:$8 sps:$4 sm:$0xff]   ;;  %v8491_v0 = vld [vmem:[#allocation27 + $0xd0] ss:$8 sps:$4 sm:$0xff]  }
 0xcc4   : > { %5352 = vmatprep.subr.bf16.mxu1 %v8409_v11  ;;  %v8496_v11 = vld [vmem:[#allocation27 + $0xe4] ss:$8 sps:$4 sm:$0xff]  }
 0xcc7   : > { %5353 = vmatpush1.bf16.msra.mxu1 %v8407_v13  ;;  %v8494_v13 = vld [vmem:[#allocation27 + $0xe0] ss:$8 sps:$4 sm:$0xff]  }
 0xcc8   : > { %5354 = vmatprep.subr.bf16.mxu1 %v8412_v14  ;;  %v8499_v14 = vld [vmem:[#allocation27 + $0xf4] ss:$8 sps:$4 sm:$0xff]  }
 0xccb   : > { %5355 = vmatpush1.bf16.msra.mxu1 %v8410_v60  ;;  %v8497_v60 = vld [vmem:[#allocation27 + $0xf0] ss:$8 sps:$4 sm:$0xff]  }
 0xccc   : > { %5356 = vmatprep.subr.bf16.mxu1 %v8415_v1  ;;  %v8502_v1 = vld [vmem:[#allocation27 + $0x104] ss:$8 sps:$4 sm:$0xff]  }
 0xccf   : > { %5357 = vmatpush1.bf16.msra.mxu1 %v8413_v2 }
 0xcd0   : > { %5358 = vmatprep.subr.bf16.mxu1 %v8418_v52 }
 0xcd3   : > { %5359 = vmatpush1.bf16.msra.mxu1 %v8416_v54 }
 0xcd4   : > { %5360 = vmatprep.subr.bf16.mxu1 %v8421_v3 }
 0xcd7   : > { %5361 = vmatpush1.bf16.msra.mxu1 %v8419_v9 }
 0xcd8   : > { %5362 = vmatprep.subr.bf16.mxu1 %v8424_v26 }
 0xcdb   : > { %5363 = vmatpush1.bf16.msra.mxu1 %v8422_v32  ;;  %v8500_v32 = vld [vmem:[#allocation27 + $0x100] ss:$8 sps:$4 sm:$0xff]  }
 0xcdc   : > { %5364 = vmatprep.subr.bf16.mxu1 %v8427_v35  ;;  %v8505_v35 = vld [vmem:[#allocation27 + $0x114] ss:$8 sps:$4 sm:$0xff]  }
 0xcdf   : > { %5365 = vmatpush1.bf16.msra.mxu1 %v8425_v12 }
 0xce0   : > { %5366 = vmatprep.subr.bf16.mxu1 %v8430_v16 }
 0xce3   : > { %5367 = vmatpush1.bf16.msra.mxu1 %v8428_v18  ;;  %v8503_v18 = vld [vmem:[#allocation27 + $0x110] ss:$8 sps:$4 sm:$0xff]  }
 0xce4   : > { %5368 = vmatprep.subr.bf16.mxu1 %v8433_v19  ;;  %v8508_v19 = vld [vmem:[#allocation27 + $0x124] ss:$8 sps:$4 sm:$0xff]  }
 0xce7   : > { %5369 = vmatpush1.bf16.msra.mxu1 %v8431_v20 }
 0xce8   : > { %5370 = vmatprep.subr.bf16.mxu1 %v8436_v22 }
 0xceb   : > { %5371 = vmatpush1.bf16.msra.mxu1 %v8434_v24 }
 0xcec   : > { %5372 = vmatprep.subr.bf16.mxu1 %v8439_v27  ;;  %v8506_v27 = vld [vmem:[#allocation27 + $0x120] ss:$8 sps:$4 sm:$0xff]  }
 0xcef   : > { %5373 = vmatpush1.bf16.msra.mxu1 %v8437_v28 }
 0xcf0   : > { %5374 = vmatprep.subr.bf16.mxu1 %v8442_v30  ;;  %v8511_v30 = vld [vmem:[#allocation27 + $0x134] ss:$8 sps:$4 sm:$0xff]  }
 0xcf3   : > { %5375 = vmatpush1.bf16.msra.mxu1 %v8440_v23  ;;  %v8509_v23 = vld [vmem:[#allocation27 + $0x130] ss:$8 sps:$4 sm:$0xff]  }
 0xcf4   : > { %5376 = vmatprep.subr.bf16.mxu1 %v8445_v33  ;;  %v8512_v33 = vld [vmem:[#allocation27 + $0x140] ss:$8 sps:$4 sm:$0xff]  }
 0xcf7   : > { %5377 = vmatpush1.bf16.msra.mxu1 %v8443_v34  ;;  %v8517_v34 = vld [vmem:[#allocation27 + $0x154] ss:$8 sps:$4 sm:$0xff]  }
 0xcf8   : > { %5378 = vmatprep.subr.bf16.mxu1 %v8448_v8  ;;  %v8515_v8 = vld [vmem:[#allocation27 + $0x150] ss:$8 sps:$4 sm:$0xff]  }
 0xcfb   : > { %5379 = vmatpush1.bf16.msra.mxu1 %v8446_v50  ;;  %v8520_v50 = vld [vmem:[#allocation27 + $0x164] ss:$8 sps:$4 sm:$0xff]  }
 0xcfc   : > { %5380 = vmatprep.subr.bf16.mxu1 %v8451_v51  ;;  %v8518_v51 = vld [vmem:[#allocation27 + $0x160] ss:$8 sps:$4 sm:$0xff]  }
 0xcff   : > { %5381 = vmatpush1.bf16.msra.mxu1 %v8449_v36  ;;  %v8523_v36 = vld [vmem:[#allocation27 + $0x174] ss:$8 sps:$4 sm:$0xff]  }
 0xd00   : > { %5873 = vmatprep.subr.bf16.mxu1 %v8454_v25  ;;  %v8521_v25 = vld [vmem:[#allocation27 + $0x170] ss:$8 sps:$4 sm:$0xff]  }
 0xd02   : > { %5383 = vmatmul.mubr.bf16.vlgmr.msra.gmra.mrb[40].mxu1 %v5016_v31  ;;  %v8475_v31 = vld [vmem:[#allocation27 + $0x74] ss:$8 sps:$4 sm:$0xff]  }
 0xd03   : > { %5874 = vmatpush1.bf16.msra.mxu1 %v8452_v37  ;;  %v8526_v37 = vld [vmem:[#allocation27 + $0x184] ss:$8 sps:$4 sm:$0xff]  }
 0xd04   : > { %5875 = vmatprep.subr.bf16.mxu1 %v8457_v38  ;;  %v8524_v38 = vld [vmem:[#allocation27 + $0x180] ss:$8 sps:$4 sm:$0xff]  }
 0xd07   : > { %5876 = vmatpush1.bf16.msra.mxu1 %v8455_v39  ;;  %v8529_v39 = vld [vmem:[#allocation27 + $0x194] ss:$8 sps:$4 sm:$0xff]  }
 0xd08   : > { %5877 = vmatprep.subr.bf16.mxu1 %v8460_v40  ;;  %v8527_v40 = vld [vmem:[#allocation27 + $0x190] ss:$8 sps:$4 sm:$0xff]  }
 0xd0b   : > { %5878 = vmatpush1.bf16.msra.mxu1 %v8458_v43  ;;  %v8532_v43 = vld [vmem:[#allocation27 + $0x1a4] ss:$8 sps:$4 sm:$0xff]  }
 0xd0c   : > { %5879 = vmatprep.subr.bf16.mxu1 %v8463_v41  ;;  %v8530_v41 = vld [vmem:[#allocation27 + $0x1a0] ss:$8 sps:$4 sm:$0xff]  }
 0xd0f   : > { %5880 = vmatpush1.bf16.msra.mxu1 %v8461_v4  ;;  %v8535_v4 = vld [vmem:[#allocation27 + $0x1b4] ss:$8 sps:$4 sm:$0xff]  }
 0xd10   : > { %5881 = vmatprep.subr.bf16.mxu1 %v8466_v5  ;;  %v8533_v5 = vld [vmem:[#allocation27 + $0x1b0] ss:$8 sps:$4 sm:$0xff]  }
 0xd13   : > { %5882 = vmatpush1.bf16.msra.mxu1 %v8464_v46  ;;  %v8538_v46 = vld [vmem:[#allocation27 + $0x1c4] ss:$8 sps:$4 sm:$0xff]  }
 0xd14   : > { %5883 = vmatprep.subr.bf16.mxu1 %v8469_v49  ;;  %v8536_v49 = vld [vmem:[#allocation27 + $0x1c0] ss:$8 sps:$4 sm:$0xff]  }
 0xd17   : > { %5884 = vmatpush1.bf16.msra.mxu1 %v8467_v47  ;;  %v8541_v47 = vld [vmem:[#allocation27 + $0x1d4] ss:$8 sps:$4 sm:$0xff]  }
 0xd18   : > { %5885 = vmatprep.subr.bf16.mxu1 %v8472_v21  ;;  %v8539_v21 = vld [vmem:[#allocation27 + $0x1d0] ss:$8 sps:$4 sm:$0xff]  }
 0xd1b   : > { %5886 = vmatpush1.bf16.msra.mxu1 %v8470_v29  ;;  %v8544_v29 = vld [vmem:[#allocation27 + $0x1e4] ss:$8 sps:$4 sm:$0xff]  }
 0xd1c   : > { %5887 = vmatprep.subr.bf16.mxu1 %v8475_v31  ;;  %v8542_v31 = vld [vmem:[#allocation27 + $0x1e0] ss:$8 sps:$4 sm:$0xff]  }
 0xd1f   : > { %5888 = vmatpush1.bf16.msra.mxu1 %v8473_v61  ;;  %v8547_v61 = vld [vmem:[#allocation27 + $0x1f4] ss:$8 sps:$4 sm:$0xff]  }
 0xd20   : > { %5889 = vmatprep.subr.bf16.mxu1 %v8478_v48  ;;  %v8545_v48 = vld [vmem:[#allocation27 + $0x1f0] ss:$8 sps:$4 sm:$0xff]  }
 0xd23   : > { %5890 = vmatpush1.bf16.msra.mxu1 %v8476_v53  ;;  %v8550_v53 = vld [vmem:[#allocation27 + $0x204] ss:$8 sps:$4 sm:$0xff]  }
 0xd24   : > { %5891 = vmatprep.subr.bf16.mxu1 %v8481_v62  ;;  %v8548_v62 = vld [vmem:[#allocation27 + $0x200] ss:$8 sps:$4 sm:$0xff]  }
 0xd27   : > { %5892 = vmatpush1.bf16.msra.mxu1 %v8479_v55  ;;  %v8553_v55 = vld [vmem:[#allocation27 + $0x214] ss:$8 sps:$4 sm:$0xff]  }
 0xd28   : > { %5893 = vmatprep.subr.bf16.mxu1 %v8484_v56  ;;  %v8551_v56 = vld [vmem:[#allocation27 + $0x210] ss:$8 sps:$4 sm:$0xff]  }
 0xd2b   : > { %5894 = vmatpush1.bf16.msra.mxu1 %v8482_v42  ;;  %v8556_v42 = vld [vmem:[#allocation27 + $0x224] ss:$8 sps:$4 sm:$0xff]  }
 0xd2c   : > { %5895 = vmatprep.subr.bf16.mxu1 %v8487_v63  ;;  %v8554_v63 = vld [vmem:[#allocation27 + $0x220] ss:$8 sps:$4 sm:$0xff]  }
 0xd2f   : > { %5896 = vmatpush1.bf16.msra.mxu1 %v8485_v58  ;;  %v8559_v58 = vld [vmem:[#allocation27 + $0x234] ss:$8 sps:$4 sm:$0xff]  }
 0xd30   : > { %5897 = vmatprep.subr.bf16.mxu1 %v8490_v57  ;;  %v8557_v57 = vld [vmem:[#allocation27 + $0x230] ss:$8 sps:$4 sm:$0xff]  }
 0xd33   : > { %5898 = vmatpush1.bf16.msra.mxu1 %v8488_v59  ;;  %v8562_v59 = vld [vmem:[#allocation27 + $0x244] ss:$8 sps:$4 sm:$0xff]  }
 0xd34   : > { %5899 = vmatprep.subr.bf16.mxu1 %v8493_v10  ;;  %v8560_v10 = vld [vmem:[#allocation27 + $0x240] ss:$8 sps:$4 sm:$0xff]  }
 0xd37   : > { %5900 = vmatpush1.bf16.msra.mxu1 %v8491_v0  ;;  %v8565_v0 = vld [vmem:[#allocation27 + $0x254] ss:$8 sps:$4 sm:$0xff]  }
 0xd38   : > { %5901 = vmatprep.subr.bf16.mxu1 %v8496_v11  ;;  %v8563_v11 = vld [vmem:[#allocation27 + $0x250] ss:$8 sps:$4 sm:$0xff]  }
 0xd3b   : > { %5902 = vmatpush1.bf16.msra.mxu1 %v8494_v13  ;;  %v8566_v13 = vld [vmem:[#allocation27 + $0x260] ss:$8 sps:$4 sm:$0xff]  }
 0xd3c   : > { %5903 = vmatprep.subr.bf16.mxu1 %v8499_v14  ;;  %v8571_v14 = vld [vmem:[#allocation27 + $0x274] ss:$8 sps:$4 sm:$0xff]  }
 0xd3f   : > { %5904 = vmatpush1.bf16.msra.mxu1 %v8497_v60  ;;  %v8569_v60 = vld [vmem:[#allocation27 + $0x270] ss:$8 sps:$4 sm:$0xff]  }
 0xd40   : > { %5916 = vmatprep.subr.bf16.mxu1 %v8502_v1  ;;  %v8574_v1 = vld [vmem:[#allocation27 + $0x284] ss:$8 sps:$4 sm:$0xff]  }
 0xd6d   : > { %v4826_v2 = vpop.f32.mrb[32].mxu1 }
 0xd6e   : > { %v4828_v52 = vpop.f32.mrb[33].mxu1 }
 0xd71   : > { %v4832_v54 = vpop.f32.mrb[34].mxu1 }
 0xd72   : > { %v4914_v3 = vpack.c.bf16 %v4832_v54, %v4826_v2  ;;  %v4834_v9 = vpop.f32.mrb[35].mxu1  ;;  %v8572_v2 = vld [vmem:[#allocation27 + $0x280] ss:$8 sps:$4 sm:$0xff]   ;;  %v8575_v54 = vld [vmem:[#allocation27 + $0x290] ss:$8 sps:$4 sm:$0xff]  }
 0xd73   : > { %v4915_v26 = vpack.c.bf16 %v4834_v9, %v4828_v52  ;;  %v8577_v52 = vld [vmem:[#allocation27 + $0x294] ss:$8 sps:$4 sm:$0xff]   ;;  %v8578_v9 = vld [vmem:[#allocation27 + $0x2a0] ss:$8 sps:$4 sm:$0xff]  }
 0xd75   : > { %5905 = vmatprep.mubr.bf16.mxu1 %v4915_v26  ;;  %v10586_v12 = vpop.f32.mrb[36].mxu1  ;;  %v8583_v26 = vld [vmem:[#allocation27 + $0x2b4] ss:$8 sps:$4 sm:$0xff]  }
 0xd76   : > { %5906 = vmatmul.mubr.bf16.vlgmr.msra.gmra.mrb[40].mxu1 %v4914_v3  ;;  %v10588_v16 = vpop.f32.mrb[37].mxu1  ;;  %v8580_v3 = vld [vmem:[#allocation27 + $0x2a4] ss:$8 sps:$4 sm:$0xff]  }
 0xd77   : > { %5917 = vmatpush1.bf16.msra.mxu1 %v8500_v32  ;;  %5948 = vmatprep.mubr.bf16.mxu1 %v10560_v45  ;;  %v8514_v45 = vld [vmem:[#allocation27 + $0x144] ss:$8 sps:$4 sm:$0xff]   ;;  %v8581_v32 = vld [vmem:[#allocation27 + $0x2b0] ss:$8 sps:$4 sm:$0xff]  }
 0xd78   : > { %5918 = vmatprep.subr.bf16.mxu1 %v8505_v35  ;;  %v8586_v35 = vld [vmem:[#allocation27 + $0x2c4] ss:$8 sps:$4 sm:$0xff]  }
 0xd79   : > { %v10591_v20 = vpop.f32.mrb[38].mxu1 }
 0xd7a   : > { %v4918_v22 = vpack.c.bf16 %v10591_v20, %v10586_v12  ;;  %v10595_v24 = vpop.f32.mrb[39].mxu1  ;;  %v6108_v12 = vld [vmem:[%s10798_s7 + $0x80] sm:$0xff]  ;;  %v6109_v20 = vld [vmem:[%s10798_s7 + $0x88] sm:$0xff] }
 0xd7b   : > { %5919 = vmatpush1.bf16.msra.mxu1 %v8503_v18  ;;  %v4919_v28 = vpack.c.bf16 %v10595_v24, %v10588_v16  ;;  %v8584_v16 = vld [vmem:[#allocation27 + $0x2c0] ss:$8 sps:$4 sm:$0xff]   ;;  %v8589_v18 = vld [vmem:[#allocation27 + $0x2d4] ss:$8 sps:$4 sm:$0xff]   ;;  %v8592_v24 = vld [vmem:[#allocation27 + $0x2e4] ss:$8 sps:$4 sm:$0xff]  }
 0xd7c   : > { %5920 = vmatprep.subr.bf16.mxu1 %v8508_v19  ;;  %v8587_v19 = vld [vmem:[#allocation27 + $0x2d0] ss:$8 sps:$4 sm:$0xff]  }
 0xd7f   : > { %5921 = vmatpush1.bf16.msra.mxu1 %v8506_v27  ;;  %v8590_v27 = vld [vmem:[#allocation27 + $0x2e0] ss:$8 sps:$4 sm:$0xff]  }
 0xd80   : > { %5922 = vmatprep.subr.bf16.mxu1 %v8511_v30  ;;  %v8593_v30 = vld [vmem:[#allocation27 + $0x2f0] ss:$8 sps:$4 sm:$0xff]  }
 0xd83   : > { %5923 = vmatpush1.bf16.msra.mxu1 %v8509_v23  ;;  %v6002_v23 = vld [vmem:[#allocation21] sm:$0x3] }
 0xd84   : > { %5924 = vmatprep.subr.bf16.mxu1 %v8514_v45 }
 0xd87   : > { %5925 = vmatpush1.bf16.msra.mxu1 %v8512_v33  ;;  %v6011_v33 = vrot.slane %v6002_v23, %v10391_v17 }
 0xd88   : > { %5926 = vmatprep.subr.bf16.mxu1 %v8517_v34  ;;  %v6007_v34 = vrot.slane %v6002_v23, %v10388_v15 }
 0xd8b   : > { %5927 = vmatpush1.bf16.msra.mxu1 %v8515_v8 }
 0xd8c   : > { %5928 = vmatprep.subr.bf16.mxu1 %v8520_v50 }
 0xd8f   : > { %5929 = vmatpush1.bf16.msra.mxu1 %v8518_v51 }
 0xd90   : > { %5930 = vmatprep.subr.bf16.mxu1 %v8523_v36 }
 0xd93   : > { %5931 = vmatpush1.bf16.msra.mxu1 %v8521_v25 }
 0xd94   : > { %5932 = vmatprep.subr.bf16.mxu1 %v8526_v37  ;;  %v7633_v37 = vpack.c.bf16 %v6109_v20, %v6108_v12  ;;  %v6270_v20 = vld [vmem:[#allocation43] sm:$0x3] }
 0xd97   : > { %5933 = vmatpush1.bf16.msra.mxu1 %v8524_v38  ;;  %v6092_v38 = vld [vmem:[%s10798_s7] sm:$0xff] }
 0xd98   : > { %5934 = vmatprep.subr.bf16.mxu1 %v8529_v39  ;;  %v6093_v39 = vld [vmem:[%s10798_s7 + $0x8] sm:$0xff] }
 0xd9b   : > { %5935 = vmatpush1.bf16.msra.mxu1 %v8527_v40 }
 0xd9c   : > { %5936 = vmatprep.subr.bf16.mxu1 %v8532_v43  ;;  %v6110_v43 = vld [vmem:[%s10798_s7 + $0x90] sm:$0xff] }
 0xd9f   : > { %5937 = vmatpush1.bf16.msra.mxu1 %v8530_v41  ;;  %v6111_v41 = vld [vmem:[%s10798_s7 + $0x98] sm:$0xff] }
 0xda0   : > { %5938 = vmatprep.subr.bf16.mxu1 %v8535_v4  ;;  %v7635_v4 = vpack.c.bf16 %v6093_v39, %v6092_v38  ;;  %v6356_v39 = vld [vmem:[#allocation42 + $0x8] sm:$0xff] }
 0xda3   : > { %5939 = vmatpush1.bf16.msra.mxu1 %v8533_v5  ;;  %v7637_v5 = vpack.c.bf16 %v6111_v41, %v6110_v43  ;;  %v6355_v43 = vld [vmem:[#allocation42] sm:$0xff] }
 0xda4   : > { %5940 = vmatprep.subr.bf16.mxu1 %v8538_v46  ;;  %v6094_v46 = vld [vmem:[%s10798_s7 + $0x10] sm:$0xff] }
 0xda7   : > { %5941 = vmatpush1.bf16.msra.mxu1 %v8536_v49  ;;  %v6095_v49 = vld [vmem:[%s10798_s7 + $0x18] sm:$0xff] }
 0xda8   : > { %5942 = vmatprep.subr.bf16.mxu1 %v8541_v47  ;;  %v6112_v47 = vld [vmem:[%s10798_s7 + $0xa0] sm:$0xff] }
 0xdab   : > { %5943 = vmatpush1.bf16.msra.mxu1 %v8539_v21  ;;  %v6113_v21 = vld [vmem:[%s10798_s7 + $0xa8] sm:$0xff] }
 0xdac   : > { %5944 = vmatprep.subr.bf16.mxu1 %v8544_v29  ;;  %v9532_v29 = vmov 1.0  }
 0xdaf   : > { %5945 = vmatpush1.bf16.msra.mxu1 %v8542_v31  ;;  %v7639_v31 = vpack.c.bf16 %v6095_v49, %v6094_v46 }
 0xdb0   : > { %5946 = vmatprep.subr.bf16.mxu1 %v8547_v61  ;;  %v7641_v61 = vpack.c.bf16 %v6113_v21, %v6112_v47 }
 0xdb3   : > { %5947 = vmatpush1.bf16.msra.mxu1 %v8545_v48  ;;  %v6096_v48 = vld [vmem:[%s10798_s7 + $0x20] sm:$0xff] }
 0xdb4   : > { %5959 = vmatprep.subr.bf16.mxu1 %v8550_v53  ;;  %v6097_v53 = vld [vmem:[%s10798_s7 + $0x28] sm:$0xff] }
 0xdb6   : > { %5949 = vmatmul.mubr.bf16.vlgmr.msra.gmra.mrb[40].mxu1 %v10558_v44  ;;  %v8568_v44 = vld [vmem:[#allocation27 + $0x264] ss:$8 sps:$4 sm:$0xff]  }
 0xdb7   : > { %5960 = vmatpush1.bf16.msra.mxu1 %v8548_v62  ;;  %5991 = vmatprep.mubr.bf16.mxu1 %v4919_v28  ;;  %v8595_v28 = vld [vmem:[#allocation27 + $0x2f4] ss:$8 sps:$4 sm:$0xff]  }
 0xdb8   : > { %5961 = vmatprep.subr.bf16.mxu1 %v8553_v55  ;;  %v6114_v62 = vld [vmem:[%s10798_s7 + $0xb0] sm:$0xff]  ;;  %v6115_v55 = vld [vmem:[%s10798_s7 + $0xb8] sm:$0xff] }
 0xdbb   : > { %5962 = vmatpush1.bf16.msra.mxu1 %v8551_v56  ;;  %v7643_v56 = vpack.c.bf16 %v6097_v53, %v6096_v48 }
 0xdbc   : > { %5963 = vmatprep.subr.bf16.mxu1 %v8556_v42  ;;  %v7645_v42 = vpack.c.bf16 %v6115_v55, %v6114_v62 }
 0xdbf   : > { %5964 = vmatpush1.bf16.msra.mxu1 %v8554_v63  ;;  %v6098_v63 = vld [vmem:[%s10798_s7 + $0x30] sm:$0xff] }
 0xdc0   : > { %5965 = vmatprep.subr.bf16.mxu1 %v8559_v58  ;;  %v6099_v58 = vld [vmem:[%s10798_s7 + $0x38] sm:$0xff] }
 0xdc3   : > { %5966 = vmatpush1.bf16.msra.mxu1 %v8557_v57  ;;  %v6116_v57 = vld [vmem:[%s10798_s7 + $0xc0] sm:$0xff] }
 0xdc4   : > { %5967 = vmatprep.subr.bf16.mxu1 %v8562_v59  ;;  %v6117_v59 = vld [vmem:[%s10798_s7 + $0xc8] sm:$0xff] }
 0xdc7   : > { %5968 = vmatpush1.bf16.msra.mxu1 %v8560_v10  ;;  %v7647_v10 = vpack.c.bf16 %v6099_v58, %v6098_v63 }
 0xdc8   : > { %5969 = vmatprep.subr.bf16.mxu1 %v8565_v0  ;;  %v7649_v0 = vpack.c.bf16 %v6117_v59, %v6116_v57 }
 0xdcb   : > { %5970 = vmatpush1.bf16.msra.mxu1 %v8563_v11  ;;  %v6100_v11 = vld [vmem:[%s10798_s7 + $0x40] sm:$0xff] }
 0xdcc   : > { %5971 = vmatprep.subr.bf16.mxu1 %v8568_v44  ;;  %v6101_v44 = vld [vmem:[%s10798_s7 + $0x48] sm:$0xff] }
 0xdcf   : > { %5972 = vmatpush1.bf16.msra.mxu1 %v8566_v13  ;;  %v6118_v13 = vld [vmem:[%s10798_s7 + $0xd0] sm:$0xff] }
 0xdd0   : > { %5973 = vmatprep.subr.bf16.mxu1 %v8571_v14  ;;  %v6119_v14 = vld [vmem:[%s10798_s7 + $0xd8] sm:$0xff] }
 0xdd3   : > { %5974 = vmatpush1.bf16.msra.mxu1 %v8569_v60  ;;  %v7651_v60 = vpack.c.bf16 %v6101_v44, %v6100_v11 }
 0xdd4   : > { %5975 = vmatprep.subr.bf16.mxu1 %v8574_v1  ;;  %v7653_v1 = vpack.c.bf16 %v6119_v14, %v6118_v13 }
 0xdd7   : > { %5976 = vmatpush1.bf16.msra.mxu1 %v8572_v2  ;;  %v6102_v2 = vld [vmem:[%s10798_s7 + $0x50] sm:$0xff] }
 0xdd8   : > { %5977 = vmatprep.subr.bf16.mxu1 %v8577_v52  ;;  %v6103_v52 = vld [vmem:[%s10798_s7 + $0x58] sm:$0xff] }
 0xddb   : > { %5978 = vmatpush1.bf16.msra.mxu1 %v8575_v54  ;;  %v6120_v54 = vld [vmem:[%s10798_s7 + $0xe0] sm:$0xff] }
 0xddc   : > { %5979 = vmatprep.subr.bf16.mxu1 %v8580_v3  ;;  %v6121_v3 = vld [vmem:[%s10798_s7 + $0xe8] sm:$0xff] }
 0xddf   : > { %5980 = vmatpush1.bf16.msra.mxu1 %v8578_v9  ;;  %v7655_v9 = vpack.c.bf16 %v6103_v52, %v6102_v2 }
 0xde0   : > { %5981 = vmatprep.subr.bf16.mxu1 %v8583_v26  ;;  %v7657_v26 = vpack.c.bf16 %v6121_v3, %v6120_v54 }
 0xde3   : > { %5982 = vmatpush1.bf16.msra.mxu1 %v8581_v32  ;;  %v6104_v32 = vld [vmem:[%s10798_s7 + $0x60] sm:$0xff] }
 0xde4   : > { %5983 = vmatprep.subr.bf16.mxu1 %v8586_v35  ;;  %v6105_v35 = vld [vmem:[%s10798_s7 + $0x68] sm:$0xff] }
 0xde7   : > { %5984 = vmatpush1.bf16.msra.mxu1 %v8584_v16  ;;  %v6122_v16 = vld [vmem:[%s10798_s7 + $0xf0] sm:$0xff] }
 0xde8   : > { %5985 = vmatprep.subr.bf16.mxu1 %v8589_v18  ;;  %v6123_v18 = vld [vmem:[%s10798_s7 + $0xf8] sm:$0xff] }
 0xdeb   : > { %5986 = vmatpush1.bf16.msra.mxu1 %v8587_v19  ;;  %v7659_v19 = vpack.c.bf16 %v6105_v35, %v6104_v32 }
 0xdec   : > { %5987 = vmatprep.subr.bf16.mxu1 %v8592_v24  ;;  %v7661_v24 = vpack.c.bf16 %v6123_v18, %v6122_v16 }
 0xdef   : > { %5988 = vmatpush1.bf16.msra.mxu1 %v8590_v27  ;;  %v6106_v27 = vld [vmem:[%s10798_s7 + $0x70] sm:$0xff] }
 0xdf0   : > { %5989 = vmatprep.subr.bf16.mxu1 %v8595_v28  ;;  %v6107_v28 = vld [vmem:[%s10798_s7 + $0x78] sm:$0xff] }
 0xdf3   : > { %5990 = vmatpush1.bf16.msra.mxu1 %v8593_v30  ;;  %v7663_v30 = vpack.c.bf16 %v6107_v28, %v6106_v27 }
 0xdf4   : > { %7665 = vmatprep.subr.bf16.mxu1 %v9529_v6 }
 0xdf6   : > { %5992 = vmatmul.mubr.bf16.vlgmr.msra.gmra.mrb[40].mxu1 %v4918_v22 }
 0xdf7   : > { %7551 = vmatprep.mubr.msk.f32.mxu1 %vm9530_vm1, %v9531_v7 }
 0xec9   : > { %v5993_v45 = vpop.f32.mrb[40].mxu1 }
 0xeca   : > { %v5995_v8 = vpop.f32.mrb[41].mxu1  ;;  %v10616_v25 = vadd.f32 %v6007_v34, %v5993_v45 }
 0xecb   : > { %v5997_v50 = vpop.f32.mrb[42].mxu1  ;;  %v10612_v22 = vadd.f32 %v6011_v33, %v5995_v8 }
 0xecc   : > { %v10608_v6 = vadd.f32 %v6007_v34, %v5997_v50  ;;  %v5999_v51 = vpop.f32.mrb[43].mxu1  ;;  %v6195_v34 = vld [vmem:[%s9711_s8 + $0x8] sm:$0xff] }
 0xecd   : > { %v10614_v36 = vadd.f32 %v6011_v33, %v5999_v51  ;;  %v6194_v33 = vld [vmem:[%s9711_s8] sm:$0xff] }
 0xece   : > { %v7631_v40 = vpack.c.bf16 %v10608_v6, %v10616_v25  ;;  %v7666_v8 = vpack.c.bf16 %v6195_v34, %v6194_v33 }
 0xecf   : > { %v7629_v17 = vpack.c.bf16 %v10614_v36, %v10612_v22 }
 0xed0   : > { %7667 = vmatpush3.bf16.msra.mxu1 %v7666_v8 }
 0xed1   : > { %7630 = vmatprep.subr.bf16.mxu0 %v7629_v17  ;;  %7554 = vmatprep.subr.mxu1 %v9531_v7 }
 0xed2   : > { %7632 = vmatpush1.bf16.msra.mxu0 %v7631_v40  ;;  %v6358_v40 = vld [vmem:[#allocation42 + $0x18] sm:$0xff] }
 0xed3   : > { %7634 = vmatprep.subr.bf16.mxu0 %v7633_v37  ;;  %v7668_v41 = vpack.c.bf16 %v6358_v40, %v6356_v39 }
 0xed5   : > { %7304 = vmatmul.mubr.msk.f32.vlgmr.msra.gmra.mrb[22].mxu0 %vm1513_vm0, %v9532_v29 }
 0xed6   : > { %7636 = vmatpush3.bf16.msra.mxu0 %v7635_v4  ;;  %v6357_v4 = vld [vmem:[#allocation42 + $0x10] sm:$0xff] }
 0xed7   : > { %7638 = vmatprep.subr.bf16.mxu0 %v7637_v5  ;;  %v7670_v5 = vpack.c.bf16 %v6357_v4, %v6355_v43 }
 0xeda   : > { %7640 = vmatpush3.bf16.msra.mxu0 %v7639_v31 }
 0xedb   : > { %7642 = vmatprep.subr.bf16.mxu0 %v7641_v61 }
 0xede   : > { %7644 = vmatpush3.bf16.msra.mxu0 %v7643_v56 }
 0xedf   : > { %7646 = vmatprep.subr.bf16.mxu0 %v7645_v42 }
 0xee2   : > { %7648 = vmatpush3.bf16.msra.mxu0 %v7647_v10 }
 0xee3   : > { %7650 = vmatprep.subr.bf16.mxu0 %v7649_v0 }
 0xee6   : > { %7652 = vmatpush3.bf16.msra.mxu0 %v7651_v60 }
 0xee7   : > { %7654 = vmatprep.subr.bf16.mxu0 %v7653_v1 }
 0xeea   : > { %7656 = vmatpush3.bf16.msra.mxu0 %v7655_v9 }
 0xeeb   : > { %7658 = vmatprep.subr.bf16.mxu0 %v7657_v26 }
 0xeee   : > { %7660 = vmatpush3.bf16.msra.mxu0 %v7659_v19 }
 0xeef   : > { %7662 = vmatprep.subr.bf16.mxu0 %v7661_v24 }
 0xef2   : > { %7664 = vmatpush3.bf16.msra.mxu0 %v7663_v30 }
 0xfa8   : > { %v6087_v23 = vpop.f32.mrb[22].mxu0 }
 0xfa9   : > { %v6089_v45 = vpop.f32.mrb[23].mxu0 }
 0xfaa   : > { %6188 = vmatprep.mubr.f32.mxu0 %v6089_v45 }
 0xfab   : > { %6189 = vmatmul.mubr.f32.vlgmr.msra.gmra.mrb[28].mxu0 %v6087_v23 }
0x107e   : > { %v7437_v50 = vpop.f32.mrb[28].mxu0 }
0x107f   : > { %v7438_v51 = vpop.f32.mrb[29].mxu0 }
0x1080   : > { %v7439_v12 = vadd.f32 %v7438_v51, %v7437_v50 }
0x1082   : > { %7552 = vmatmul.mubr.msk.f32.vlgmr.msra.gmra.mrb[44].mxu1 %vm1513_vm0, %v7439_v12 }
0x1083   : > { %7556 = vmatprep.mubr.msk.f32.mxu1 %vm9530_vm1, %v9531_v7  ;;  %7555 = vmatpush3.msk.msra.mxu1 %vm6275_vm3, %v6270_v20 }
0x1084   : > { %7669 = vmatprep.subr.bf16.mxu1 %v7668_v41 }
0x1155   : > { %v6265_v17 = vpop.f32.mrb[44].mxu1 }
0x1156   : > { %v6269_v37 = vmax.f32 %v6265_v17, 0.0  ;;  %v7553_v38 = vpop.f32.mrb[45].mxu1 }
0x1158   : > { %7557 = vmatmul.mubr.msk.f32.vlgmr.msra.gmra.mrb[46].mxu1 %vm6271_vm4, %v6269_v37 }
0x1159   : > { %6426 = vmatprep.mubr.f32.mxu1 %v9531_v7  ;;  %7671 = vmatpush1.bf16.msra.mxu1 %v7670_v5 }
0x122b   : > { %v6345_v46 = vpop.f32.mrb[46].mxu1 }
0x122c   : > { %v6349_v49 = vsub.f32 0.0, %v6345_v46  ;;  %v7558_v47 = vpop.f32.mrb[47].mxu1 }
0x122e   : > { %v6350_v21 = vmul.f32 1.442695, %v6349_v49 }
0x1230   : > { %8596 = vpow2.f32 %v6350_v21 }
0x123a   : > { %v8597_v29 = vpop.eup %8596 }
0x123b   : > { %v6352_v31 = vadd.f32 1.0, %v8597_v29 }
0x123d   : > { %8598 = vrcp.f32 %v6352_v31 }
0x1247   : > { %v8599_v61 = vpop.eup %8598 }
0x1248   : > { %7308 = vmatmul.mubr.msk.f32.vlgmr.msra.gmra.mrb[48].mxu1 %vm1513_vm0, %v8599_v61 }
0x131b   : > { %v6428_v7 = vpop.f32.mrb[48].mxu1 }
0x131c   : > { %v6436_v48 = vrot.slane %v6428_v7, %v10388_v15  ;;  %v6430_v53 = vpop.f32.mrb[49].mxu1 }
0x131d   : > { %v6440_v62 = vrot.slane %v6430_v53, %v10388_v15 }
0x131e   : > { %v6441_v55 = vmul.f32 %v6436_v48, %v10616_v25  ;;  %v6443_v56 = vmul.f32 %v6436_v48, %v10608_v6 }
0x131f   : > { %v6442_v42 = vmul.f32 %v6440_v62, %v10612_v22  ;;  %v6444_v63 = vmul.f32 %v6440_v62, %v10614_v36 }
0x1320   : > { %6445 = vst [vmem:[%s1486_s0] sm:$0xff] %v6441_v55  ;;  %6447 = vst [vmem:[%s1486_s0 + $0x10] sm:$0xff] %v6443_v56 }
0x1321   : > { %6446 = vst [vmem:[%s1486_s0 + $0x8] sm:$0xff] %v6442_v42  ;;  %6448 = vst [vmem:[%s1486_s0 + $0x18] sm:$0xff] %v6444_v63 }
0x1322 PF: > { %s98_s28 = sadd.s32 1, %s9456_s28  }
0x1323   : > { %p95_p13 = scmp.ge.s32.totalorder %s98_s28, 4  }
0x1325   :  { %97 = sbr.rel (!%p95_p13) target bundleno = 78 (0x4e), region = 346 }
0x132c   :  { %6470 = vsyncpa [#allocation3], 1 }
0x132d   :  { %6472 = vsyncpa [#allocation3 + $0x1], 1 }
0x132e   :  { %6473 = vsyncpa [#allocation5], 1 }
0x132f   :  { %6474 = vsyncpa [#allocation8], 1 }
0x1330   :  { %6475 = vsyncpa [#allocation11], 1 }
0x1331   :  { %6476 = vsyncpa [#allocation14], 1 }
0x1332   :  { %6477 = vsyncpa [#allocation17], 1 }
0x1333   :  { %6478 = vsyncpa [#allocation20], 1 }
0x1334   :  { %6479 = vsyncpa [#allocation23], 1 }
0x1335   :  { %6480 = vsyncpa [#allocation26], 1 }
0x1336   :  { %6481 = vsyncpa [#allocation29], 1 }
0x1337   :  { %6482 = vsyncpa [#allocation32], 1 }
0x1338   :  { %6483 = vsyncpa [#allocation35], 1 }
0x1339   :  { %6484 = vsyncpa [#allocation38], 1 }
0x133a   :  { %6485 = vsyncpa [#allocation41], 1 }
0x133b   :  { %6486 = vsyncpa [#allocation44], 1 }

</bundles_post_ra>
